<compile_context>
chip_gen: v7x
topology: tpu7x:2x2x1
jax: 0.10.0
libtpu: 0.0.40
codegen_flags: <defaults>
</compile_context>

<pallas_src>
import functools
import math

import numpy as np
import jax
import jax.numpy as jnp
from jax.experimental import pallas as pl
from jax.experimental.pallas import tpu as pltpu


def _round_up(x, m):
    return (x + m - 1) // m * m


# ----------------------------------------------------------------------------
# Pallas kernels: linear layers
# ----------------------------------------------------------------------------
def _linear_kernel(x_ref, w_ref, b_ref, o_ref):
    acc = jnp.dot(x_ref[...], w_ref[...], preferred_element_type=jnp.float32)
    o_ref[...] = (acc + b_ref[...]).astype(o_ref.dtype)


def pallas_linear(x, w, b, *, tile_rows=512):
    """y = x @ w + b.   x: (N, K), w: (K, M), b: (M,).

    Output columns are zero-padded up to a multiple of 128 (lane-dense stores).  Rows are NOT
    padded: a cdiv grid is used and Mosaic's boundary masking handles the edge tile (avoids a
    full HBM copy of the activations).  The column pad is sliced off afterwards.
    """
    N, K = x.shape
    M = w.shape[1]
    Mp = _round_up(M, 128)                       # lane-dense output stores
    if Mp != M:
        w = jnp.pad(w, ((0, 0), (0, Mp - M)))
        b = jnp.pad(b, (0, Mp - M))
    tn = min(tile_rows, _round_up(N, 8))
    out = pl.pallas_call(
        _linear_kernel,
        out_shape=jax.ShapeDtypeStruct((N, Mp), x.dtype),
        grid=(pl.cdiv(N, tn),),
        in_specs=[
            pl.BlockSpec((tn, K), lambda i: (i, 0)),
            pl.BlockSpec((K, Mp), lambda i: (0, 0)),
            pl.BlockSpec((1, Mp), lambda i: (0, 0)),
        ],
        out_specs=pl.BlockSpec((tn, Mp), lambda i: (i, 0)),
        compiler_params=pltpu.CompilerParams(
            dimension_semantics=("parallel",),
            vmem_limit_bytes=48 * 1024 * 1024),
        cost_estimate=pl.CostEstimate(
            flops=2 * N * K * Mp,
            transcendentals=0,
            bytes_accessed=4 * (N * K + K * Mp + N * Mp)),
    )(x, w, b.reshape(1, Mp))
    return out[:, :M]


def _make_qproj_kernel(n_so, num_heads, group):
    def kernel(x_ref, w_ref, b_ref, o_ref):
        acc = jnp.dot(x_ref[...], w_ref[...], preferred_element_type=jnp.float32) + b_ref[...]
        o_ref[:, :n_so] = acc[:, :n_so].astype(o_ref.dtype)
        # grouped softmax epilogue over (levels*points) per head -- exp/div run in the EUP slot
        for h in range(num_heads):
            lo = n_so + h * group
            a = acc[:, lo:lo + group]
            a = a - jnp.max(a, axis=-1, keepdims=True)
            e = jnp.exp(a)
            o_ref[:, lo:lo + group] = (e / jnp.sum(e, axis=-1, keepdims=True)).astype(o_ref.dtype)
    return kernel


def pallas_query_proj(x, so_w, so_b, aw_w, aw_b, *, num_heads, group, tile_rows=512):
    """Fused (sampling-offset | attention-weight) projection.

    Single matmul on the shared query activations; the attention-weight half is softmaxed per
    head over `group = levels*points` in the kernel epilogue, removing the separate softmax
    pass and its extra HBM round trip.
    """
    N, K = x.shape
    n_so = so_w.shape[1]
    n_aw = aw_w.shape[1]
    assert n_aw == num_heads * group
    M = n_so + n_aw
    Mp = _round_up(M, 128)
    w = jnp.concatenate([so_w, aw_w], axis=1)
    b = jnp.concatenate([so_b, aw_b], axis=0)
    if Mp != M:
        w = jnp.pad(w, ((0, 0), (0, Mp - M)))
        b = jnp.pad(b, (0, Mp - M))
    tn = min(tile_rows, _round_up(N, 8))
    out = pl.pallas_call(
        _make_qproj_kernel(n_so, num_heads, group),
        out_shape=jax.ShapeDtypeStruct((N, Mp), x.dtype),
        grid=(pl.cdiv(N, tn),),
        in_specs=[
            pl.BlockSpec((tn, K), lambda i: (i, 0)),
            pl.BlockSpec((K, Mp), lambda i: (0, 0)),
            pl.BlockSpec((1, Mp), lambda i: (0, 0)),
        ],
        out_specs=pl.BlockSpec((tn, Mp), lambda i: (i, 0)),
        compiler_params=pltpu.CompilerParams(
            dimension_semantics=("parallel",),
            vmem_limit_bytes=48 * 1024 * 1024),
        cost_estimate=pl.CostEstimate(
            flops=2 * N * K * Mp,
            transcendentals=N * n_aw,
            bytes_accessed=4 * (N * K + K * Mp + N * Mp)),
    )(x, w, b.reshape(1, Mp))
    return out[:, :n_so], out[:, n_so:M]


# ----------------------------------------------------------------------------
# Pallas kernel: deformable-attention sampling
# ----------------------------------------------------------------------------
def _make_deform_kernel(TQ, NP, K, Dh):
    def kernel(idx_ref, val_ref, wgt_ref, out_ref, g_ref):
        # ---- gather phase: one dynamic slice per (query, bilinear row-pair) = 2 value rows ----
        @pl.loop(0, TQ)
        def _(q):
            for j in range(NP):                              # static unroll over corner pairs
                start = idx_ref[0, q, j]                     # scalar read from SMEM block
                g_ref[q, 2 * j:2 * j + 2, :] = val_ref[0, pl.ds(start, 2), :]

        # ---- contraction phase: batched over the whole query tile on the VPU ----
        # query rows in sublanes, Dh channels in lanes; reduce over the K corners.
        w = wgt_ref[0]                                       # (TQ, K)
        acc = jnp.zeros((TQ, Dh), jnp.float32)
        for k in range(K):                                   # static unroll over corners
            acc = acc + g_ref[:, k, :] * w[:, k:k + 1]
        out_ref[0] = acc.astype(out_ref.dtype)               # single bulk store per grid step

    return kernel


def pallas_deform_sample(value_hvd, idx_pairs, wgt, *, tile_q=128):
    """Deformable-attention sampling.

    value_hvd : (BH, V, Dh) f32   projected value, head-major (BH = batch*cams*heads)
    idx_pairs : (BH, Q, 2*L*P)    int32 start rows of 2-row bilinear pairs, always in [0, V-2]
    wgt       : (BH, Q, 4*L*P)    f32 bilinear * validity * attention weights (pair-ordered)
    returns   : (BH, Q, Dh) f32
    """
    BH, V, Dh = value_hvd.shape
    _, Q, NP = idx_pairs.shape
    K = wgt.shape[2]
    TQ = min(tile_q, _round_up(Q, 8))
    Qp = _round_up(Q, TQ)
    if Qp != Q:
        idx_pairs = jnp.pad(idx_pairs, ((0, 0), (0, Qp - Q), (0, 0)))   # start 0, weight 0
        wgt = jnp.pad(wgt, ((0, 0), (0, Qp - Q), (0, 0)))
    # TODO(synk): production (V ~ 30k per camera, bf16 feats): tile V with manual double-buffered
    #             make_async_copy per level page instead of one whole-V VMEM block, and keep the
    #             per-step working set under ~40 MB for v7x's 64 MiB VMEM.
    out = pl.pallas_call(
        _make_deform_kernel(TQ, NP, K, Dh),
        out_shape=jax.ShapeDtypeStruct((BH, Qp, Dh), jnp.float32),
        grid=(BH, Qp // TQ),
        in_specs=[
            pl.BlockSpec((1, TQ, NP), lambda b, t: (b, t, 0),
                         memory_space=pltpu.MemorySpace.SMEM),          # per-tile indices in SMEM
            pl.BlockSpec((1, V, Dh), lambda b, t: (b, 0, 0)),           # per-(b,h) value slab
            pl.BlockSpec((1, TQ, K), lambda b, t: (b, t, 0)),
        ],
        out_specs=pl.BlockSpec((1, TQ, Dh), lambda b, t: (b, t, 0)),
        scratch_shapes=[pltpu.VMEM((TQ, K, Dh), jnp.float32)],
        compiler_params=pltpu.CompilerParams(
            dimension_semantics=("parallel", "parallel"),
            vmem_limit_bytes=48 * 1024 * 1024),
        cost_estimate=pl.CostEstimate(
            flops=2 * BH * Qp * K * Dh,
            transcendentals=0,
            bytes_accessed=4 * (BH * V * Dh + BH * Qp * (NP + K + Dh))),
    )(idx_pairs, value_hvd, wgt)
    return out[:, :Q]


# ----------------------------------------------------------------------------
# Deformable attention (MSDeformableAttention3D) -- jnp glue + Pallas kernels
# ----------------------------------------------------------------------------
def _pair_indices_and_weights(sampling_locations, attention_weights,
                              spatial_shapes, level_start_index, num_value):
    """Bilinear grid-sample (align_corners=False, zeros padding) reformulated per sample point as
    TWO row-pairs (y0 row and y1 row, each 2 contiguous columns starting at xb) plus the 4
    matching combined weights (bilinear * validity * attention) in (y0-A, y0-B, y1-A, y1-B) order.
    """
    B, Q, Hh, L, P, _ = sampling_locations.shape
    sp = jnp.asarray(spatial_shapes, jnp.int32)          # (L, 2) = (H, W)
    lsi = jnp.asarray(level_start_index, jnp.int32)      # (L,)
    Wi = sp[:, 1][None, None, None, :, None]
    Hi = sp[:, 0][None, None, None, :, None]
    Wf = Wi.astype(jnp.float32)
    Hf = Hi.astype(jnp.float32)
    start = lsi[None, None, None, :, None]

    px = sampling_locations[..., 0] * Wf - 0.5           # grid_sample, align_corners=False
    py = sampling_locations[..., 1] * Hf - 0.5
    x0f = jnp.floor(px)
    y0f = jnp.floor(py)
    wx1 = px - x0f
    wx0 = 1.0 - wx1
    wy1 = py - y0f
    wy0 = 1.0 - wy1
    x0 = x0f.astype(jnp.int32)
    y0 = y0f.astype(jnp.int32)
    x1 = x0 + 1
    y1 = y0 + 1

    vx0 = (x0 >= 0) & (x0 < Wi)
    vx1 = (x1 >= 0) & (x1 < Wi)
    vy0 = ((y0 >= 0) & (y0 < Hi)).astype(jnp.float32)
    vy1 = ((y1 >= 0) & (y1 < Hi)).astype(jnp.float32)

    # Pair base column xb: both gathered rows of a pair are columns [xb, xb+1]; each row's weight
    # is the weight of whichever valid corner lands on it (zero if none).  Handles the x edges
    # (x0 == -1 / x0 == W-1) without misaligning the contiguous 2-row slice.
    xb = jnp.clip(x0, 0, jnp.maximum(Wi - 2, 0))
    wA = (wx0 * (vx0 & (x0 == xb)).astype(jnp.float32)
          + wx1 * (vx1 & (x1 == xb)).astype(jnp.float32))
    wB = (wx0 * (vx0 & (x0 == xb + 1)).astype(jnp.float32)
          + wx1 * (vx1 & (x1 == xb + 1)).astype(jnp.float32))

    yb0 = jnp.clip(y0, 0, Hi - 1)
    yb1 = jnp.clip(y1, 0, Hi - 1)
    base0 = start + yb0 * Wi + xb                        # (B, Q, Hh, L, P), always in [0, V-2]
    base1 = start + yb1 * Wi + xb

    aw = attention_weights
    w_y0A = wA * wy0 * vy0 * aw
    w_y0B = wB * wy0 * vy0 * aw
    w_y1A = wA * wy1 * vy1 * aw
    w_y1B = wB * wy1 * vy1 * aw

    idx_pairs = jnp.stack([base0, base1], axis=-1)               # (B, Q, Hh, L, P, 2)
    wgt = jnp.stack([w_y0A, w_y0B, w_y1A, w_y1B], axis=-1)       # (B, Q, Hh, L, P, 4)
    idx_pairs = idx_pairs.transpose(0, 2, 1, 3, 4, 5).reshape(B, Hh, Q, L * P * 2)
    wgt = wgt.transpose(0, 2, 1, 3, 4, 5).reshape(B, Hh, Q, L * P * 4)
    idx_pairs = jnp.clip(idx_pairs, 0, num_value - 2)            # belt-and-braces (already in-bounds)
    return idx_pairs.astype(jnp.int32), wgt.astype(jnp.float32)


def msda3d_forward(p, query, value, reference_points, spatial_shapes,
                   level_start_index, num_heads, num_levels, num_points):
    """MSDeformableAttention3D forward (batch_first=True). Returns (B, Q, C)."""
    B, Q, C = query.shape
    _, V, _ = value.shape
    Hh, L, P = num_heads, num_levels, num_points
    Dh = C // Hh

    # value projection (Pallas linear), head-major layout for the sampling kernel
    value_proj = pallas_linear(value.reshape(B * V, C), p['value_proj_w'], p['value_proj_b'])
    # TODO(synk): production -- avoid this full transpose by emitting the value projection directly
    #             in (B, Hh, V, Dh) layout (per-head output-column tiles in the linear grid), and
    #             cast value/weights to bf16 on v6e/v7x (f32 accumulation via preferred_element_type).
    value_hvd = value_proj.reshape(B, V, Hh, Dh).transpose(0, 2, 1, 3).reshape(B * Hh, V, Dh)

    # fused sampling-offsets + attention-weights projection with in-kernel grouped softmax
    so, aw = pallas_query_proj(query.reshape(B * Q, C),
                               p['so_w'], p['so_b'], p['aw_w'], p['aw_b'],
                               num_heads=Hh, group=L * P)
    so = so.reshape(B, Q, Hh, L, P, 2)
    aw = aw.reshape(B, Q, Hh, L, P)

    # reference_points.shape[-1] == 2 branch of MSDeformableAttention3D
    sp = jnp.asarray(spatial_shapes, jnp.float32)
    offset_normalizer = jnp.stack([sp[:, 1], sp[:, 0]], -1)                     # (L, 2) = (W, H)
    nZ = reference_points.shape[2]                                              # num_Z_anchors (D)
    ref = reference_points[:, :, None, None, None, :, :]                        # (B, Q, 1,1,1, nZ, 2)
    so = so / offset_normalizer[None, None, None, :, None, :]
    so = so.reshape(B, Q, Hh, L, P // nZ, nZ, 2)
    sampling_locations = (ref + so).reshape(B, Q, Hh, L, P, 2)

    idx_pairs, wgt = _pair_indices_and_weights(sampling_locations, aw, spatial_shapes,
                                               level_start_index, V)
    out = pallas_deform_sample(value_hvd,
                               idx_pairs.reshape(B * Hh, Q, L * P * 2),
                               wgt.reshape(B * Hh, Q, L * P * 4))               # (B*Hh, Q, Dh)
    return out.reshape(B, Hh, Q, Dh).transpose(0, 2, 1, 3).reshape(B, Q, C)


# ----------------------------------------------------------------------------
# SpatialCrossAttention forward (fully device-side, jittable)
# ----------------------------------------------------------------------------
def spatial_cross_attention_forward(params, query, key, value,
                                    reference_points_cam, bev_mask,
                                    spatial_shapes, level_start_index,
                                    query_pos=None, num_heads=4,
                                    num_levels=2, num_points=4):
    inp_residual = query
    if query_pos is not None:
        query = query + query_pos

    bs, num_query, C = query.shape
    num_cams = reference_points_cam.shape[0]
    D = reference_points_cam.shape[3]
    bev_mask = jnp.asarray(bev_mask)

    # Fixed-shape replacement of the PyTorch nonzero()/rebatch: process every query for every
    # camera and mask the scatter-back.  Deformable attention is per-query, so this is
    # numerically identical and keeps the whole forward on-device / jittable.
    queries_rebatch = jnp.broadcast_to(query[:, None], (bs, num_cams, num_query, C))
    reference_points_rebatch = jnp.transpose(reference_points_cam, (1, 0, 2, 3, 4))

    _, l, _, _ = key.shape
    value_flat = jnp.transpose(value, (2, 0, 1, 3)).reshape(bs * num_cams, l, C)

    queries = msda3d_forward(
        params['deform'],
        queries_rebatch.reshape(bs * num_cams, num_query, C),
        value_flat,
        reference_points_rebatch.reshape(bs * num_cams, num_query, D, 2),
        spatial_shapes, level_start_index,
        num_heads=num_heads, num_levels=num_levels, num_points=num_points,
    ).reshape(bs, num_cams, num_query, C)

    # masked scatter-back; NOTE: gate uses batch-0's bev_mask (mirrors mask_per_img[0] in the
    # reference) while the normalization count uses the full mask -- intentional asymmetry.
    valid = jnp.any(bev_mask[:, 0], axis=-1)                              # (num_cams, num_query)
    slots = jnp.sum(queries * valid[None, :, :, None].astype(queries.dtype), axis=1)

    count = jnp.sum(jnp.any(bev_mask, axis=-1).astype(jnp.float32).transpose(1, 2, 0), axis=-1)
    count = jnp.clip(count, 1.0, None)                                    # (bs, num_query)
    slots = slots / count[..., None]

    slots = pallas_linear(slots.reshape(bs * num_query, C),
                          params['output_proj_w'],
                          params['output_proj_b']).reshape(bs, num_query, C)

    # nn.Dropout: identity in inference mode.
    return slots + inp_residual


# ----------------------------------------------------------------------------
# Deterministic parameter init
# ----------------------------------------------------------------------------
def init_params(key, C, num_heads, num_levels, num_points):
    def xavier(k, fan_in, fan_out):
        limit = math.sqrt(6.0 / (fan_in + fan_out))
        return jax.random.uniform(k, (fan_in, fan_out), jnp.float32, -limit, limit)

    ks = jax.random.split(key, 4)
    n_so = num_heads * num_levels * num_points * 2
    n_aw = num_heads * num_levels * num_points
    return {
        'output_proj_w': xavier(ks[0], C, C),
        'output_proj_b': jnp.zeros((C,), jnp.float32),
        'deform': {
            'value_proj_w': xavier(ks[1], C, C),
            'value_proj_b': jnp.zeros((C,), jnp.float32),
            'so_w': xavier(ks[2], C, n_so),
            'so_b': jnp.zeros((n_so,), jnp.float32),
            'aw_w': xavier(ks[3], C, n_aw),
            'aw_b': jnp.zeros((n_aw,), jnp.float32),
        },
    }


# ----------------------------------------------------------------------------
# Main
# ----------------------------------------------------------------------------
if __name__ == "__main__":
    bs, num_cams, num_query = 2, 2, 16
    C, Hh, L, P, D = 32, 4, 2, 4, 2            # embed_dims, heads, levels, points, Z-anchors
    spatial_shapes = np.array([[8, 8], [4, 4]], np.int32)
    level_start_index = np.array([0, 64], np.int32)
    num_value = int((spatial_shapes[:, 0] * spatial_shapes[:, 1]).sum())   # 80

    root = jax.random.PRNGKey(0)
    k = jax.random.split(root, 8)
    query = jax.random.normal(k[0], (bs, num_query, C), jnp.float32)
    query_pos = 0.1 * jax.random.normal(k[1], (bs, num_query, C), jnp.float32)
    key_feat = jax.random.normal(k[2], (num_cams, num_value, bs, C), jnp.float32)
    value_feat = jax.random.normal(k[3], (num_cams, num_value, bs, C), jnp.float32)
    reference_points_cam = jax.random.uniform(
        k[4], (num_cams, bs, num_query, D, 2), jnp.float32)
    bev_mask = np.array(jax.random.bernoulli(k[5], 0.5, (num_cams, bs, num_query, D)))  # writable copy
    bev_mask[:, 0, 0, 0] = True   # guarantee every camera sees at least one query
    bev_mask = jnp.asarray(bev_mask)

    params = init_params(k[6], C, Hh, L, P)

    fwd = jax.jit(functools.partial(
        spatial_cross_attention_forward,
        num_heads=Hh, num_levels=L, num_points=P))

    out = fwd(params, query, key_feat, value_feat,
              reference_points_cam, bev_mask,
              jnp.asarray(spatial_shapes), jnp.asarray(level_start_index),
              query_pos=query_pos)
    out = jax.block_until_ready(out)

    assert out.shape == (bs, num_query, C), out.shape
    assert bool(jnp.all(jnp.isfinite(out)))
    print("KERNEL_OK")
</pallas_src>

<mosaic_0001>
module attributes {stable_mosaic.version = 11 : i64} {
  func.func @kernel(%arg0: i32, %arg1: memref<64x32xf32, #tpu.memory_space<vmem>>, %arg2: memref<32x128xf32, #tpu.memory_space<vmem>>, %arg3: memref<1x128xf32, #tpu.memory_space<vmem>>, %arg4: memref<64x128xf32, #tpu.memory_space<vmem>>) attributes {dimension_semantics = [#tpu.dimension_semantics<parallel>], iteration_bounds = array<i64: 1>, scalar_prefetch = 0 : i64, scratch_operands = 0 : i64, tpu.core_type = #tpu.core_type<tc>, window_params = [{transform_indices = @transform_0, window_bounds = array<i64: 64, 32>}, {pipeline_mode = #tpu.pipeline_mode<synchronous>, transform_indices = @transform_1, window_bounds = array<i64: 32, 128>}, {pipeline_mode = #tpu.pipeline_mode<synchronous>, transform_indices = @transform_2, window_bounds = array<i64: 1, 128>}, {transform_indices = @transform_3, window_bounds = array<i64: 64, 128>}]} {
    %c0 = arith.constant 0 : index
    %c0_0 = arith.constant 0 : index
    %0 = vector.load %arg1[%c0, %c0_0] : memref<64x32xf32, #tpu.memory_space<vmem>>, vector<64x32xf32>
    %c0_1 = arith.constant 0 : index
    %c0_2 = arith.constant 0 : index
    %1 = vector.load %arg2[%c0_1, %c0_2] : memref<32x128xf32, #tpu.memory_space<vmem>>, vector<32x128xf32>
    %cst = arith.constant dense<0.000000e+00> : vector<64x128xf32>
    %2 = tpu.matmul %0, %1, %cst {dimension_numbers = #tpu.dot_dimension_numbers<[1], [0], [0], [1], [0, 0, 1, 1], [], []>} : vector<64x32xf32>, vector<32x128xf32>, vector<64x128xf32> -> vector<64x128xf32>
    %c0_3 = arith.constant 0 : index
    %c0_4 = arith.constant 0 : index
    %3 = vector.load %arg3[%c0_3, %c0_4] : memref<1x128xf32, #tpu.memory_space<vmem>>, vector<1x128xf32>
    %4 = vector.broadcast %3 : vector<1x128xf32> to vector<64x128xf32>
    %5 = arith.addf %2, %4 : vector<64x128xf32>
    %6 = vector.extract_strided_slice %5 {offsets = [0, 0], sizes = [64, 64], strides = [1, 1]} : vector<64x128xf32> to vector<64x64xf32>
    %c0_5 = arith.constant 0 : index
    %c0_6 = arith.constant 0 : index
    %7 = vector.load %arg4[%c0_5, %c0_6] : memref<64x128xf32, #tpu.memory_space<vmem>>, vector<64x64xf32>
    tpu.vector_store %arg4[%c0_5, %c0_6], %6 {strides = array<i32>} : memref<64x128xf32, #tpu.memory_space<vmem>>, vector<64x64xf32>,
    %8 = vector.extract_strided_slice %5 {offsets = [0, 64], sizes = [64, 8], strides = [1, 1]} : vector<64x128xf32> to vector<64x8xf32>
    %cst_7 = arith.constant dense<0xFF800000> : vector<64xf32>
    %9 = vector.multi_reduction <maximumf>, %8, %cst_7 [1] : vector<64x8xf32> to vector<64xf32>
    %10 = vector.shape_cast %9 : vector<64xf32> to vector<64x1xf32>
    %11 = vector.broadcast %10 : vector<64x1xf32> to vector<64x8xf32>
    %12 = arith.subf %8, %11 : vector<64x8xf32>
    %13 = math.exp %12 : vector<64x8xf32>
    %cst_8 = arith.constant dense<0.000000e+00> : vector<64xf32>
    %14 = vector.multi_reduction <add>, %13, %cst_8 [1] : vector<64x8xf32> to vector<64xf32>
    %15 = vector.shape_cast %14 : vector<64xf32> to vector<64x1xf32>
    %16 = vector.broadcast %15 : vector<64x1xf32> to vector<64x8xf32>
    %17 = arith.divf %13, %16 : vector<64x8xf32>
    %c0_9 = arith.constant 0 : index
    %c64 = arith.constant 64 : index
    %18 = vector.load %arg4[%c0_9, %c64] : memref<64x128xf32, #tpu.memory_space<vmem>>, vector<64x8xf32>
    tpu.vector_store %arg4[%c0_9, %c64], %17 {strides = array<i32>} : memref<64x128xf32, #tpu.memory_space<vmem>>, vector<64x8xf32>,
    %19 = vector.extract_strided_slice %5 {offsets = [0, 72], sizes = [64, 8], strides = [1, 1]} : vector<64x128xf32> to vector<64x8xf32>
    %cst_10 = arith.constant dense<0xFF800000> : vector<64xf32>
    %20 = vector.multi_reduction <maximumf>, %19, %cst_10 [1] : vector<64x8xf32> to vector<64xf32>
    %21 = vector.shape_cast %20 : vector<64xf32> to vector<64x1xf32>
    %22 = vector.broadcast %21 : vector<64x1xf32> to vector<64x8xf32>
    %23 = arith.subf %19, %22 : vector<64x8xf32>
    %24 = math.exp %23 : vector<64x8xf32>
    %cst_11 = arith.constant dense<0.000000e+00> : vector<64xf32>
    %25 = vector.multi_reduction <add>, %24, %cst_11 [1] : vector<64x8xf32> to vector<64xf32>
    %26 = vector.shape_cast %25 : vector<64xf32> to vector<64x1xf32>
    %27 = vector.broadcast %26 : vector<64x1xf32> to vector<64x8xf32>
    %28 = arith.divf %24, %27 : vector<64x8xf32>
    %c0_12 = arith.constant 0 : index
    %c72 = arith.constant 72 : index
    %29 = vector.load %arg4[%c0_12, %c72] : memref<64x128xf32, #tpu.memory_space<vmem>>, vector<64x8xf32>
    tpu.vector_store %arg4[%c0_12, %c72], %28 {strides = array<i32>} : memref<64x128xf32, #tpu.memory_space<vmem>>, vector<64x8xf32>,
    %30 = vector.extract_strided_slice %5 {offsets = [0, 80], sizes = [64, 8], strides = [1, 1]} : vector<64x128xf32> to vector<64x8xf32>
    %cst_13 = arith.constant dense<0xFF800000> : vector<64xf32>
    %31 = vector.multi_reduction <maximumf>, %30, %cst_13 [1] : vector<64x8xf32> to vector<64xf32>
    %32 = vector.shape_cast %31 : vector<64xf32> to vector<64x1xf32>
    %33 = vector.broadcast %32 : vector<64x1xf32> to vector<64x8xf32>
    %34 = arith.subf %30, %33 : vector<64x8xf32>
    %35 = math.exp %34 : vector<64x8xf32>
    %cst_14 = arith.constant dense<0.000000e+00> : vector<64xf32>
    %36 = vector.multi_reduction <add>, %35, %cst_14 [1] : vector<64x8xf32> to vector<64xf32>
    %37 = vector.shape_cast %36 : vector<64xf32> to vector<64x1xf32>
    %38 = vector.broadcast %37 : vector<64x1xf32> to vector<64x8xf32>
    %39 = arith.divf %35, %38 : vector<64x8xf32>
    %c0_15 = arith.constant 0 : index
    %c80 = arith.constant 80 : index
    %40 = vector.load %arg4[%c0_15, %c80] : memref<64x128xf32, #tpu.memory_space<vmem>>, vector<64x8xf32>
    tpu.vector_store %arg4[%c0_15, %c80], %39 {strides = array<i32>} : memref<64x128xf32, #tpu.memory_space<vmem>>, vector<64x8xf32>,
    %41 = vector.extract_strided_slice %5 {offsets = [0, 88], sizes = [64, 8], strides = [1, 1]} : vector<64x128xf32> to vector<64x8xf32>
    %cst_16 = arith.constant dense<0xFF800000> : vector<64xf32>
    %42 = vector.multi_reduction <maximumf>, %41, %cst_16 [1] : vector<64x8xf32> to vector<64xf32>
    %43 = vector.shape_cast %42 : vector<64xf32> to vector<64x1xf32>
    %44 = vector.broadcast %43 : vector<64x1xf32> to vector<64x8xf32>
    %45 = arith.subf %41, %44 : vector<64x8xf32>
    %46 = math.exp %45 : vector<64x8xf32>
    %cst_17 = arith.constant dense<0.000000e+00> : vector<64xf32>
    %47 = vector.multi_reduction <add>, %46, %cst_17 [1] : vector<64x8xf32> to vector<64xf32>
    %48 = vector.shape_cast %47 : vector<64xf32> to vector<64x1xf32>
    %49 = vector.broadcast %48 : vector<64x1xf32> to vector<64x8xf32>
    %50 = arith.divf %46, %49 : vector<64x8xf32>
    %c0_18 = arith.constant 0 : index
    %c88 = arith.constant 88 : index
    %51 = vector.load %arg4[%c0_18, %c88] : memref<64x128xf32, #tpu.memory_space<vmem>>, vector<64x8xf32>
    tpu.vector_store %arg4[%c0_18, %c88], %50 {strides = array<i32>} : memref<64x128xf32, #tpu.memory_space<vmem>>, vector<64x8xf32>,
    return
  }
  func.func @transform_0(%arg0: i32) -> (i32, i32) {
    %c0_i32 = arith.constant 0 : i32
    %c0_i32_0 = arith.constant 0 : i32
    return %arg0, %c0_i32 : i32, i32
  }
  func.func @transform_1(%arg0: i32) -> (i32, i32) {
    %c0_i32 = arith.constant 0 : i32
    %c0_i32_0 = arith.constant 0 : i32
    %c0_i32_1 = arith.constant 0 : i32
    return %c0_i32, %c0_i32_0 : i32, i32
  }
  func.func @transform_2(%arg0: i32) -> (i32, i32) {
    %c0_i32 = arith.constant 0 : i32
    %c0_i32_0 = arith.constant 0 : i32
    %c0_i32_1 = arith.constant 0 : i32
    return %c0_i32, %c0_i32_0 : i32, i32
  }
  func.func @transform_3(%arg0: i32) -> (i32, i32) {
    %c0_i32 = arith.constant 0 : i32
    %c0_i32_0 = arith.constant 0 : i32
    return %arg0, %c0_i32 : i32, i32
  }
}

module attributes {stable_mosaic.version = 11 : i64} {
  func.func @_linear_kernel(%arg0: i32, %arg1: memref<320x32xf32, #tpu.memory_space<vmem>>, %arg2: memref<32x128xf32, #tpu.memory_space<vmem>>, %arg3: memref<1x128xf32, #tpu.memory_space<vmem>>, %arg4: memref<320x128xf32, #tpu.memory_space<vmem>>) attributes {dimension_semantics = [#tpu.dimension_semantics<parallel>], iteration_bounds = array<i64: 1>, scalar_prefetch = 0 : i64, scratch_operands = 0 : i64, tpu.core_type = #tpu.core_type<tc>, window_params = [{transform_indices = @transform_0, window_bounds = array<i64: 320, 32>}, {pipeline_mode = #tpu.pipeline_mode<synchronous>, transform_indices = @transform_1, window_bounds = array<i64: 32, 128>}, {pipeline_mode = #tpu.pipeline_mode<synchronous>, transform_indices = @transform_2, window_bounds = array<i64: 1, 128>}, {transform_indices = @transform_3, window_bounds = array<i64: 320, 128>}]} {
    %c0 = arith.constant 0 : index
    %c0_0 = arith.constant 0 : index
    %0 = vector.load %arg1[%c0, %c0_0] : memref<320x32xf32, #tpu.memory_space<vmem>>, vector<320x32xf32>
    %c0_1 = arith.constant 0 : index
    %c0_2 = arith.constant 0 : index
    %1 = vector.load %arg2[%c0_1, %c0_2] : memref<32x128xf32, #tpu.memory_space<vmem>>, vector<32x128xf32>
    %cst = arith.constant dense<0.000000e+00> : vector<320x128xf32>
    %2 = tpu.matmul %0, %1, %cst {dimension_numbers = #tpu.dot_dimension_numbers<[1], [0], [0], [1], [0, 0, 1, 1], [], []>} : vector<320x32xf32>, vector<32x128xf32>, vector<320x128xf32> -> vector<320x128xf32>
    %c0_3 = arith.constant 0 : index
    %c0_4 = arith.constant 0 : index
    %3 = vector.load %arg3[%c0_3, %c0_4] : memref<1x128xf32, #tpu.memory_space<vmem>>, vector<1x128xf32>
    %4 = vector.broadcast %3 : vector<1x128xf32> to vector<320x128xf32>
    %5 = arith.addf %2, %4 : vector<320x128xf32>
    %c0_5 = arith.constant 0 : index
    %c0_6 = arith.constant 0 : index
    %6 = vector.load %arg4[%c0_5, %c0_6] : memref<320x128xf32, #tpu.memory_space<vmem>>, vector<320x128xf32>
    tpu.vector_store %arg4[%c0_5, %c0_6], %5 {strides = array<i32>} : memref<320x128xf32, #tpu.memory_space<vmem>>, vector<320x128xf32>,
    return
  }
  func.func @transform_0(%arg0: i32) -> (i32, i32) {
    %c0_i32 = arith.constant 0 : i32
    %c0_i32_0 = arith.constant 0 : i32
    return %arg0, %c0_i32 : i32, i32
  }
  func.func @transform_1(%arg0: i32) -> (i32, i32) {
    %c0_i32 = arith.constant 0 : i32
    %c0_i32_0 = arith.constant 0 : i32
    %c0_i32_1 = arith.constant 0 : i32
    return %c0_i32, %c0_i32_0 : i32, i32
  }
  func.func @transform_2(%arg0: i32) -> (i32, i32) {
    %c0_i32 = arith.constant 0 : i32
    %c0_i32_0 = arith.constant 0 : i32
    %c0_i32_1 = arith.constant 0 : i32
    return %c0_i32, %c0_i32_0 : i32, i32
  }
  func.func @transform_3(%arg0: i32) -> (i32, i32) {
    %c0_i32 = arith.constant 0 : i32
    %c0_i32_0 = arith.constant 0 : i32
    return %arg0, %c0_i32 : i32, i32
  }
}

module attributes {stable_mosaic.version = 11 : i64} {
  func.func @kernel(%arg0: i32, %arg1: i32, %arg2: memref<1x16x16xi32, #tpu.memory_space<smem>>, %arg3: memref<1x80x8xf32, #tpu.memory_space<vmem>>, %arg4: memref<1x16x32xf32, #tpu.memory_space<vmem>>, %arg5: memref<1x16x8xf32, #tpu.memory_space<vmem>>, %arg6: memref<16x32x8xf32, #tpu.memory_space<vmem>>) attributes {dimension_semantics = [#tpu.dimension_semantics<parallel>, #tpu.dimension_semantics<parallel>], iteration_bounds = array<i64: 16, 1>, scalar_prefetch = 0 : i64, scratch_operands = 1 : i64, tpu.core_type = #tpu.core_type<tc>, window_params = [{transform_indices = @transform_0, window_bounds = array<i64: 1, 16, 16>}, {transform_indices = @transform_1, window_bounds = array<i64: 1, 80, 8>}, {transform_indices = @transform_2, window_bounds = array<i64: 1, 16, 32>}, {transform_indices = @transform_3, window_bounds = array<i64: 1, 16, 8>}]} {
    %c0_i32 = arith.constant 0 : i32
    %c16_i32 = arith.constant 16 : i32
    %0 = arith.addi %c0_i32, %c16_i32 : i32
    %c1_i32 = arith.constant 1 : i32
    scf.for %arg7 = %c0_i32 to %0 step %c1_i32  : i32 {
      %c1_i32_71 = arith.constant 1 : i32
      %199 = arith.muli %arg7, %c1_i32_71 : i32
      %c0_i32_72 = arith.constant 0 : i32
      %200 = arith.addi %c0_i32_72, %199 : i32
      %c0_73 = arith.constant 0 : index
      %201 = arith.index_cast %200 : i32 to index
      %c0_74 = arith.constant 0 : index
      %202 = memref.load %arg2[%c0_73, %201, %c0_74] : memref<1x16x16xi32, #tpu.memory_space<smem>>
      %c0_75 = arith.constant 0 : index
      %203 = arith.index_cast %202 : i32 to index
      %c0_76 = arith.constant 0 : index
      %204 = vector.load %arg3[%c0_75, %203, %c0_76] : memref<1x80x8xf32, #tpu.memory_space<vmem>>, vector<1x2x8xf32>
      %205 = vector.shape_cast %204 : vector<1x2x8xf32> to vector<2x8xf32>
      %206 = arith.index_cast %200 : i32 to index
      %c0_77 = arith.constant 0 : index
      %c0_78 = arith.constant 0 : index
      %207 = vector.load %arg6[%206, %c0_77, %c0_78] : memref<16x32x8xf32, #tpu.memory_space<vmem>>, vector<1x2x8xf32>
      %208 = vector.shape_cast %207 : vector<1x2x8xf32> to vector<2x8xf32>
      %209 = vector.shape_cast %205 : vector<2x8xf32> to vector<1x2x8xf32>
      tpu.vector_store %arg6[%206, %c0_77, %c0_78], %209 {strides = array<i32>} : memref<16x32x8xf32, #tpu.memory_space<vmem>>, vector<1x2x8xf32>,
      %c0_79 = arith.constant 0 : index
      %210 = arith.index_cast %200 : i32 to index
      %c1_80 = arith.constant 1 : index
      %211 = memref.load %arg2[%c0_79, %210, %c1_80] : memref<1x16x16xi32, #tpu.memory_space<smem>>
      %c0_81 = arith.constant 0 : index
      %212 = arith.index_cast %211 : i32 to index
      %c0_82 = arith.constant 0 : index
      %213 = vector.load %arg3[%c0_81, %212, %c0_82] : memref<1x80x8xf32, #tpu.memory_space<vmem>>, vector<1x2x8xf32>
      %214 = vector.shape_cast %213 : vector<1x2x8xf32> to vector<2x8xf32>
      %215 = arith.index_cast %200 : i32 to index
      %c2_83 = arith.constant 2 : index
      %c0_84 = arith.constant 0 : index
      %216 = vector.load %arg6[%215, %c2_83, %c0_84] : memref<16x32x8xf32, #tpu.memory_space<vmem>>, vector<1x2x8xf32>
      %217 = vector.shape_cast %216 : vector<1x2x8xf32> to vector<2x8xf32>
      %218 = vector.shape_cast %214 : vector<2x8xf32> to vector<1x2x8xf32>
      tpu.vector_store %arg6[%215, %c2_83, %c0_84], %218 {strides = array<i32>} : memref<16x32x8xf32, #tpu.memory_space<vmem>>, vector<1x2x8xf32>,
      %c0_85 = arith.constant 0 : index
      %219 = arith.index_cast %200 : i32 to index
      %c2_86 = arith.constant 2 : index
      %220 = memref.load %arg2[%c0_85, %219, %c2_86] : memref<1x16x16xi32, #tpu.memory_space<smem>>
      %c0_87 = arith.constant 0 : index
      %221 = arith.index_cast %220 : i32 to index
      %c0_88 = arith.constant 0 : index
      %222 = vector.load %arg3[%c0_87, %221, %c0_88] : memref<1x80x8xf32, #tpu.memory_space<vmem>>, vector<1x2x8xf32>
      %223 = vector.shape_cast %222 : vector<1x2x8xf32> to vector<2x8xf32>
      %224 = arith.index_cast %200 : i32 to index
      %c4_89 = arith.constant 4 : index
      %c0_90 = arith.constant 0 : index
      %225 = vector.load %arg6[%224, %c4_89, %c0_90] : memref<16x32x8xf32, #tpu.memory_space<vmem>>, vector<1x2x8xf32>
      %226 = vector.shape_cast %225 : vector<1x2x8xf32> to vector<2x8xf32>
      %227 = vector.shape_cast %223 : vector<2x8xf32> to vector<1x2x8xf32>
      tpu.vector_store %arg6[%224, %c4_89, %c0_90], %227 {strides = array<i32>} : memref<16x32x8xf32, #tpu.memory_space<vmem>>, vector<1x2x8xf32>,
      %c0_91 = arith.constant 0 : index
      %228 = arith.index_cast %200 : i32 to index
      %c3_92 = arith.constant 3 : index
      %229 = memref.load %arg2[%c0_91, %228, %c3_92] : memref<1x16x16xi32, #tpu.memory_space<smem>>
      %c0_93 = arith.constant 0 : index
      %230 = arith.index_cast %229 : i32 to index
      %c0_94 = arith.constant 0 : index
      %231 = vector.load %arg3[%c0_93, %230, %c0_94] : memref<1x80x8xf32, #tpu.memory_space<vmem>>, vector<1x2x8xf32>
      %232 = vector.shape_cast %231 : vector<1x2x8xf32> to vector<2x8xf32>
      %233 = arith.index_cast %200 : i32 to index
      %c6_95 = arith.constant 6 : index
      %c0_96 = arith.constant 0 : index
      %234 = vector.load %arg6[%233, %c6_95, %c0_96] : memref<16x32x8xf32, #tpu.memory_space<vmem>>, vector<1x2x8xf32>
      %235 = vector.shape_cast %234 : vector<1x2x8xf32> to vector<2x8xf32>
      %236 = vector.shape_cast %232 : vector<2x8xf32> to vector<1x2x8xf32>
      tpu.vector_store %arg6[%233, %c6_95, %c0_96], %236 {strides = array<i32>} : memref<16x32x8xf32, #tpu.memory_space<vmem>>, vector<1x2x8xf32>,
      %c0_97 = arith.constant 0 : index
      %237 = arith.index_cast %200 : i32 to index
      %c4_98 = arith.constant 4 : index
      %238 = memref.load %arg2[%c0_97, %237, %c4_98] : memref<1x16x16xi32, #tpu.memory_space<smem>>
      %c0_99 = arith.constant 0 : index
      %239 = arith.index_cast %238 : i32 to index
      %c0_100 = arith.constant 0 : index
      %240 = vector.load %arg3[%c0_99, %239, %c0_100] : memref<1x80x8xf32, #tpu.memory_space<vmem>>, vector<1x2x8xf32>
      %241 = vector.shape_cast %240 : vector<1x2x8xf32> to vector<2x8xf32>
      %242 = arith.index_cast %200 : i32 to index
      %c8_101 = arith.constant 8 : index
      %c0_102 = arith.constant 0 : index
      %243 = vector.load %arg6[%242, %c8_101, %c0_102] : memref<16x32x8xf32, #tpu.memory_space<vmem>>, vector<1x2x8xf32>
      %244 = vector.shape_cast %243 : vector<1x2x8xf32> to vector<2x8xf32>
      %245 = vector.shape_cast %241 : vector<2x8xf32> to vector<1x2x8xf32>
      tpu.vector_store %arg6[%242, %c8_101, %c0_102], %245 {strides = array<i32>} : memref<16x32x8xf32, #tpu.memory_space<vmem>>, vector<1x2x8xf32>,
      %c0_103 = arith.constant 0 : index
      %246 = arith.index_cast %200 : i32 to index
      %c5_104 = arith.constant 5 : index
      %247 = memref.load %arg2[%c0_103, %246, %c5_104] : memref<1x16x16xi32, #tpu.memory_space<smem>>
      %c0_105 = arith.constant 0 : index
      %248 = arith.index_cast %247 : i32 to index
      %c0_106 = arith.constant 0 : index
      %249 = vector.load %arg3[%c0_105, %248, %c0_106] : memref<1x80x8xf32, #tpu.memory_space<vmem>>, vector<1x2x8xf32>
      %250 = vector.shape_cast %249 : vector<1x2x8xf32> to vector<2x8xf32>
      %251 = arith.index_cast %200 : i32 to index
      %c10_107 = arith.constant 10 : index
      %c0_108 = arith.constant 0 : index
      %252 = vector.load %arg6[%251, %c10_107, %c0_108] : memref<16x32x8xf32, #tpu.memory_space<vmem>>, vector<1x2x8xf32>
      %253 = vector.shape_cast %252 : vector<1x2x8xf32> to vector<2x8xf32>
      %254 = vector.shape_cast %250 : vector<2x8xf32> to vector<1x2x8xf32>
      tpu.vector_store %arg6[%251, %c10_107, %c0_108], %254 {strides = array<i32>} : memref<16x32x8xf32, #tpu.memory_space<vmem>>, vector<1x2x8xf32>,
      %c0_109 = arith.constant 0 : index
      %255 = arith.index_cast %200 : i32 to index
      %c6_110 = arith.constant 6 : index
      %256 = memref.load %arg2[%c0_109, %255, %c6_110] : memref<1x16x16xi32, #tpu.memory_space<smem>>
      %c0_111 = arith.constant 0 : index
      %257 = arith.index_cast %256 : i32 to index
      %c0_112 = arith.constant 0 : index
      %258 = vector.load %arg3[%c0_111, %257, %c0_112] : memref<1x80x8xf32, #tpu.memory_space<vmem>>, vector<1x2x8xf32>
      %259 = vector.shape_cast %258 : vector<1x2x8xf32> to vector<2x8xf32>
      %260 = arith.index_cast %200 : i32 to index
      %c12_113 = arith.constant 12 : index
      %c0_114 = arith.constant 0 : index
      %261 = vector.load %arg6[%260, %c12_113, %c0_114] : memref<16x32x8xf32, #tpu.memory_space<vmem>>, vector<1x2x8xf32>
      %262 = vector.shape_cast %261 : vector<1x2x8xf32> to vector<2x8xf32>
      %263 = vector.shape_cast %259 : vector<2x8xf32> to vector<1x2x8xf32>
      tpu.vector_store %arg6[%260, %c12_113, %c0_114], %263 {strides = array<i32>} : memref<16x32x8xf32, #tpu.memory_space<vmem>>, vector<1x2x8xf32>,
      %c0_115 = arith.constant 0 : index
      %264 = arith.index_cast %200 : i32 to index
      %c7_116 = arith.constant 7 : index
      %265 = memref.load %arg2[%c0_115, %264, %c7_116] : memref<1x16x16xi32, #tpu.memory_space<smem>>
      %c0_117 = arith.constant 0 : index
      %266 = arith.index_cast %265 : i32 to index
      %c0_118 = arith.constant 0 : index
      %267 = vector.load %arg3[%c0_117, %266, %c0_118] : memref<1x80x8xf32, #tpu.memory_space<vmem>>, vector<1x2x8xf32>
      %268 = vector.shape_cast %267 : vector<1x2x8xf32> to vector<2x8xf32>
      %269 = arith.index_cast %200 : i32 to index
      %c14_119 = arith.constant 14 : index
      %c0_120 = arith.constant 0 : index
      %270 = vector.load %arg6[%269, %c14_119, %c0_120] : memref<16x32x8xf32, #tpu.memory_space<vmem>>, vector<1x2x8xf32>
      %271 = vector.shape_cast %270 : vector<1x2x8xf32> to vector<2x8xf32>
      %272 = vector.shape_cast %268 : vector<2x8xf32> to vector<1x2x8xf32>
      tpu.vector_store %arg6[%269, %c14_119, %c0_120], %272 {strides = array<i32>} : memref<16x32x8xf32, #tpu.memory_space<vmem>>, vector<1x2x8xf32>,
      %c0_121 = arith.constant 0 : index
      %273 = arith.index_cast %200 : i32 to index
      %c8_122 = arith.constant 8 : index
      %274 = memref.load %arg2[%c0_121, %273, %c8_122] : memref<1x16x16xi32, #tpu.memory_space<smem>>
      %c0_123 = arith.constant 0 : index
      %275 = arith.index_cast %274 : i32 to index
      %c0_124 = arith.constant 0 : index
      %276 = vector.load %arg3[%c0_123, %275, %c0_124] : memref<1x80x8xf32, #tpu.memory_space<vmem>>, vector<1x2x8xf32>
      %277 = vector.shape_cast %276 : vector<1x2x8xf32> to vector<2x8xf32>
      %278 = arith.index_cast %200 : i32 to index
      %c16_125 = arith.constant 16 : index
      %c0_126 = arith.constant 0 : index
      %279 = vector.load %arg6[%278, %c16_125, %c0_126] : memref<16x32x8xf32, #tpu.memory_space<vmem>>, vector<1x2x8xf32>
      %280 = vector.shape_cast %279 : vector<1x2x8xf32> to vector<2x8xf32>
      %281 = vector.shape_cast %277 : vector<2x8xf32> to vector<1x2x8xf32>
      tpu.vector_store %arg6[%278, %c16_125, %c0_126], %281 {strides = array<i32>} : memref<16x32x8xf32, #tpu.memory_space<vmem>>, vector<1x2x8xf32>,
      %c0_127 = arith.constant 0 : index
      %282 = arith.index_cast %200 : i32 to index
      %c9_128 = arith.constant 9 : index
      %283 = memref.load %arg2[%c0_127, %282, %c9_128] : memref<1x16x16xi32, #tpu.memory_space<smem>>
      %c0_129 = arith.constant 0 : index
      %284 = arith.index_cast %283 : i32 to index
      %c0_130 = arith.constant 0 : index
      %285 = vector.load %arg3[%c0_129, %284, %c0_130] : memref<1x80x8xf32, #tpu.memory_space<vmem>>, vector<1x2x8xf32>
      %286 = vector.shape_cast %285 : vector<1x2x8xf32> to vector<2x8xf32>
      %287 = arith.index_cast %200 : i32 to index
      %c18_131 = arith.constant 18 : index
      %c0_132 = arith.constant 0 : index
      %288 = vector.load %arg6[%287, %c18_131, %c0_132] : memref<16x32x8xf32, #tpu.memory_space<vmem>>, vector<1x2x8xf32>
      %289 = vector.shape_cast %288 : vector<1x2x8xf32> to vector<2x8xf32>
      %290 = vector.shape_cast %286 : vector<2x8xf32> to vector<1x2x8xf32>
      tpu.vector_store %arg6[%287, %c18_131, %c0_132], %290 {strides = array<i32>} : memref<16x32x8xf32, #tpu.memory_space<vmem>>, vector<1x2x8xf32>,
      %c0_133 = arith.constant 0 : index
      %291 = arith.index_cast %200 : i32 to index
      %c10_134 = arith.constant 10 : index
      %292 = memref.load %arg2[%c0_133, %291, %c10_134] : memref<1x16x16xi32, #tpu.memory_space<smem>>
      %c0_135 = arith.constant 0 : index
      %293 = arith.index_cast %292 : i32 to index
      %c0_136 = arith.constant 0 : index
      %294 = vector.load %arg3[%c0_135, %293, %c0_136] : memref<1x80x8xf32, #tpu.memory_space<vmem>>, vector<1x2x8xf32>
      %295 = vector.shape_cast %294 : vector<1x2x8xf32> to vector<2x8xf32>
      %296 = arith.index_cast %200 : i32 to index
      %c20_137 = arith.constant 20 : index
      %c0_138 = arith.constant 0 : index
      %297 = vector.load %arg6[%296, %c20_137, %c0_138] : memref<16x32x8xf32, #tpu.memory_space<vmem>>, vector<1x2x8xf32>
      %298 = vector.shape_cast %297 : vector<1x2x8xf32> to vector<2x8xf32>
      %299 = vector.shape_cast %295 : vector<2x8xf32> to vector<1x2x8xf32>
      tpu.vector_store %arg6[%296, %c20_137, %c0_138], %299 {strides = array<i32>} : memref<16x32x8xf32, #tpu.memory_space<vmem>>, vector<1x2x8xf32>,
      %c0_139 = arith.constant 0 : index
      %300 = arith.index_cast %200 : i32 to index
      %c11_140 = arith.constant 11 : index
      %301 = memref.load %arg2[%c0_139, %300, %c11_140] : memref<1x16x16xi32, #tpu.memory_space<smem>>
      %c0_141 = arith.constant 0 : index
      %302 = arith.index_cast %301 : i32 to index
      %c0_142 = arith.constant 0 : index
      %303 = vector.load %arg3[%c0_141, %302, %c0_142] : memref<1x80x8xf32, #tpu.memory_space<vmem>>, vector<1x2x8xf32>
      %304 = vector.shape_cast %303 : vector<1x2x8xf32> to vector<2x8xf32>
      %305 = arith.index_cast %200 : i32 to index
      %c22_143 = arith.constant 22 : index
      %c0_144 = arith.constant 0 : index
      %306 = vector.load %arg6[%305, %c22_143, %c0_144] : memref<16x32x8xf32, #tpu.memory_space<vmem>>, vector<1x2x8xf32>
      %307 = vector.shape_cast %306 : vector<1x2x8xf32> to vector<2x8xf32>
      %308 = vector.shape_cast %304 : vector<2x8xf32> to vector<1x2x8xf32>
      tpu.vector_store %arg6[%305, %c22_143, %c0_144], %308 {strides = array<i32>} : memref<16x32x8xf32, #tpu.memory_space<vmem>>, vector<1x2x8xf32>,
      %c0_145 = arith.constant 0 : index
      %309 = arith.index_cast %200 : i32 to index
      %c12_146 = arith.constant 12 : index
      %310 = memref.load %arg2[%c0_145, %309, %c12_146] : memref<1x16x16xi32, #tpu.memory_space<smem>>
      %c0_147 = arith.constant 0 : index
      %311 = arith.index_cast %310 : i32 to index
      %c0_148 = arith.constant 0 : index
      %312 = vector.load %arg3[%c0_147, %311, %c0_148] : memref<1x80x8xf32, #tpu.memory_space<vmem>>, vector<1x2x8xf32>
      %313 = vector.shape_cast %312 : vector<1x2x8xf32> to vector<2x8xf32>
      %314 = arith.index_cast %200 : i32 to index
      %c24_149 = arith.constant 24 : index
      %c0_150 = arith.constant 0 : index
      %315 = vector.load %arg6[%314, %c24_149, %c0_150] : memref<16x32x8xf32, #tpu.memory_space<vmem>>, vector<1x2x8xf32>
      %316 = vector.shape_cast %315 : vector<1x2x8xf32> to vector<2x8xf32>
      %317 = vector.shape_cast %313 : vector<2x8xf32> to vector<1x2x8xf32>
      tpu.vector_store %arg6[%314, %c24_149, %c0_150], %317 {strides = array<i32>} : memref<16x32x8xf32, #tpu.memory_space<vmem>>, vector<1x2x8xf32>,
      %c0_151 = arith.constant 0 : index
      %318 = arith.index_cast %200 : i32 to index
      %c13_152 = arith.constant 13 : index
      %319 = memref.load %arg2[%c0_151, %318, %c13_152] : memref<1x16x16xi32, #tpu.memory_space<smem>>
      %c0_153 = arith.constant 0 : index
      %320 = arith.index_cast %319 : i32 to index
      %c0_154 = arith.constant 0 : index
      %321 = vector.load %arg3[%c0_153, %320, %c0_154] : memref<1x80x8xf32, #tpu.memory_space<vmem>>, vector<1x2x8xf32>
      %322 = vector.shape_cast %321 : vector<1x2x8xf32> to vector<2x8xf32>
      %323 = arith.index_cast %200 : i32 to index
      %c26_155 = arith.constant 26 : index
      %c0_156 = arith.constant 0 : index
      %324 = vector.load %arg6[%323, %c26_155, %c0_156] : memref<16x32x8xf32, #tpu.memory_space<vmem>>, vector<1x2x8xf32>
      %325 = vector.shape_cast %324 : vector<1x2x8xf32> to vector<2x8xf32>
      %326 = vector.shape_cast %322 : vector<2x8xf32> to vector<1x2x8xf32>
      tpu.vector_store %arg6[%323, %c26_155, %c0_156], %326 {strides = array<i32>} : memref<16x32x8xf32, #tpu.memory_space<vmem>>, vector<1x2x8xf32>,
      %c0_157 = arith.constant 0 : index
      %327 = arith.index_cast %200 : i32 to index
      %c14_158 = arith.constant 14 : index
      %328 = memref.load %arg2[%c0_157, %327, %c14_158] : memref<1x16x16xi32, #tpu.memory_space<smem>>
      %c0_159 = arith.constant 0 : index
      %329 = arith.index_cast %328 : i32 to index
      %c0_160 = arith.constant 0 : index
      %330 = vector.load %arg3[%c0_159, %329, %c0_160] : memref<1x80x8xf32, #tpu.memory_space<vmem>>, vector<1x2x8xf32>
      %331 = vector.shape_cast %330 : vector<1x2x8xf32> to vector<2x8xf32>
      %332 = arith.index_cast %200 : i32 to index
      %c28_161 = arith.constant 28 : index
      %c0_162 = arith.constant 0 : index
      %333 = vector.load %arg6[%332, %c28_161, %c0_162] : memref<16x32x8xf32, #tpu.memory_space<vmem>>, vector<1x2x8xf32>
      %334 = vector.shape_cast %333 : vector<1x2x8xf32> to vector<2x8xf32>
      %335 = vector.shape_cast %331 : vector<2x8xf32> to vector<1x2x8xf32>
      tpu.vector_store %arg6[%332, %c28_161, %c0_162], %335 {strides = array<i32>} : memref<16x32x8xf32, #tpu.memory_space<vmem>>, vector<1x2x8xf32>,
      %c0_163 = arith.constant 0 : index
      %336 = arith.index_cast %200 : i32 to index
      %c15_164 = arith.constant 15 : index
      %337 = memref.load %arg2[%c0_163, %336, %c15_164] : memref<1x16x16xi32, #tpu.memory_space<smem>>
      %c0_165 = arith.constant 0 : index
      %338 = arith.index_cast %337 : i32 to index
      %c0_166 = arith.constant 0 : index
      %339 = vector.load %arg3[%c0_165, %338, %c0_166] : memref<1x80x8xf32, #tpu.memory_space<vmem>>, vector<1x2x8xf32>
      %340 = vector.shape_cast %339 : vector<1x2x8xf32> to vector<2x8xf32>
      %341 = arith.index_cast %200 : i32 to index
      %c30_167 = arith.constant 30 : index
      %c0_168 = arith.constant 0 : index
      %342 = vector.load %arg6[%341, %c30_167, %c0_168] : memref<16x32x8xf32, #tpu.memory_space<vmem>>, vector<1x2x8xf32>
      %343 = vector.shape_cast %342 : vector<1x2x8xf32> to vector<2x8xf32>
      %344 = vector.shape_cast %340 : vector<2x8xf32> to vector<1x2x8xf32>
      tpu.vector_store %arg6[%341, %c30_167, %c0_168], %344 {strides = array<i32>} : memref<16x32x8xf32, #tpu.memory_space<vmem>>, vector<1x2x8xf32>,
    }
    %c16_i32_0 = arith.constant 16 : i32
    %c0 = arith.constant 0 : index
    %c0_1 = arith.constant 0 : index
    %c0_2 = arith.constant 0 : index
    %1 = vector.load %arg4[%c0, %c0_1, %c0_2] : memref<1x16x32xf32, #tpu.memory_space<vmem>>, vector<1x16x32xf32>
    %2 = vector.shape_cast %1 : vector<1x16x32xf32> to vector<16x32xf32>
    %cst = arith.constant 0.000000e+00 : f32
    %3 = vector.broadcast %cst : f32 to vector<16x8xf32>
    %c0_3 = arith.constant 0 : index
    %c0_4 = arith.constant 0 : index
    %c0_5 = arith.constant 0 : index
    %4 = vector.load %arg6[%c0_3, %c0_4, %c0_5] : memref<16x32x8xf32, #tpu.memory_space<vmem>>, vector<16x1x8xf32>
    %5 = vector.shape_cast %4 : vector<16x1x8xf32> to vector<16x8xf32>
    %6 = vector.extract_strided_slice %2 {offsets = [0, 0], sizes = [16, 1], strides = [1, 1]} : vector<16x32xf32> to vector<16x1xf32>
    %7 = vector.broadcast %6 : vector<16x1xf32> to vector<16x8xf32>
    %8 = arith.mulf %5, %7 : vector<16x8xf32>
    %9 = arith.addf %3, %8 : vector<16x8xf32>
    %c0_6 = arith.constant 0 : index
    %c1 = arith.constant 1 : index
    %c0_7 = arith.constant 0 : index
    %10 = vector.load %arg6[%c0_6, %c1, %c0_7] : memref<16x32x8xf32, #tpu.memory_space<vmem>>, vector<16x1x8xf32>
    %11 = vector.shape_cast %10 : vector<16x1x8xf32> to vector<16x8xf32>
    %12 = vector.extract_strided_slice %2 {offsets = [0, 1], sizes = [16, 1], strides = [1, 1]} : vector<16x32xf32> to vector<16x1xf32>
    %13 = vector.broadcast %12 : vector<16x1xf32> to vector<16x8xf32>
    %14 = arith.mulf %11, %13 : vector<16x8xf32>
    %15 = arith.addf %9, %14 : vector<16x8xf32>
    %c0_8 = arith.constant 0 : index
    %c2 = arith.constant 2 : index
    %c0_9 = arith.constant 0 : index
    %16 = vector.load %arg6[%c0_8, %c2, %c0_9] : memref<16x32x8xf32, #tpu.memory_space<vmem>>, vector<16x1x8xf32>
    %17 = vector.shape_cast %16 : vector<16x1x8xf32> to vector<16x8xf32>
    %18 = vector.extract_strided_slice %2 {offsets = [0, 2], sizes = [16, 1], strides = [1, 1]} : vector<16x32xf32> to vector<16x1xf32>
    %19 = vector.broadcast %18 : vector<16x1xf32> to vector<16x8xf32>
    %20 = arith.mulf %17, %19 : vector<16x8xf32>
    %21 = arith.addf %15, %20 : vector<16x8xf32>
    %c0_10 = arith.constant 0 : index
    %c3 = arith.constant 3 : index
    %c0_11 = arith.constant 0 : index
    %22 = vector.load %arg6[%c0_10, %c3, %c0_11] : memref<16x32x8xf32, #tpu.memory_space<vmem>>, vector<16x1x8xf32>
    %23 = vector.shape_cast %22 : vector<16x1x8xf32> to vector<16x8xf32>
    %24 = vector.extract_strided_slice %2 {offsets = [0, 3], sizes = [16, 1], strides = [1, 1]} : vector<16x32xf32> to vector<16x1xf32>
    %25 = vector.broadcast %24 : vector<16x1xf32> to vector<16x8xf32>
    %26 = arith.mulf %23, %25 : vector<16x8xf32>
    %27 = arith.addf %21, %26 : vector<16x8xf32>
    %c0_12 = arith.constant 0 : index
    %c4 = arith.constant 4 : index
    %c0_13 = arith.constant 0 : index
    %28 = vector.load %arg6[%c0_12, %c4, %c0_13] : memref<16x32x8xf32, #tpu.memory_space<vmem>>, vector<16x1x8xf32>
    %29 = vector.shape_cast %28 : vector<16x1x8xf32> to vector<16x8xf32>
    %30 = vector.extract_strided_slice %2 {offsets = [0, 4], sizes = [16, 1], strides = [1, 1]} : vector<16x32xf32> to vector<16x1xf32>
    %31 = vector.broadcast %30 : vector<16x1xf32> to vector<16x8xf32>
    %32 = arith.mulf %29, %31 : vector<16x8xf32>
    %33 = arith.addf %27, %32 : vector<16x8xf32>
    %c0_14 = arith.constant 0 : index
    %c5 = arith.constant 5 : index
    %c0_15 = arith.constant 0 : index
    %34 = vector.load %arg6[%c0_14, %c5, %c0_15] : memref<16x32x8xf32, #tpu.memory_space<vmem>>, vector<16x1x8xf32>
    %35 = vector.shape_cast %34 : vector<16x1x8xf32> to vector<16x8xf32>
    %36 = vector.extract_strided_slice %2 {offsets = [0, 5], sizes = [16, 1], strides = [1, 1]} : vector<16x32xf32> to vector<16x1xf32>
    %37 = vector.broadcast %36 : vector<16x1xf32> to vector<16x8xf32>
    %38 = arith.mulf %35, %37 : vector<16x8xf32>
    %39 = arith.addf %33, %38 : vector<16x8xf32>
    %c0_16 = arith.constant 0 : index
    %c6 = arith.constant 6 : index
    %c0_17 = arith.constant 0 : index
    %40 = vector.load %arg6[%c0_16, %c6, %c0_17] : memref<16x32x8xf32, #tpu.memory_space<vmem>>, vector<16x1x8xf32>
    %41 = vector.shape_cast %40 : vector<16x1x8xf32> to vector<16x8xf32>
    %42 = vector.extract_strided_slice %2 {offsets = [0, 6], sizes = [16, 1], strides = [1, 1]} : vector<16x32xf32> to vector<16x1xf32>
    %43 = vector.broadcast %42 : vector<16x1xf32> to vector<16x8xf32>
    %44 = arith.mulf %41, %43 : vector<16x8xf32>
    %45 = arith.addf %39, %44 : vector<16x8xf32>
    %c0_18 = arith.constant 0 : index
    %c7 = arith.constant 7 : index
    %c0_19 = arith.constant 0 : index
    %46 = vector.load %arg6[%c0_18, %c7, %c0_19] : memref<16x32x8xf32, #tpu.memory_space<vmem>>, vector<16x1x8xf32>
    %47 = vector.shape_cast %46 : vector<16x1x8xf32> to vector<16x8xf32>
    %48 = vector.extract_strided_slice %2 {offsets = [0, 7], sizes = [16, 1], strides = [1, 1]} : vector<16x32xf32> to vector<16x1xf32>
    %49 = vector.broadcast %48 : vector<16x1xf32> to vector<16x8xf32>
    %50 = arith.mulf %47, %49 : vector<16x8xf32>
    %51 = arith.addf %45, %50 : vector<16x8xf32>
    %c0_20 = arith.constant 0 : index
    %c8 = arith.constant 8 : index
    %c0_21 = arith.constant 0 : index
    %52 = vector.load %arg6[%c0_20, %c8, %c0_21] : memref<16x32x8xf32, #tpu.memory_space<vmem>>, vector<16x1x8xf32>
    %53 = vector.shape_cast %52 : vector<16x1x8xf32> to vector<16x8xf32>
    %54 = vector.extract_strided_slice %2 {offsets = [0, 8], sizes = [16, 1], strides = [1, 1]} : vector<16x32xf32> to vector<16x1xf32>
    %55 = vector.broadcast %54 : vector<16x1xf32> to vector<16x8xf32>
    %56 = arith.mulf %53, %55 : vector<16x8xf32>
    %57 = arith.addf %51, %56 : vector<16x8xf32>
    %c0_22 = arith.constant 0 : index
    %c9 = arith.constant 9 : index
    %c0_23 = arith.constant 0 : index
    %58 = vector.load %arg6[%c0_22, %c9, %c0_23] : memref<16x32x8xf32, #tpu.memory_space<vmem>>, vector<16x1x8xf32>
    %59 = vector.shape_cast %58 : vector<16x1x8xf32> to vector<16x8xf32>
    %60 = vector.extract_strided_slice %2 {offsets = [0, 9], sizes = [16, 1], strides = [1, 1]} : vector<16x32xf32> to vector<16x1xf32>
    %61 = vector.broadcast %60 : vector<16x1xf32> to vector<16x8xf32>
    %62 = arith.mulf %59, %61 : vector<16x8xf32>
    %63 = arith.addf %57, %62 : vector<16x8xf32>
    %c0_24 = arith.constant 0 : index
    %c10 = arith.constant 10 : index
    %c0_25 = arith.constant 0 : index
    %64 = vector.load %arg6[%c0_24, %c10, %c0_25] : memref<16x32x8xf32, #tpu.memory_space<vmem>>, vector<16x1x8xf32>
    %65 = vector.shape_cast %64 : vector<16x1x8xf32> to vector<16x8xf32>
    %66 = vector.extract_strided_slice %2 {offsets = [0, 10], sizes = [16, 1], strides = [1, 1]} : vector<16x32xf32> to vector<16x1xf32>
    %67 = vector.broadcast %66 : vector<16x1xf32> to vector<16x8xf32>
    %68 = arith.mulf %65, %67 : vector<16x8xf32>
    %69 = arith.addf %63, %68 : vector<16x8xf32>
    %c0_26 = arith.constant 0 : index
    %c11 = arith.constant 11 : index
    %c0_27 = arith.constant 0 : index
    %70 = vector.load %arg6[%c0_26, %c11, %c0_27] : memref<16x32x8xf32, #tpu.memory_space<vmem>>, vector<16x1x8xf32>
    %71 = vector.shape_cast %70 : vector<16x1x8xf32> to vector<16x8xf32>
    %72 = vector.extract_strided_slice %2 {offsets = [0, 11], sizes = [16, 1], strides = [1, 1]} : vector<16x32xf32> to vector<16x1xf32>
    %73 = vector.broadcast %72 : vector<16x1xf32> to vector<16x8xf32>
    %74 = arith.mulf %71, %73 : vector<16x8xf32>
    %75 = arith.addf %69, %74 : vector<16x8xf32>
    %c0_28 = arith.constant 0 : index
    %c12 = arith.constant 12 : index
    %c0_29 = arith.constant 0 : index
    %76 = vector.load %arg6[%c0_28, %c12, %c0_29] : memref<16x32x8xf32, #tpu.memory_space<vmem>>, vector<16x1x8xf32>
    %77 = vector.shape_cast %76 : vector<16x1x8xf32> to vector<16x8xf32>
    %78 = vector.extract_strided_slice %2 {offsets = [0, 12], sizes = [16, 1], strides = [1, 1]} : vector<16x32xf32> to vector<16x1xf32>
    %79 = vector.broadcast %78 : vector<16x1xf32> to vector<16x8xf32>
    %80 = arith.mulf %77, %79 : vector<16x8xf32>
    %81 = arith.addf %75, %80 : vector<16x8xf32>
    %c0_30 = arith.constant 0 : index
    %c13 = arith.constant 13 : index
    %c0_31 = arith.constant 0 : index
    %82 = vector.load %arg6[%c0_30, %c13, %c0_31] : memref<16x32x8xf32, #tpu.memory_space<vmem>>, vector<16x1x8xf32>
    %83 = vector.shape_cast %82 : vector<16x1x8xf32> to vector<16x8xf32>
    %84 = vector.extract_strided_slice %2 {offsets = [0, 13], sizes = [16, 1], strides = [1, 1]} : vector<16x32xf32> to vector<16x1xf32>
    %85 = vector.broadcast %84 : vector<16x1xf32> to vector<16x8xf32>
    %86 = arith.mulf %83, %85 : vector<16x8xf32>
    %87 = arith.addf %81, %86 : vector<16x8xf32>
    %c0_32 = arith.constant 0 : index
    %c14 = arith.constant 14 : index
    %c0_33 = arith.constant 0 : index
    %88 = vector.load %arg6[%c0_32, %c14, %c0_33] : memref<16x32x8xf32, #tpu.memory_space<vmem>>, vector<16x1x8xf32>
    %89 = vector.shape_cast %88 : vector<16x1x8xf32> to vector<16x8xf32>
    %90 = vector.extract_strided_slice %2 {offsets = [0, 14], sizes = [16, 1], strides = [1, 1]} : vector<16x32xf32> to vector<16x1xf32>
    %91 = vector.broadcast %90 : vector<16x1xf32> to vector<16x8xf32>
    %92 = arith.mulf %89, %91 : vector<16x8xf32>
    %93 = arith.addf %87, %92 : vector<16x8xf32>
    %c0_34 = arith.constant 0 : index
    %c15 = arith.constant 15 : index
    %c0_35 = arith.constant 0 : index
    %94 = vector.load %arg6[%c0_34, %c15, %c0_35] : memref<16x32x8xf32, #tpu.memory_space<vmem>>, vector<16x1x8xf32>
    %95 = vector.shape_cast %94 : vector<16x1x8xf32> to vector<16x8xf32>
    %96 = vector.extract_strided_slice %2 {offsets = [0, 15], sizes = [16, 1], strides = [1, 1]} : vector<16x32xf32> to vector<16x1xf32>
    %97 = vector.broadcast %96 : vector<16x1xf32> to vector<16x8xf32>
    %98 = arith.mulf %95, %97 : vector<16x8xf32>
    %99 = arith.addf %93, %98 : vector<16x8xf32>
    %c0_36 = arith.constant 0 : index
    %c16 = arith.constant 16 : index
    %c0_37 = arith.constant 0 : index
    %100 = vector.load %arg6[%c0_36, %c16, %c0_37] : memref<16x32x8xf32, #tpu.memory_space<vmem>>, vector<16x1x8xf32>
    %101 = vector.shape_cast %100 : vector<16x1x8xf32> to vector<16x8xf32>
    %102 = vector.extract_strided_slice %2 {offsets = [0, 16], sizes = [16, 1], strides = [1, 1]} : vector<16x32xf32> to vector<16x1xf32>
    %103 = vector.broadcast %102 : vector<16x1xf32> to vector<16x8xf32>
    %104 = arith.mulf %101, %103 : vector<16x8xf32>
    %105 = arith.addf %99, %104 : vector<16x8xf32>
    %c0_38 = arith.constant 0 : index
    %c17 = arith.constant 17 : index
    %c0_39 = arith.constant 0 : index
    %106 = vector.load %arg6[%c0_38, %c17, %c0_39] : memref<16x32x8xf32, #tpu.memory_space<vmem>>, vector<16x1x8xf32>
    %107 = vector.shape_cast %106 : vector<16x1x8xf32> to vector<16x8xf32>
    %108 = vector.extract_strided_slice %2 {offsets = [0, 17], sizes = [16, 1], strides = [1, 1]} : vector<16x32xf32> to vector<16x1xf32>
    %109 = vector.broadcast %108 : vector<16x1xf32> to vector<16x8xf32>
    %110 = arith.mulf %107, %109 : vector<16x8xf32>
    %111 = arith.addf %105, %110 : vector<16x8xf32>
    %c0_40 = arith.constant 0 : index
    %c18 = arith.constant 18 : index
    %c0_41 = arith.constant 0 : index
    %112 = vector.load %arg6[%c0_40, %c18, %c0_41] : memref<16x32x8xf32, #tpu.memory_space<vmem>>, vector<16x1x8xf32>
    %113 = vector.shape_cast %112 : vector<16x1x8xf32> to vector<16x8xf32>
    %114 = vector.extract_strided_slice %2 {offsets = [0, 18], sizes = [16, 1], strides = [1, 1]} : vector<16x32xf32> to vector<16x1xf32>
    %115 = vector.broadcast %114 : vector<16x1xf32> to vector<16x8xf32>
    %116 = arith.mulf %113, %115 : vector<16x8xf32>
    %117 = arith.addf %111, %116 : vector<16x8xf32>
    %c0_42 = arith.constant 0 : index
    %c19 = arith.constant 19 : index
    %c0_43 = arith.constant 0 : index
    %118 = vector.load %arg6[%c0_42, %c19, %c0_43] : memref<16x32x8xf32, #tpu.memory_space<vmem>>, vector<16x1x8xf32>
    %119 = vector.shape_cast %118 : vector<16x1x8xf32> to vector<16x8xf32>
    %120 = vector.extract_strided_slice %2 {offsets = [0, 19], sizes = [16, 1], strides = [1, 1]} : vector<16x32xf32> to vector<16x1xf32>
    %121 = vector.broadcast %120 : vector<16x1xf32> to vector<16x8xf32>
    %122 = arith.mulf %119, %121 : vector<16x8xf32>
    %123 = arith.addf %117, %122 : vector<16x8xf32>
    %c0_44 = arith.constant 0 : index
    %c20 = arith.constant 20 : index
    %c0_45 = arith.constant 0 : index
    %124 = vector.load %arg6[%c0_44, %c20, %c0_45] : memref<16x32x8xf32, #tpu.memory_space<vmem>>, vector<16x1x8xf32>
    %125 = vector.shape_cast %124 : vector<16x1x8xf32> to vector<16x8xf32>
    %126 = vector.extract_strided_slice %2 {offsets = [0, 20], sizes = [16, 1], strides = [1, 1]} : vector<16x32xf32> to vector<16x1xf32>
    %127 = vector.broadcast %126 : vector<16x1xf32> to vector<16x8xf32>
    %128 = arith.mulf %125, %127 : vector<16x8xf32>
    %129 = arith.addf %123, %128 : vector<16x8xf32>
    %c0_46 = arith.constant 0 : index
    %c21 = arith.constant 21 : index
    %c0_47 = arith.constant 0 : index
    %130 = vector.load %arg6[%c0_46, %c21, %c0_47] : memref<16x32x8xf32, #tpu.memory_space<vmem>>, vector<16x1x8xf32>
    %131 = vector.shape_cast %130 : vector<16x1x8xf32> to vector<16x8xf32>
    %132 = vector.extract_strided_slice %2 {offsets = [0, 21], sizes = [16, 1], strides = [1, 1]} : vector<16x32xf32> to vector<16x1xf32>
    %133 = vector.broadcast %132 : vector<16x1xf32> to vector<16x8xf32>
    %134 = arith.mulf %131, %133 : vector<16x8xf32>
    %135 = arith.addf %129, %134 : vector<16x8xf32>
    %c0_48 = arith.constant 0 : index
    %c22 = arith.constant 22 : index
    %c0_49 = arith.constant 0 : index
    %136 = vector.load %arg6[%c0_48, %c22, %c0_49] : memref<16x32x8xf32, #tpu.memory_space<vmem>>, vector<16x1x8xf32>
    %137 = vector.shape_cast %136 : vector<16x1x8xf32> to vector<16x8xf32>
    %138 = vector.extract_strided_slice %2 {offsets = [0, 22], sizes = [16, 1], strides = [1, 1]} : vector<16x32xf32> to vector<16x1xf32>
    %139 = vector.broadcast %138 : vector<16x1xf32> to vector<16x8xf32>
    %140 = arith.mulf %137, %139 : vector<16x8xf32>
    %141 = arith.addf %135, %140 : vector<16x8xf32>
    %c0_50 = arith.constant 0 : index
    %c23 = arith.constant 23 : index
    %c0_51 = arith.constant 0 : index
    %142 = vector.load %arg6[%c0_50, %c23, %c0_51] : memref<16x32x8xf32, #tpu.memory_space<vmem>>, vector<16x1x8xf32>
    %143 = vector.shape_cast %142 : vector<16x1x8xf32> to vector<16x8xf32>
    %144 = vector.extract_strided_slice %2 {offsets = [0, 23], sizes = [16, 1], strides = [1, 1]} : vector<16x32xf32> to vector<16x1xf32>
    %145 = vector.broadcast %144 : vector<16x1xf32> to vector<16x8xf32>
    %146 = arith.mulf %143, %145 : vector<16x8xf32>
    %147 = arith.addf %141, %146 : vector<16x8xf32>
    %c0_52 = arith.constant 0 : index
    %c24 = arith.constant 24 : index
    %c0_53 = arith.constant 0 : index
    %148 = vector.load %arg6[%c0_52, %c24, %c0_53] : memref<16x32x8xf32, #tpu.memory_space<vmem>>, vector<16x1x8xf32>
    %149 = vector.shape_cast %148 : vector<16x1x8xf32> to vector<16x8xf32>
    %150 = vector.extract_strided_slice %2 {offsets = [0, 24], sizes = [16, 1], strides = [1, 1]} : vector<16x32xf32> to vector<16x1xf32>
    %151 = vector.broadcast %150 : vector<16x1xf32> to vector<16x8xf32>
    %152 = arith.mulf %149, %151 : vector<16x8xf32>
    %153 = arith.addf %147, %152 : vector<16x8xf32>
    %c0_54 = arith.constant 0 : index
    %c25 = arith.constant 25 : index
    %c0_55 = arith.constant 0 : index
    %154 = vector.load %arg6[%c0_54, %c25, %c0_55] : memref<16x32x8xf32, #tpu.memory_space<vmem>>, vector<16x1x8xf32>
    %155 = vector.shape_cast %154 : vector<16x1x8xf32> to vector<16x8xf32>
    %156 = vector.extract_strided_slice %2 {offsets = [0, 25], sizes = [16, 1], strides = [1, 1]} : vector<16x32xf32> to vector<16x1xf32>
    %157 = vector.broadcast %156 : vector<16x1xf32> to vector<16x8xf32>
    %158 = arith.mulf %155, %157 : vector<16x8xf32>
    %159 = arith.addf %153, %158 : vector<16x8xf32>
    %c0_56 = arith.constant 0 : index
    %c26 = arith.constant 26 : index
    %c0_57 = arith.constant 0 : index
    %160 = vector.load %arg6[%c0_56, %c26, %c0_57] : memref<16x32x8xf32, #tpu.memory_space<vmem>>, vector<16x1x8xf32>
    %161 = vector.shape_cast %160 : vector<16x1x8xf32> to vector<16x8xf32>
    %162 = vector.extract_strided_slice %2 {offsets = [0, 26], sizes = [16, 1], strides = [1, 1]} : vector<16x32xf32> to vector<16x1xf32>
    %163 = vector.broadcast %162 : vector<16x1xf32> to vector<16x8xf32>
    %164 = arith.mulf %161, %163 : vector<16x8xf32>
    %165 = arith.addf %159, %164 : vector<16x8xf32>
    %c0_58 = arith.constant 0 : index
    %c27 = arith.constant 27 : index
    %c0_59 = arith.constant 0 : index
    %166 = vector.load %arg6[%c0_58, %c27, %c0_59] : memref<16x32x8xf32, #tpu.memory_space<vmem>>, vector<16x1x8xf32>
    %167 = vector.shape_cast %166 : vector<16x1x8xf32> to vector<16x8xf32>
    %168 = vector.extract_strided_slice %2 {offsets = [0, 27], sizes = [16, 1], strides = [1, 1]} : vector<16x32xf32> to vector<16x1xf32>
    %169 = vector.broadcast %168 : vector<16x1xf32> to vector<16x8xf32>
    %170 = arith.mulf %167, %169 : vector<16x8xf32>
    %171 = arith.addf %165, %170 : vector<16x8xf32>
    %c0_60 = arith.constant 0 : index
    %c28 = arith.constant 28 : index
    %c0_61 = arith.constant 0 : index
    %172 = vector.load %arg6[%c0_60, %c28, %c0_61] : memref<16x32x8xf32, #tpu.memory_space<vmem>>, vector<16x1x8xf32>
    %173 = vector.shape_cast %172 : vector<16x1x8xf32> to vector<16x8xf32>
    %174 = vector.extract_strided_slice %2 {offsets = [0, 28], sizes = [16, 1], strides = [1, 1]} : vector<16x32xf32> to vector<16x1xf32>
    %175 = vector.broadcast %174 : vector<16x1xf32> to vector<16x8xf32>
    %176 = arith.mulf %173, %175 : vector<16x8xf32>
    %177 = arith.addf %171, %176 : vector<16x8xf32>
    %c0_62 = arith.constant 0 : index
    %c29 = arith.constant 29 : index
    %c0_63 = arith.constant 0 : index
    %178 = vector.load %arg6[%c0_62, %c29, %c0_63] : memref<16x32x8xf32, #tpu.memory_space<vmem>>, vector<16x1x8xf32>
    %179 = vector.shape_cast %178 : vector<16x1x8xf32> to vector<16x8xf32>
    %180 = vector.extract_strided_slice %2 {offsets = [0, 29], sizes = [16, 1], strides = [1, 1]} : vector<16x32xf32> to vector<16x1xf32>
    %181 = vector.broadcast %180 : vector<16x1xf32> to vector<16x8xf32>
    %182 = arith.mulf %179, %181 : vector<16x8xf32>
    %183 = arith.addf %177, %182 : vector<16x8xf32>
    %c0_64 = arith.constant 0 : index
    %c30 = arith.constant 30 : index
    %c0_65 = arith.constant 0 : index
    %184 = vector.load %arg6[%c0_64, %c30, %c0_65] : memref<16x32x8xf32, #tpu.memory_space<vmem>>, vector<16x1x8xf32>
    %185 = vector.shape_cast %184 : vector<16x1x8xf32> to vector<16x8xf32>
    %186 = vector.extract_strided_slice %2 {offsets = [0, 30], sizes = [16, 1], strides = [1, 1]} : vector<16x32xf32> to vector<16x1xf32>
    %187 = vector.broadcast %186 : vector<16x1xf32> to vector<16x8xf32>
    %188 = arith.mulf %185, %187 : vector<16x8xf32>
    %189 = arith.addf %183, %188 : vector<16x8xf32>
    %c0_66 = arith.constant 0 : index
    %c31 = arith.constant 31 : index
    %c0_67 = arith.constant 0 : index
    %190 = vector.load %arg6[%c0_66, %c31, %c0_67] : memref<16x32x8xf32, #tpu.memory_space<vmem>>, vector<16x1x8xf32>
    %191 = vector.shape_cast %190 : vector<16x1x8xf32> to vector<16x8xf32>
    %192 = vector.extract_strided_slice %2 {offsets = [0, 31], sizes = [16, 1], strides = [1, 1]} : vector<16x32xf32> to vector<16x1xf32>
    %193 = vector.broadcast %192 : vector<16x1xf32> to vector<16x8xf32>
    %194 = arith.mulf %191, %193 : vector<16x8xf32>
    %195 = arith.addf %189, %194 : vector<16x8xf32>
    %c0_68 = arith.constant 0 : index
    %c0_69 = arith.constant 0 : index
    %c0_70 = arith.constant 0 : index
    %196 = vector.load %arg5[%c0_68, %c0_69, %c0_70] : memref<1x16x8xf32, #tpu.memory_space<vmem>>, vector<1x16x8xf32>
    %197 = vector.shape_cast %196 : vector<1x16x8xf32> to vector<16x8xf32>
    %198 = vector.shape_cast %195 : vector<16x8xf32> to vector<1x16x8xf32>
    tpu.vector_store %arg5[%c0_68, %c0_69, %c0_70], %198 {strides = array<i32>} : memref<1x16x8xf32, #tpu.memory_space<vmem>>, vector<1x16x8xf32>,
    return
  }
  func.func @transform_0(%arg0: i32, %arg1: i32) -> (i32, i32, i32) {
    %c0_i32 = arith.constant 0 : i32
    %c0_i32_0 = arith.constant 0 : i32
    return %arg0, %arg1, %c0_i32 : i32, i32, i32
  }
  func.func @transform_1(%arg0: i32, %arg1: i32) -> (i32, i32, i32) {
    %c0_i32 = arith.constant 0 : i32
    %c0_i32_0 = arith.constant 0 : i32
    %c0_i32_1 = arith.constant 0 : i32
    return %arg0, %c0_i32, %c0_i32_0 : i32, i32, i32
  }
  func.func @transform_2(%arg0: i32, %arg1: i32) -> (i32, i32, i32) {
    %c0_i32 = arith.constant 0 : i32
    %c0_i32_0 = arith.constant 0 : i32
    return %arg0, %arg1, %c0_i32 : i32, i32, i32
  }
  func.func @transform_3(%arg0: i32, %arg1: i32) -> (i32, i32, i32) {
    %c0_i32 = arith.constant 0 : i32
    %c0_i32_0 = arith.constant 0 : i32
    return %arg0, %arg1, %c0_i32 : i32, i32, i32
  }
}

module attributes {stable_mosaic.version = 11 : i64} {
  func.func @_linear_kernel(%arg0: i32, %arg1: memref<32x32xf32, #tpu.memory_space<vmem>>, %arg2: memref<32x128xf32, #tpu.memory_space<vmem>>, %arg3: memref<1x128xf32, #tpu.memory_space<vmem>>, %arg4: memref<32x128xf32, #tpu.memory_space<vmem>>) attributes {dimension_semantics = [#tpu.dimension_semantics<parallel>], iteration_bounds = array<i64: 1>, scalar_prefetch = 0 : i64, scratch_operands = 0 : i64, tpu.core_type = #tpu.core_type<tc>, window_params = [{transform_indices = @transform_0, window_bounds = array<i64: 32, 32>}, {pipeline_mode = #tpu.pipeline_mode<synchronous>, transform_indices = @transform_1, window_bounds = array<i64: 32, 128>}, {pipeline_mode = #tpu.pipeline_mode<synchronous>, transform_indices = @transform_2, window_bounds = array<i64: 1, 128>}, {transform_indices = @transform_3, window_bounds = array<i64: 32, 128>}]} {
    %c0 = arith.constant 0 : index
    %c0_0 = arith.constant 0 : index
    %0 = vector.load %arg1[%c0, %c0_0] : memref<32x32xf32, #tpu.memory_space<vmem>>, vector<32x32xf32>
    %c0_1 = arith.constant 0 : index
    %c0_2 = arith.constant 0 : index
    %1 = vector.load %arg2[%c0_1, %c0_2] : memref<32x128xf32, #tpu.memory_space<vmem>>, vector<32x128xf32>
    %cst = arith.constant dense<0.000000e+00> : vector<32x128xf32>
    %2 = tpu.matmul %0, %1, %cst {dimension_numbers = #tpu.dot_dimension_numbers<[1], [0], [0], [1], [0, 0, 1, 1], [], []>} : vector<32x32xf32>, vector<32x128xf32>, vector<32x128xf32> -> vector<32x128xf32>
    %c0_3 = arith.constant 0 : index
    %c0_4 = arith.constant 0 : index
    %3 = vector.load %arg3[%c0_3, %c0_4] : memref<1x128xf32, #tpu.memory_space<vmem>>, vector<1x128xf32>
    %4 = vector.broadcast %3 : vector<1x128xf32> to vector<32x128xf32>
    %5 = arith.addf %2, %4 : vector<32x128xf32>
    %c0_5 = arith.constant 0 : index
    %c0_6 = arith.constant 0 : index
    %6 = vector.load %arg4[%c0_5, %c0_6] : memref<32x128xf32, #tpu.memory_space<vmem>>, vector<32x128xf32>
    tpu.vector_store %arg4[%c0_5, %c0_6], %5 {strides = array<i32>} : memref<32x128xf32, #tpu.memory_space<vmem>>, vector<32x128xf32>,
    return
  }
  func.func @transform_0(%arg0: i32) -> (i32, i32) {
    %c0_i32 = arith.constant 0 : i32
    %c0_i32_0 = arith.constant 0 : i32
    return %arg0, %c0_i32 : i32, i32
  }
  func.func @transform_1(%arg0: i32) -> (i32, i32) {
    %c0_i32 = arith.constant 0 : i32
    %c0_i32_0 = arith.constant 0 : i32
    %c0_i32_1 = arith.constant 0 : i32
    return %c0_i32, %c0_i32_0 : i32, i32
  }
  func.func @transform_2(%arg0: i32) -> (i32, i32) {
    %c0_i32 = arith.constant 0 : i32
    %c0_i32_0 = arith.constant 0 : i32
    %c0_i32_1 = arith.constant 0 : i32
    return %c0_i32, %c0_i32_0 : i32, i32
  }
  func.func @transform_3(%arg0: i32) -> (i32, i32) {
    %c0_i32 = arith.constant 0 : i32
    %c0_i32_0 = arith.constant 0 : i32
    return %arg0, %c0_i32 : i32, i32
  }
}

</mosaic_0001>

<bundles_post_ra>
// kernel: spatial_cross_attention_forward.5
= control target key start
LH: loop header
LB: loop body
LE: loop exit
PB: predicated region body
PF: predicated region fallthrough
CT: control target
= control target key end

     0   :  { %vm33_vm0 = vcmask 261120   ;;  %vm172_vm1 = vcmask 589312   ;;  %vm163_vm2 = vcmask 523264   ;;  %vm302_vm3 = vcmask 654912   ;;  %s879_s24 = smov 56   ;;  %s880_s25 = smov 48   ;;  %s1436_s1 = inlined_call_operand.vmem [shape: f32[32,128], index: 1, kind: input, shape index: {}]   ;;  %s1437_s0 = inlined_call_operand.vmem [shape: f32[64,32], index: 0, kind: input, shape index: {}]   ;;  %s1438_s2 = inlined_call_operand.vmem [shape: f32[1,128], index: 2, kind: input, shape index: {}]   ;;  %s1439_s3 = inlined_call_operand.vmem [shape: f32[64,128], index: 3, kind: output, shape index: {}]  }
   0x1   :  { %v22_v0 = vld [vmem:[%s1436_s1] sm:$0xff]  ;;  %v23_v1 = vld [vmem:[%s1436_s1 + $0x8] sm:$0xff]  ;;  %v24_v2 = vld [vmem:[%s1436_s1 + $0x10] sm:$0xff]  ;;  %vm431_vm4 = vcmask 720512   ;;  %vm560_vm5 = vcmask 786112   ;;  %s881_s26 = smov 40  }
   0x2   :  { %v734_v3 = vpack.c.bf16 %v23_v1, %v22_v0  ;;  %v25_v4 = vld [vmem:[%s1436_s1 + $0x18] sm:$0xff]  ;;  %v14_v5 = vld [vmem:[%s1437_s0] sm:$0xff]  ;;  %v15_v8 = vld [vmem:[%s1437_s0 + $0x8] sm:$0xff]  ;;  %s878_s1 = smov 64   ;;  %vm253_vm6 = vcmask 64512  }
   0x3   :  { %v18_v6 = vld [vmem:[%s1437_s0 + $0x20] sm:$0xff]  ;;  %v738_v7 = vpack.c.bf16 %v25_v4, %v24_v2  ;;  %722 = vmatprep.mubr.msk.f32.mxu0 %vm33_vm0, %v14_v5  ;;  %v19_v9 = vld [vmem:[%s1437_s0 + $0x28] sm:$0xff]  ;;  %v16_v10 = vld [vmem:[%s1437_s0 + $0x10] sm:$0xff] }
   0x4   :  { %728 = vmatprep.mubr.msk.f32.mxu1 %vm33_vm0, %v18_v6  ;;  %735 = vmatprep.subr.bf16.mxu0 %v734_v3  ;;  %v20_v11 = vld [vmem:[%s1437_s0 + $0x30] sm:$0xff]  ;;  %v17_v12 = vld [vmem:[%s1437_s0 + $0x18] sm:$0xff]  ;;  %v693_v14 = vld [vmem:[%s1438_s2] ss:$0 sm:$0xff] }
   0x5   :  { %742 = vmatprep.subr.bf16.mxu1 %v734_v3  ;;  %737 = vmatpush3.bf16.msra.mxu0 %v734_v3  ;;  %v21_v13 = vld [vmem:[%s1437_s0 + $0x38] sm:$0xff] }
   0x6   :  { %744 = vmatpush3.bf16.msra.mxu1 %v734_v3  ;;  %739 = vmatprep.subr.bf16.mxu0 %v738_v7 }
   0x7   :  { %743 = vmatprep.subr.bf16.mxu1 %v738_v7 }
   0x9   :  { %741 = vmatpush3.bf16.msra.mxu0 %v738_v7 }
   0xa   :  { %745 = vmatpush3.bf16.msra.mxu1 %v738_v7 }
   0xc   :  { %723 = vmatmul.mubr.msk.f32.vlgmr.msra.gmra.mrb[0].mxu0 %vm33_vm0, %v15_v8 }
   0xd   :  { %729 = vmatmul.mubr.msk.f32.vlgmr.msra.gmra.mrb[0].mxu1 %vm33_vm0, %v19_v9  ;;  %725 = vmatprep.mubr.msk.f32.mxu0 %vm33_vm0, %v16_v10 }
   0xe   :  { %731 = vmatprep.mubr.msk.f32.mxu1 %vm33_vm0, %v20_v11 }
  0x10   :  { %726 = vmatmul.mubr.msk.f32.gmra.mrb[2].mxu0 %vm33_vm0, %v17_v12 }
  0x11   :  { %732 = vmatmul.mubr.msk.f32.gmra.mrb[2].mxu1 %vm33_vm0, %v21_v13 }
  0xdf   :  { %v724_v15 = vpop.f32.mrb[0].mxu0 }
  0xe0   :  { %v730_v16 = vpop.f32.mrb[0].mxu1  ;;  %v949_v17 = vadd.f32 %v724_v15, %v693_v14  ;;  %v124_v19 = vpop.f32.mrb[1].mxu0 }
  0xe1   :  { %v951_v18 = vadd.f32 %v730_v16, %v693_v14  ;;  %v144_v20 = vpop.f32.mrb[1].mxu1  ;;  %v953_v21 = vadd.f32 %v693_v14, %v124_v19 }
  0xe2   :  { %v955_v22 = vadd.f32 %v693_v14, %v144_v20  ;;  %v176_v24 = vsel %vm172_vm1, %v949_v17, -inf  ;;  %165 = vst.msk [vmem:[%s1439_s3 + $0x8] sm:$0xff] %vm163_vm2, %v949_v17  ;;  %v306_v31 = vsel %vm302_vm3, %v949_v17, -inf  ;;  %v435_v37 = vsel %vm431_vm4, %v949_v17, -inf }
  0xe3   :  { %v188_v23 = vsel %vm172_vm1, %v951_v18, -inf  ;;  %169 = vst.msk [vmem:[%s1439_s3 + $0x28] sm:$0xff] %vm163_vm2, %v951_v18  ;;  %177 = vmax.xlane.f32.xlu0 %v176_v24  ;;  %v727_v25 = vpop.f32.mrb[2].mxu0  ;;  %164 = vst.msk [vmem:[%s1439_s3] sm:$0xff] %vm163_vm2, %v953_v21  ;;  %v303_v32 = vsel %vm302_vm3, %v953_v21, -inf  ;;  %v318_v35 = vsel %vm302_vm3, %v951_v18, -inf }
  0xe4   :  { %189 = vmax.xlane.f32.xlu1 %v188_v23  ;;  %v733_v26 = vpop.f32.mrb[2].mxu1  ;;  %168 = vst.msk [vmem:[%s1439_s3 + $0x20] sm:$0xff] %vm163_vm2, %v955_v22  ;;  %v134_v27 = vpop.f32.mrb[3].mxu0  ;;  %v981_v29 = vadd.f32 %v727_v25, %v693_v14  ;;  %v315_v36 = vsel %vm302_vm3, %v955_v22, -inf  ;;  %v432_v38 = vsel %vm431_vm4, %v953_v21, -inf  ;;  %v447_v39 = vsel %vm431_vm4, %v951_v18, -inf }
  0xe5   :  { %v154_v28 = vpop.f32.mrb[3].mxu1  ;;  %v983_v30 = vadd.f32 %v693_v14, %v134_v27  ;;  %v989_v33 = vadd.f32 %v733_v26, %v693_v14  ;;  %v444_v40 = vsel %vm431_vm4, %v955_v22, -inf  ;;  %v564_v41 = vsel %vm560_vm5, %v949_v17, -inf }
  0xe6   :  { %v991_v34 = vadd.f32 %v693_v14, %v154_v28  ;;  %167 = vst.msk [vmem:[%s1439_s3 + $0x18] sm:$0xff] %vm163_vm2, %v981_v29  ;;  %v561_v42 = vsel %vm560_vm5, %v953_v21, -inf  ;;  %v576_v43 = vsel %vm560_vm5, %v951_v18, -inf  ;;  %v573_v44 = vsel %vm560_vm5, %v955_v22, -inf }
  0xe7   :  { %307 = vmax.xlane.f32.xlu0 %v306_v31  ;;  %166 = vst.msk [vmem:[%s1439_s3 + $0x10] sm:$0xff] %vm163_vm2, %v983_v30  ;;  %171 = vst.msk [vmem:[%s1439_s3 + $0x38] sm:$0xff] %vm163_vm2, %v989_v33  ;;  %v182_v45 = vsel %vm172_vm1, %v981_v29, -inf  ;;  %v173_v46 = vsel %vm172_vm1, %v953_v21, -inf  ;;  %v194_v47 = vsel %vm172_vm1, %v989_v33, -inf  ;;  %v185_v48 = vsel %vm172_vm1, %v955_v22, -inf }
  0xe8   :  { %304 = vmax.xlane.f32.xlu1 %v303_v32  ;;  %170 = vst.msk [vmem:[%s1439_s3 + $0x30] sm:$0xff] %vm163_vm2, %v991_v34  ;;  %v179_v49 = vsel %vm172_vm1, %v983_v30, -inf  ;;  %v312_v50 = vsel %vm302_vm3, %v981_v29, -inf  ;;  %v321_v51 = vsel %vm302_vm3, %v991_v34, -inf  ;;  %v324_v52 = vsel %vm302_vm3, %v989_v33, -inf }
  0xe9   :  { %v438_v53 = vsel %vm431_vm4, %v983_v30, -inf  ;;  %v441_v54 = vsel %vm431_vm4, %v981_v29, -inf  ;;  %v450_v55 = vsel %vm431_vm4, %v991_v34, -inf  ;;  %v453_v56 = vsel %vm431_vm4, %v989_v33, -inf }
  0xea   :  { %v567_v57 = vsel %vm560_vm5, %v983_v30, -inf  ;;  %v570_v58 = vsel %vm560_vm5, %v981_v29, -inf  ;;  %v579_v59 = vsel %vm560_vm5, %v991_v34, -inf  ;;  %v582_v60 = vsel %vm560_vm5, %v989_v33, -inf }
  0xeb   :  { %319 = vmax.xlane.f32.xlu0 %v318_v35  ;;  %v191_v61 = vsel %vm172_vm1, %v991_v34, -inf  ;;  %v309_v62 = vsel %vm302_vm3, %v983_v30, -inf }
  0xec   :  { %316 = vmax.xlane.f32.xlu1 %v315_v36 }
  0xef   :  { %436 = vmax.xlane.f32.xlu0 %v435_v37 }
  0xf0   :  { %433 = vmax.xlane.f32.xlu1 %v432_v38 }
  0xf3   :  { %448 = vmax.xlane.f32.xlu0 %v447_v39 }
  0xf4   :  { %445 = vmax.xlane.f32.xlu1 %v444_v40 }
  0xf7   :  { %565 = vmax.xlane.f32.xlu0 %v564_v41 }
  0xf8   :  { %562 = vmax.xlane.f32.xlu1 %v561_v42 }
  0xfb   :  { %577 = vmax.xlane.f32.xlu0 %v576_v43 }
  0xfc   :  { %574 = vmax.xlane.f32.xlu1 %v573_v44 }
  0xff   :  { %174 = vmax.xlane.f32.xlu0 %v173_v46 }
 0x100   :  { %183 = vmax.xlane.f32.xlu1 %v182_v45 }
 0x103   :  { %186 = vmax.xlane.f32.xlu0 %v185_v48 }
 0x104   :  { %195 = vmax.xlane.f32.xlu1 %v194_v47 }
 0x107   :  { %313 = vmax.xlane.f32.xlu0 %v312_v50 }
 0x108   :  { %180 = vmax.xlane.f32.xlu1 %v179_v49 }
 0x10b   :  { %325 = vmax.xlane.f32.xlu0 %v324_v52 }
 0x10c   :  { %322 = vmax.xlane.f32.xlu1 %v321_v51 }
 0x10f   :  { %442 = vmax.xlane.f32.xlu0 %v441_v54 }
 0x110   :  { %439 = vmax.xlane.f32.xlu1 %v438_v53 }
 0x113   :  { %454 = vmax.xlane.f32.xlu0 %v453_v56 }
 0x114   :  { %451 = vmax.xlane.f32.xlu1 %v450_v55 }
 0x117   :  { %571 = vmax.xlane.f32.xlu0 %v570_v58 }
 0x118   :  { %568 = vmax.xlane.f32.xlu1 %v567_v57 }
 0x11b   :  { %583 = vmax.xlane.f32.xlu0 %v582_v60 }
 0x11c   :  { %580 = vmax.xlane.f32.xlu1 %v579_v59 }
 0x11f   :  { %192 = vmax.xlane.f32.xlu0 %v191_v61 }
 0x123   :  { %310 = vmax.xlane.f32.xlu0 %v309_v62 }
 0x170   :  { %v178_v0 = vpop.xlane.xlu0 %177 }
 0x171   :  { %v190_v63 = vpop.xlane.xlu1 %189  ;;  %v198_v1 = vsub.f32 %v949_v17, %v178_v0 }
 0x172   :  { %v202_v2 = vsub.f32 %v951_v18, %v190_v63 }
 0x173   :  { %v207_v3 = vmul.f32 1.442695, %v198_v1 }
 0x174   :  { %v308_v4 = vpop.xlane.xlu0 %307  ;;  %v215_v6 = vmul.f32 1.442695, %v202_v2 }
 0x175   :  { %v305_v5 = vpop.xlane.xlu1 %304  ;;  %750 = vpow2.f32 %v207_v3  ;;  %v328_v7 = vsub.f32 %v949_v17, %v308_v4 }
 0x176   :  { %752 = vpow2.f32 %v215_v6  ;;  %v327_v47 = vsub.f32 %v953_v21, %v305_v5 }
 0x177   :  { %v337_v10 = vmul.f32 1.442695, %v328_v7 }
 0x178   :  { %v320_v8 = vpop.xlane.xlu0 %319  ;;  %v335_v54 = vmul.f32 1.442695, %v327_v47 }
 0x179   :  { %v1072_v9 = vpop.xlane.xlu1 %316  ;;  %v332_v11 = vsub.f32 %v951_v18, %v320_v8  ;;  %754 = vpow2.f32 %v337_v10 }
 0x17a   :  { %v331_v55 = vsub.f32 %v955_v22, %v1072_v9 }
 0x17b   :  { %v345_v14 = vmul.f32 1.442695, %v332_v11 }
 0x17c   :  { %v437_v12 = vpop.xlane.xlu0 %436  ;;  %v343_v60 = vmul.f32 1.442695, %v331_v55 }
 0x17d   :  { %v1075_v13 = vpop.xlane.xlu1 %433  ;;  %v457_v15 = vsub.f32 %v949_v17, %v437_v12  ;;  %756 = vpow2.f32 %v345_v14 }
 0x17e   :  { %v456_v61 = vsub.f32 %v953_v21, %v1075_v13 }
 0x17f   :  { %v1078_v16 = vpop.eup %750  ;;  %v466_v23 = vmul.f32 1.442695, %v457_v15 }
 0x180   :  { %v449_v19 = vpop.xlane.xlu0 %448  ;;  %231 = vrot.lane.b32.xlu1 %v1078_v16, %s878_s1  ;;  %v1085_v25 = vpop.eup %752  ;;  %v464_v3 = vmul.f32 1.442695, %v456_v61 }
 0x181   :  { %v1080_v20 = vpop.xlane.xlu1 %445  ;;  %v461_v24 = vsub.f32 %v951_v18, %v449_v19  ;;  %758 = vpow2.f32 %v466_v23 }
 0x182   :  { %v460_v4 = vsub.f32 %v955_v22, %v1080_v20 }
 0x183   :  { %v474_v28 = vmul.f32 1.442695, %v461_v24  ;;  %v1092_v32 = vpop.eup %754 }
 0x184   :  { %v566_v26 = vpop.xlane.xlu0 %565  ;;  %239 = vrot.lane.b32.xlu1 %v1085_v25, %s878_s1  ;;  %v472_v11 = vmul.f32 1.442695, %v460_v4 }
 0x185   :  { %v1087_v27 = vpop.xlane.xlu1 %562  ;;  %v586_v31 = vsub.f32 %v949_v17, %v566_v26  ;;  %760 = vpow2.f32 %v474_v28 }
 0x186   :  { %v585_v12 = vsub.f32 %v953_v21, %v1087_v27 }
 0x187   :  { %v595_v38 = vmul.f32 1.442695, %v586_v31  ;;  %v1099_v39 = vpop.eup %756 }
 0x188   :  { %v578_v35 = vpop.xlane.xlu0 %577  ;;  %361 = vrot.lane.b32.xlu1 %v1092_v32, %s879_s24  ;;  %v593_v24 = vmul.f32 1.442695, %v585_v12 }
 0x189   :  { %v1094_v36 = vpop.xlane.xlu1 %574  ;;  %v590_v37 = vsub.f32 %v951_v18, %v578_v35  ;;  %762 = vpow2.f32 %v595_v38 }
 0x18b   :  { %v603_v42 = vmul.f32 1.442695, %v590_v37  ;;  %v1105_v44 = vpop.eup %758 }
 0x18c   :  { %v175_v41 = vpop.xlane.xlu0 %174  ;;  %369 = vrot.lane.b32.xlu1 %v1099_v39, %s879_s24 }
 0x18d   :  { %v184_v40 = vpop.xlane.xlu1 %183  ;;  %v197_v43 = vsub.f32 %v953_v21, %v175_v41  ;;  %764 = vpow2.f32 %v603_v42  ;;  %v589_v21 = vsub.f32 %v955_v22, %v1094_v36 }
 0x18e   :  { %v200_v17 = vsub.f32 %v981_v29, %v184_v40 }
 0x18f   :  { %v205_v18 = vmul.f32 1.442695, %v197_v43  ;;  %v1112_v52 = vpop.eup %760  ;;  %v601_v37 = vmul.f32 1.442695, %v589_v21 }
 0x190   :  { %v187_v46 = vpop.xlane.xlu0 %186  ;;  %v211_v48 = vmul.f32 1.442695, %v200_v17  ;;  %490 = vrot.lane.b32.xlu1 %v1105_v44, %s880_s25 }
 0x191   :  { %v196_v45 = vpop.xlane.xlu1 %195  ;;  %v201_v49 = vsub.f32 %v955_v22, %v187_v46  ;;  %766 = vpow2.f32 %v205_v18 }
 0x192   :  { %v204_v50 = vsub.f32 %v989_v33, %v196_v45  ;;  %768 = vpow2.f32 %v211_v48 }
 0x193   :  { %v213_v51 = vmul.f32 1.442695, %v201_v49  ;;  %v1119_v58 = vpop.eup %762 }
 0x194   :  { %v314_v53 = vpop.xlane.xlu0 %313  ;;  %498 = vrot.lane.b32.xlu1 %v1112_v52, %s880_s25  ;;  %v219_v56 = vmul.f32 1.442695, %v204_v50 }
 0x195   :  { %770 = vpow2.f32 %v213_v51  ;;  %v330_v57 = vsub.f32 %v981_v29, %v314_v53  ;;  %v181_v5 = vpop.xlane.xlu1 %180 }
 0x196   :  { %772 = vpow2.f32 %v335_v54  ;;  %v199_v42 = vsub.f32 %v983_v30, %v181_v5 }
 0x197   :  { %774 = vpow2.f32 %v219_v56  ;;  %v341_v62 = vmul.f32 1.442695, %v330_v57  ;;  %v1126_v0 = vpop.eup %764 }
 0x198   :  { %v326_v59 = vpop.xlane.xlu0 %325  ;;  %619 = vrot.lane.b32.xlu1 %v1119_v58, %s881_s26  ;;  %776 = vpow2.f32 %v343_v60  ;;  %v209_v49 = vmul.f32 1.442695, %v199_v42 }
 0x199   :  { %v334_v63 = vsub.f32 %v989_v33, %v326_v59  ;;  %778 = vpow2.f32 %v341_v62  ;;  %v323_v19 = vpop.xlane.xlu1 %322 }
 0x19a   :  { %780 = vpow2.f32 %v464_v3  ;;  %v333_v43 = vsub.f32 %v991_v34, %v323_v19 }
 0x19b   :  { %v1128_v1 = vpop.eup %766  ;;  %v349_v6 = vmul.f32 1.442695, %v334_v63 }
 0x19c   :  { %v443_v2 = vpop.xlane.xlu0 %442  ;;  %627 = vrot.lane.b32.xlu1 %v1126_v0, %s881_s26  ;;  %229 = vrot.lane.b32.xlu0 %v1128_v1, %s878_s1  ;;  %v1137_v8 = vpop.eup %768  ;;  %v347_v51 = vmul.f32 1.442695, %v333_v43 }
 0x19d   :  { %v459_v7 = vsub.f32 %v981_v29, %v443_v2  ;;  %782 = vpow2.f32 %v349_v6  ;;  %v440_v38 = vpop.xlane.xlu1 %439 }
 0x19e   :  { %784 = vpow2.f32 %v472_v11  ;;  %v458_v50 = vsub.f32 %v983_v30, %v440_v38 }
 0x19f   :  { %v1139_v9 = vpop.eup %770  ;;  %v470_v13 = vmul.f32 1.442695, %v459_v7 }
 0x1a0   :  { %v455_v10 = vpop.xlane.xlu0 %454  ;;  %235 = vrot.lane.b32.xlu1 %v1137_v8, %s878_s1  ;;  %237 = vrot.lane.b32.xlu0 %v1139_v9, %s878_s1  ;;  %v1148_v15 = vpop.eup %772  ;;  %v468_v56 = vmul.f32 1.442695, %v458_v50 }
 0x1a1   :  { %v463_v14 = vsub.f32 %v989_v33, %v455_v10  ;;  %v1150_v20 = vpop.eup %774  ;;  %786 = vpow2.f32 %v470_v13  ;;  %v452_v45 = vpop.xlane.xlu1 %451 }
 0x1a2   :  { %v1159_v28 = vpop.eup %776  ;;  %788 = vpow2.f32 %v593_v24  ;;  %v462_v59 = vsub.f32 %v991_v34, %v452_v45 }
 0x1a3   :  { %v478_v26 = vmul.f32 1.442695, %v463_v14  ;;  %v1161_v31 = vpop.eup %778 }
 0x1a4   :  { %v572_v23 = vpop.xlane.xlu0 %571  ;;  %243 = vrot.lane.b32.xlu1 %v1150_v20, %s878_s1  ;;  %359 = vrot.lane.b32.xlu0 %v1148_v15, %s879_s24  ;;  %v1168_v40 = vpop.eup %780  ;;  %v476_v63 = vmul.f32 1.442695, %v462_v59 }
 0x1a5   :  { %v588_v27 = vsub.f32 %v981_v29, %v572_v23  ;;  %790 = vpow2.f32 %v478_v26  ;;  %v569_v57 = vpop.xlane.xlu1 %568 }
 0x1a6   :  { %792 = vpow2.f32 %v601_v37  ;;  %v587_v2 = vsub.f32 %v983_v30, %v569_v57 }
 0x1a7   :  { %v599_v22 = vmul.f32 1.442695, %v588_v27  ;;  %v1170_v29 = vpop.eup %782 }
 0x1a8   :  { %v584_v35 = vpop.xlane.xlu0 %583  ;;  %367 = vrot.lane.b32.xlu0 %v1159_v28, %s879_s24  ;;  %365 = vrot.lane.b32.xlu1 %v1161_v31, %s879_s24  ;;  %v1179_v18 = vpop.eup %784  ;;  %v597_v6 = vmul.f32 1.442695, %v587_v2 }
 0x1a9   :  { %v592_v36 = vsub.f32 %v989_v33, %v584_v35  ;;  %794 = vpow2.f32 %v599_v22  ;;  %v581_v4 = vpop.xlane.xlu1 %580 }
 0x1aa   :  { %v591_v7 = vsub.f32 %v991_v34, %v581_v4 }
 0x1ab   :  { %v607_v33 = vmul.f32 1.442695, %v592_v36  ;;  %v1181_v47 = vpop.eup %786 }
 0x1ac   :  { %v193_v41 = vpop.xlane.xlu0 %192  ;;  %488 = vrot.lane.b32.xlu0 %v1168_v40, %s880_s25  ;;  %373 = vrot.lane.b32.xlu1 %v1170_v29, %s879_s24  ;;  %v1189_v54 = vpop.eup %788 }
 0x1ad   :  { %v203_v17 = vsub.f32 %v991_v34, %v193_v41 }
 0x1af   :  { %v217_v46 = vmul.f32 1.442695, %v203_v17  ;;  %v1191_v55 = vpop.eup %790 }
 0x1b0   :  { %v311_v48 = vpop.xlane.xlu0 %310  ;;  %496 = vrot.lane.b32.xlu0 %v1179_v18, %s880_s25  ;;  %494 = vrot.lane.b32.xlu1 %v1181_v47, %s880_s25  ;;  %v1198_v61 = vpop.eup %792 }
 0x1b1   :  { %796 = vpow2.f32 %v217_v46  ;;  %v329_v53 = vsub.f32 %v983_v30, %v311_v48  ;;  %v605_v30 = vmul.f32 1.442695, %v591_v7 }
 0x1b2   :  { %798 = vpow2.f32 %v607_v33 }
 0x1b3   :  { %800 = vpow2.f32 %v209_v49  ;;  %v339_v60 = vmul.f32 1.442695, %v329_v53  ;;  %v1200_v62 = vpop.eup %794 }
 0x1b4   :  { %617 = vrot.lane.b32.xlu0 %v1189_v54, %s881_s26  ;;  %502 = vrot.lane.b32.xlu1 %v1191_v55, %s880_s25  ;;  %802 = vpow2.f32 %v347_v51 }
 0x1b5   :  { %804 = vpow2.f32 %v468_v56 }
 0x1b6   :  { %806 = vpow2.f32 %v339_v60 }
 0x1b7   :  { %808 = vpow2.f32 %v476_v63 }
 0x1b8   :  { %625 = vrot.lane.b32.xlu0 %v1198_v61, %s881_s26  ;;  %623 = vrot.lane.b32.xlu1 %v1200_v62, %s881_s26  ;;  %810 = vpow2.f32 %v597_v6 }
 0x1b9   :  { %812 = vpow2.f32 %v605_v30 }
 0x1bb   :  { %v1207_v3 = vpop.eup %796 }
 0x1bc   :  { %v1209_v5 = vpop.eup %798  ;;  %241 = vrot.lane.b32.xlu0 %v1207_v3, %s878_s1 }
 0x1bd   :  { %631 = vrot.lane.b32.xlu1 %v1209_v5, %s881_s26  ;;  %v1216_v10 = vpop.eup %800 }
 0x1be   :  { %v1218_v11 = vpop.eup %802 }
 0x1bf   :  { %v1224_v12 = vpop.eup %804 }
 0x1c0   :  { %371 = vrot.lane.b32.xlu0 %v1218_v11, %s879_s24  ;;  %v1226_v13 = vpop.eup %806 }
 0x1c1   :  { %233 = vrot.lane.b32.xlu1 %v1216_v10, %s878_s1  ;;  %v1232_v34 = vpop.eup %808 }
 0x1c2   :  { %v1236_v14 = vpop.eup %810 }
 0x1c3   :  { %v1240_v19 = vpop.eup %812 }
 0x1c4   :  { %492 = vrot.lane.b32.xlu0 %v1224_v12, %s880_s25 }
 0x1c5   :  { %363 = vrot.lane.b32.xlu1 %v1226_v13, %s879_s24 }
 0x1c8   :  { %500 = vrot.lane.b32.xlu0 %v1232_v34, %s880_s25 }
 0x1cc   :  { %621 = vrot.lane.b32.xlu0 %v1236_v14, %s881_s26 }
 0x1d0   :  { %629 = vrot.lane.b32.xlu0 %v1240_v19, %s881_s26 }
 0x1f2   :  { %v232_v23 = vpop.permute.xlu1 %231 }
 0x1f3   :  { %v257_v24 = vsel %vm253_vm6, %v232_v23, 0.0 }
 0x1f4   :  { %258 = vadd.xlane.f32.xlu1 %v257_v24 }
 0x1f6   :  { %v240_v21 = vpop.permute.xlu1 %239 }
 0x1f7   :  { %v269_v26 = vsel %vm253_vm6, %v240_v21, 0.0 }
 0x1f8   :  { %270 = vadd.xlane.f32.xlu1 %v269_v26 }
 0x1fa   :  { %v362_v27 = vpop.permute.xlu1 %361 }
 0x1fb   :  { %v386_v35 = vsel %vm253_vm6, %v362_v27, 0.0 }
 0x1fc   :  { %387 = vadd.xlane.f32.xlu1 %v386_v35 }
 0x1fe   :  { %v370_v37 = vpop.permute.xlu1 %369 }
 0x1ff   :  { %v398_v38 = vsel %vm253_vm6, %v370_v37, 0.0 }
 0x200   :  { %399 = vadd.xlane.f32.xlu1 %v398_v38 }
 0x202   :  { %v491_v22 = vpop.permute.xlu1 %490 }
 0x203   :  { %v515_v36 = vsel %vm253_vm6, %v491_v22, 0.0 }
 0x204   :  { %516 = vadd.xlane.f32.xlu1 %v515_v36 }
 0x206   :  { %v499_v41 = vpop.permute.xlu1 %498 }
 0x207   :  { %v527_v42 = vsel %vm253_vm6, %v499_v41, 0.0 }
 0x208   :  { %528 = vadd.xlane.f32.xlu1 %v527_v42 }
 0x20a   :  { %v620_v17 = vpop.permute.xlu1 %619 }
 0x20b   :  { %v644_v43 = vsel %vm253_vm6, %v620_v17, 0.0 }
 0x20c   :  { %645 = vadd.xlane.f32.xlu1 %v644_v43 }
 0x20e   :  { %v628_v33 = vpop.permute.xlu1 %627  ;;  %v230_v45 = vpop.permute.xlu0 %229 }
 0x20f   :  { %v656_v46 = vsel %vm253_vm6, %v628_v33, 0.0  ;;  %v254_v48 = vsel %vm253_vm6, %v230_v45, 0.0 }
 0x210   :  { %657 = vadd.xlane.f32.xlu1 %v656_v46  ;;  %255 = vadd.xlane.f32.xlu0 %v254_v48 }
 0x212   :  { %v236_v49 = vpop.permute.xlu1 %235  ;;  %v238_v50 = vpop.permute.xlu0 %237 }
 0x213   :  { %v263_v51 = vsel %vm253_vm6, %v236_v49, 0.0  ;;  %v266_v53 = vsel %vm253_vm6, %v238_v50, 0.0 }
 0x214   :  { %264 = vadd.xlane.f32.xlu1 %v263_v51  ;;  %267 = vadd.xlane.f32.xlu0 %v266_v53 }
 0x216   :  { %v244_v56 = vpop.permute.xlu1 %243  ;;  %v360_v57 = vpop.permute.xlu0 %359 }
 0x217   :  { %v275_v59 = vsel %vm253_vm6, %v244_v56, 0.0  ;;  %v383_v60 = vsel %vm253_vm6, %v360_v57, 0.0 }
 0x218   :  { %276 = vadd.xlane.f32.xlu1 %v275_v59  ;;  %384 = vadd.xlane.f32.xlu0 %v383_v60 }
 0x21a   :  { %v366_v63 = vpop.permute.xlu1 %365  ;;  %v368_v2 = vpop.permute.xlu0 %367 }
 0x21b   :  { %v395_v4 = vsel %vm253_vm6, %v368_v2, 0.0  ;;  %v392_v46 = vsel %vm253_vm6, %v366_v63, 0.0 }
 0x21c   :  { %396 = vadd.xlane.f32.xlu0 %v395_v4 }
 0x21e   :  { %v374_v6 = vpop.permute.xlu1 %373  ;;  %v489_v7 = vpop.permute.xlu0 %488 }
 0x21f   :  { %v404_v30 = vsel %vm253_vm6, %v374_v6, 0.0  ;;  %v512_v23 = vsel %vm253_vm6, %v489_v7, 0.0 }
 0x220   :  { %405 = vadd.xlane.f32.xlu1 %v404_v30  ;;  %513 = vadd.xlane.f32.xlu0 %v512_v23 }
 0x222   :  { %v495_v24 = vpop.permute.xlu1 %494  ;;  %v497_v21 = vpop.permute.xlu0 %496 }
 0x223   :  { %v521_v26 = vsel %vm253_vm6, %v495_v24, 0.0  ;;  %v524_v27 = vsel %vm253_vm6, %v497_v21, 0.0 }
 0x224   :  { %522 = vadd.xlane.f32.xlu1 %v521_v26  ;;  %525 = vadd.xlane.f32.xlu0 %v524_v27 }
 0x226   :  { %v503_v35 = vpop.permute.xlu1 %502  ;;  %v618_v37 = vpop.permute.xlu0 %617 }
 0x227   :  { %v533_v38 = vsel %vm253_vm6, %v503_v35, 0.0  ;;  %v641_v22 = vsel %vm253_vm6, %v618_v37, 0.0 }
 0x228   :  { %534 = vadd.xlane.f32.xlu1 %v533_v38  ;;  %642 = vadd.xlane.f32.xlu0 %v641_v22 }
 0x22a   :  { %v624_v36 = vpop.permute.xlu1 %623  ;;  %v626_v41 = vpop.permute.xlu0 %625 }
 0x22b   :  { %v650_v42 = vsel %vm253_vm6, %v624_v36, 0.0  ;;  %v653_v17 = vsel %vm253_vm6, %v626_v41, 0.0 }
 0x22c   :  { %651 = vadd.xlane.f32.xlu1 %v650_v42  ;;  %654 = vadd.xlane.f32.xlu0 %v653_v17 }
 0x22e   :  { %v242_v33 = vpop.permute.xlu0 %241 }
 0x22f   :  { %v632_v43 = vpop.permute.xlu1 %631  ;;  %v272_v51 = vsel %vm253_vm6, %v242_v33, 0.0 }
 0x230   :  { %v662_v45 = vsel %vm253_vm6, %v632_v43, 0.0  ;;  %393 = vadd.xlane.f32.xlu0 %v392_v46 }
 0x231   :  { %663 = vadd.xlane.f32.xlu1 %v662_v45 }
 0x232   :  { %v372_v50 = vpop.permute.xlu0 %371 }
 0x233   :  { %v234_v48 = vpop.permute.xlu1 %233  ;;  %v401_v59 = vsel %vm253_vm6, %v372_v50, 0.0 }
 0x234   :  { %v260_v49 = vsel %vm253_vm6, %v234_v48, 0.0 }
 0x235   :  { %261 = vadd.xlane.f32.xlu0 %v260_v49 }
 0x236   :  { %v493_v56 = vpop.permute.xlu0 %492 }
 0x237   :  { %v364_v53 = vpop.permute.xlu1 %363  ;;  %v518_v63 = vsel %vm253_vm6, %v493_v56, 0.0 }
 0x238   :  { %v389_v57 = vsel %vm253_vm6, %v364_v53, 0.0 }
 0x239   :  { %273 = vadd.xlane.f32.xlu0 %v272_v51 }
 0x23a   :  { %v501_v60 = vpop.permute.xlu0 %500 }
 0x23b   :  { %v530_v4 = vsel %vm253_vm6, %v501_v60, 0.0 }
 0x23d   :  { %390 = vadd.xlane.f32.xlu0 %v389_v57 }
 0x23e   :  { %v622_v2 = vpop.permute.xlu0 %621 }
 0x23f   :  { %v647_v6 = vsel %vm253_vm6, %v622_v2, 0.0 }
 0x241   :  { %402 = vadd.xlane.f32.xlu0 %v401_v59 }
 0x242   :  { %v630_v7 = vpop.permute.xlu0 %629 }
 0x243   :  { %v659_v30 = vsel %vm253_vm6, %v630_v7, 0.0 }
 0x245   :  { %519 = vadd.xlane.f32.xlu0 %v518_v63 }
 0x249   :  { %531 = vadd.xlane.f32.xlu0 %v530_v4 }
 0x24d   :  { %648 = vadd.xlane.f32.xlu0 %v647_v6 }
 0x251   :  { %660 = vadd.xlane.f32.xlu0 %v659_v30 }
 0x281   :  { %v259_v23 = vpop.xlane.xlu1 %258 }
 0x282   :  { %814 = vrcp.f32 %v259_v23 }
 0x285   :  { %v271_v24 = vpop.xlane.xlu1 %270 }
 0x286   :  { %816 = vrcp.f32 %v271_v24 }
 0x289   :  { %v388_v21 = vpop.xlane.xlu1 %387 }
 0x28a   :  { %818 = vrcp.f32 %v388_v21 }
 0x28c   :  { %v815_v26 = vpop.eup %814 }
 0x28d   :  { %v281_v27 = vmul.f32 %v815_v26, %v1078_v16  ;;  %v400_v35 = vpop.xlane.xlu1 %399 }
 0x28e   :  { %820 = vrcp.f32 %v400_v35 }
 0x28f   :  { %295 = vst.msk [vmem:[%s1439_s3 + $0x8] sm:$0xff] %vm172_vm1, %v281_v27 }
 0x290   :  { %v817_v37 = vpop.eup %816 }
 0x291   :  { %v289_v38 = vmul.f32 %v817_v37, %v1085_v25  ;;  %v517_v22 = vpop.xlane.xlu1 %516 }
 0x292   :  { %822 = vrcp.f32 %v517_v22 }
 0x293   :  { %299 = vst.msk [vmem:[%s1439_s3 + $0x28] sm:$0xff] %vm172_vm1, %v289_v38 }
 0x294   :  { %v819_v36 = vpop.eup %818 }
 0x295   :  { %v410_v16 = vmul.f32 %v819_v36, %v1092_v32  ;;  %v529_v41 = vpop.xlane.xlu1 %528 }
 0x296   :  { %824 = vrcp.f32 %v529_v41 }
 0x297   :  { %424 = vst.msk [vmem:[%s1439_s3 + $0x8] sm:$0xff] %vm302_vm3, %v410_v16 }
 0x298   :  { %v821_v42 = vpop.eup %820 }
 0x299   :  { %v418_v25 = vmul.f32 %v821_v42, %v1099_v39  ;;  %v646_v17 = vpop.xlane.xlu1 %645 }
 0x29a   :  { %826 = vrcp.f32 %v646_v17 }
 0x29b   :  { %428 = vst.msk [vmem:[%s1439_s3 + $0x28] sm:$0xff] %vm302_vm3, %v418_v25 }
 0x29c   :  { %v823_v43 = vpop.eup %822 }
 0x29d   :  { %v539_v32 = vmul.f32 %v823_v43, %v1105_v44  ;;  %v658_v33 = vpop.xlane.xlu1 %657  ;;  %v256_v45 = vpop.xlane.xlu0 %255 }
 0x29e   :  { %828 = vrcp.f32 %v658_v33 }
 0x29f   :  { %553 = vst.msk [vmem:[%s1439_s3 + $0x8] sm:$0xff] %vm431_vm4, %v539_v32  ;;  %830 = vrcp.f32 %v256_v45 }
 0x2a0   :  { %v825_v39 = vpop.eup %824 }
 0x2a1   :  { %v547_v46 = vmul.f32 %v825_v39, %v1112_v52  ;;  %v265_v48 = vpop.xlane.xlu1 %264  ;;  %v268_v49 = vpop.xlane.xlu0 %267 }
 0x2a2   :  { %832 = vrcp.f32 %v265_v48 }
 0x2a3   :  { %557 = vst.msk [vmem:[%s1439_s3 + $0x28] sm:$0xff] %vm431_vm4, %v547_v46  ;;  %834 = vrcp.f32 %v268_v49 }
 0x2a4   :  { %v827_v44 = vpop.eup %826 }
 0x2a5   :  { %v668_v50 = vmul.f32 %v827_v44, %v1119_v58  ;;  %v277_v51 = vpop.xlane.xlu1 %276  ;;  %v385_v53 = vpop.xlane.xlu0 %384 }
 0x2a6   :  { %836 = vrcp.f32 %v277_v51 }
 0x2a7   :  { %682 = vst.msk [vmem:[%s1439_s3 + $0x8] sm:$0xff] %vm560_vm5, %v668_v50  ;;  %838 = vrcp.f32 %v385_v53 }
 0x2a8   :  { %v829_v52 = vpop.eup %828 }
 0x2a9   :  { %v831_v56 = vpop.eup %830  ;;  %v676_v57 = vmul.f32 %v829_v52, %v1126_v0  ;;  %v397_v59 = vpop.xlane.xlu0 %396 }
 0x2aa   :  { %v279_v60 = vmul.f32 %v831_v56, %v1128_v1  ;;  %840 = vrcp.f32 %v397_v59 }
 0x2ab   :  { %686 = vst.msk [vmem:[%s1439_s3 + $0x28] sm:$0xff] %vm560_vm5, %v676_v57 }
 0x2ac   :  { %v833_v58 = vpop.eup %832  ;;  %294 = vst.msk [vmem:[%s1439_s3] sm:$0xff] %vm172_vm1, %v279_v60 }
 0x2ad   :  { %v835_v63 = vpop.eup %834  ;;  %v285_v2 = vmul.f32 %v833_v58, %v1137_v8  ;;  %v406_v4 = vpop.xlane.xlu1 %405 }
 0x2ae   :  { %v514_v0 = vpop.xlane.xlu0 %513  ;;  %v287_v6 = vmul.f32 %v835_v63, %v1139_v9  ;;  %842 = vrcp.f32 %v406_v4 }
 0x2af   :  { %297 = vst.msk [vmem:[%s1439_s3 + $0x18] sm:$0xff] %vm172_vm1, %v285_v2  ;;  %844 = vrcp.f32 %v514_v0 }
 0x2b0   :  { %v837_v1 = vpop.eup %836  ;;  %298 = vst.msk [vmem:[%s1439_s3 + $0x20] sm:$0xff] %vm172_vm1, %v287_v6 }
 0x2b1   :  { %v839_v7 = vpop.eup %838  ;;  %v293_v8 = vmul.f32 %v837_v1, %v1150_v20  ;;  %v523_v30 = vpop.xlane.xlu1 %522 }
 0x2b2   :  { %v526_v23 = vpop.xlane.xlu0 %525  ;;  %v408_v9 = vmul.f32 %v839_v7, %v1148_v15 }
 0x2b3   :  { %301 = vst.msk [vmem:[%s1439_s3 + $0x38] sm:$0xff] %vm172_vm1, %v293_v8  ;;  %846 = vrcp.f32 %v526_v23 }
 0x2b4   :  { %v841_v24 = vpop.eup %840  ;;  %423 = vst.msk [vmem:[%s1439_s3] sm:$0xff] %vm302_vm3, %v408_v9 }
 0x2b5   :  { %v416_v21 = vmul.f32 %v841_v24, %v1159_v28  ;;  %v535_v26 = vpop.xlane.xlu1 %534 }
 0x2b6   :  { %v643_v20 = vpop.xlane.xlu0 %642  ;;  %848 = vrcp.f32 %v535_v26 }
 0x2b7   :  { %427 = vst.msk [vmem:[%s1439_s3 + $0x20] sm:$0xff] %vm302_vm3, %v416_v21  ;;  %850 = vrcp.f32 %v643_v20 }
 0x2b8   :  { %v843_v15 = vpop.eup %842 }
 0x2b9   :  { %v845_v27 = vpop.eup %844  ;;  %v422_v35 = vmul.f32 %v843_v15, %v1170_v29  ;;  %v652_v37 = vpop.xlane.xlu1 %651 }
 0x2ba   :  { %v655_v38 = vpop.xlane.xlu0 %654  ;;  %v537_v22 = vmul.f32 %v845_v27, %v1168_v40 }
 0x2bb   :  { %430 = vst.msk [vmem:[%s1439_s3 + $0x38] sm:$0xff] %vm302_vm3, %v422_v35  ;;  %852 = vrcp.f32 %v655_v38 }
 0x2bc   :  { %552 = vst.msk [vmem:[%s1439_s3] sm:$0xff] %vm431_vm4, %v537_v22  ;;  %854 = vrcp.f32 %v523_v30 }
 0x2bd   :  { %v847_v28 = vpop.eup %846  ;;  %856 = vrcp.f32 %v652_v37 }
 0x2be   :  { %v664_v36 = vpop.xlane.xlu1 %663  ;;  %v394_v29 = vpop.xlane.xlu0 %393  ;;  %v545_v16 = vmul.f32 %v847_v28, %v1179_v18 }
 0x2bf   :  { %858 = vrcp.f32 %v664_v36 }
 0x2c0   :  { %860 = vrcp.f32 %v394_v29  ;;  %v849_v40 = vpop.eup %848  ;;  %556 = vst.msk [vmem:[%s1439_s3 + $0x20] sm:$0xff] %vm431_vm4, %v545_v16 }
 0x2c1   :  { %v851_v41 = vpop.eup %850  ;;  %v551_v42 = vmul.f32 %v849_v40, %v1191_v55 }
 0x2c2   :  { %v262_v25 = vpop.xlane.xlu0 %261  ;;  %v666_v17 = vmul.f32 %v851_v41, %v1189_v54 }
 0x2c3   :  { %862 = vrcp.f32 %v262_v25  ;;  %559 = vst.msk [vmem:[%s1439_s3 + $0x38] sm:$0xff] %vm431_vm4, %v551_v42 }
 0x2c4   :  { %681 = vst.msk [vmem:[%s1439_s3] sm:$0xff] %vm560_vm5, %v666_v17 }
 0x2c5   :  { %v853_v18 = vpop.eup %852 }
 0x2c6   :  { %v274_v43 = vpop.xlane.xlu0 %273  ;;  %v855_v32 = vpop.eup %854  ;;  %v674_v33 = vmul.f32 %v853_v18, %v1198_v61 }
 0x2c7   :  { %864 = vrcp.f32 %v274_v43  ;;  %v857_v55 = vpop.eup %856  ;;  %v543_v49 = vmul.f32 %v855_v32, %v1181_v47 }
 0x2c8   :  { %685 = vst.msk [vmem:[%s1439_s3 + $0x20] sm:$0xff] %vm560_vm5, %v674_v33  ;;  %v672_v44 = vmul.f32 %v857_v55, %v1200_v62 }
 0x2c9   :  { %v859_v45 = vpop.eup %858 }
 0x2ca   :  { %v861_v54 = vpop.eup %860  ;;  %v680_v39 = vmul.f32 %v859_v45, %v1209_v5  ;;  %v391_v46 = vpop.xlane.xlu0 %390 }
 0x2cb   :  { %v414_v48 = vmul.f32 %v861_v54, %v1161_v31  ;;  %866 = vrcp.f32 %v391_v46 }
 0x2cc   :  { %688 = vst.msk [vmem:[%s1439_s3 + $0x38] sm:$0xff] %vm560_vm5, %v680_v39 }
 0x2cd   :  { %v863_v61 = vpop.eup %862  ;;  %426 = vst.msk [vmem:[%s1439_s3 + $0x18] sm:$0xff] %vm302_vm3, %v414_v48 }
 0x2ce   :  { %555 = vst.msk [vmem:[%s1439_s3 + $0x18] sm:$0xff] %vm431_vm4, %v543_v49  ;;  %v283_v31 = vmul.f32 %v863_v61, %v1216_v10  ;;  %v403_v47 = vpop.xlane.xlu0 %402 }
 0x2cf   :  { %684 = vst.msk [vmem:[%s1439_s3 + $0x18] sm:$0xff] %vm560_vm5, %v672_v44  ;;  %868 = vrcp.f32 %v403_v47 }
 0x2d0   :  { %296 = vst.msk [vmem:[%s1439_s3 + $0x10] sm:$0xff] %vm172_vm1, %v283_v31 }
 0x2d1   :  { %v865_v62 = vpop.eup %864 }
 0x2d2   :  { %v291_v5 = vmul.f32 %v865_v62, %v1207_v3  ;;  %v520_v50 = vpop.xlane.xlu0 %519 }
 0x2d3   :  { %870 = vrcp.f32 %v520_v50 }
 0x2d4   :  { %300 = vst.msk [vmem:[%s1439_s3 + $0x30] sm:$0xff] %vm172_vm1, %v291_v5 }
 0x2d5   :  { %v867_v10 = vpop.eup %866 }
 0x2d6   :  { %v412_v51 = vmul.f32 %v867_v10, %v1226_v13  ;;  %v532_v53 = vpop.xlane.xlu0 %531 }
 0x2d7   :  { %872 = vrcp.f32 %v532_v53 }
 0x2d8   :  { %425 = vst.msk [vmem:[%s1439_s3 + $0x10] sm:$0xff] %vm302_vm3, %v412_v51 }
 0x2d9   :  { %v869_v52 = vpop.eup %868 }
 0x2da   :  { %v420_v3 = vmul.f32 %v869_v52, %v1218_v11  ;;  %v649_v56 = vpop.xlane.xlu0 %648 }
 0x2db   :  { %874 = vrcp.f32 %v649_v56 }
 0x2dc   :  { %429 = vst.msk [vmem:[%s1439_s3 + $0x30] sm:$0xff] %vm302_vm3, %v420_v3 }
 0x2dd   :  { %v871_v57 = vpop.eup %870 }
 0x2de   :  { %v541_v13 = vmul.f32 %v871_v57, %v1224_v12  ;;  %v661_v59 = vpop.xlane.xlu0 %660 }
 0x2df   :  { %876 = vrcp.f32 %v661_v59 }
 0x2e0   :  { %554 = vst.msk [vmem:[%s1439_s3 + $0x10] sm:$0xff] %vm431_vm4, %v541_v13 }
 0x2e1   :  { %v873_v60 = vpop.eup %872 }
 0x2e2   :  { %v549_v11 = vmul.f32 %v873_v60, %v1232_v34 }
 0x2e4   :  { %558 = vst.msk [vmem:[%s1439_s3 + $0x30] sm:$0xff] %vm431_vm4, %v549_v11 }
 0x2e5   :  { %v875_v58 = vpop.eup %874 }
 0x2e6   :  { %v670_v63 = vmul.f32 %v875_v58, %v1236_v14 }
 0x2e8   :  { %683 = vst.msk [vmem:[%s1439_s3 + $0x10] sm:$0xff] %vm560_vm5, %v670_v63 }
 0x2e9   :  { %v877_v12 = vpop.eup %876 }
 0x2ea   :  { %v678_v2 = vmul.f32 %v877_v12, %v1240_v19 }
 0x2ec   :  { %687 = vst.msk [vmem:[%s1439_s3 + $0x30] sm:$0xff] %vm560_vm5, %v678_v2 }

// kernel: spatial_cross_attention_forward.4
= control target key start
LH: loop header
LB: loop body
LE: loop exit
PB: predicated region body
PF: predicated region fallthrough
CT: control target
= control target key end

     0   :  { %vm65_vm0 = vcmask 261120   ;;  %s1017_s1 = inlined_call_operand.vmem [shape: f32[32,128], index: 1, kind: input, shape index: {}]   ;;  %s1018_s0 = inlined_call_operand.vmem [shape: f32[320,32], index: 0, kind: input, shape index: {}]   ;;  %s1019_s2 = inlined_call_operand.vmem [shape: f32[1,128], index: 2, kind: input, shape index: {}]   ;;  %s1020_s3 = inlined_call_operand.vmem [shape: f32[320,128], index: 3, kind: output, shape index: {}]  }
   0x1   :  { %v54_v0 = vld [vmem:[%s1017_s1] sm:$0xff]  ;;  %v55_v1 = vld [vmem:[%s1017_s1 + $0x8] sm:$0xff]  ;;  %v56_v2 = vld [vmem:[%s1017_s1 + $0x10] sm:$0xff] }
   0x2   :  { %v648_v3 = vpack.c.bf16 %v55_v1, %v54_v0  ;;  %v57_v4 = vld [vmem:[%s1017_s1 + $0x18] sm:$0xff]  ;;  %v14_v5 = vld [vmem:[%s1018_s0] sm:$0xff]  ;;  %v15_v8 = vld [vmem:[%s1018_s0 + $0x8] sm:$0xff] }
   0x3   :  { %v34_v6 = vld [vmem:[%s1018_s0 + $0xa0] sm:$0xff]  ;;  %v652_v7 = vpack.c.bf16 %v57_v4, %v56_v2  ;;  %588 = vmatprep.mubr.msk.f32.mxu0 %vm65_vm0, %v14_v5  ;;  %v35_v9 = vld [vmem:[%s1018_s0 + $0xa8] sm:$0xff]  ;;  %v16_v10 = vld [vmem:[%s1018_s0 + $0x10] sm:$0xff] }
   0x4   :  { %618 = vmatprep.mubr.msk.f32.mxu1 %vm65_vm0, %v34_v6  ;;  %649 = vmatprep.subr.bf16.mxu0 %v648_v3  ;;  %v36_v11 = vld [vmem:[%s1018_s0 + $0xb0] sm:$0xff]  ;;  %v17_v12 = vld [vmem:[%s1018_s0 + $0x18] sm:$0xff]  ;;  %v18_v14 = vld [vmem:[%s1018_s0 + $0x20] sm:$0xff] }
   0x5   :  { %656 = vmatprep.subr.bf16.mxu1 %v648_v3  ;;  %651 = vmatpush3.bf16.msra.mxu0 %v648_v3  ;;  %v37_v13 = vld [vmem:[%s1018_s0 + $0xb8] sm:$0xff]  ;;  %v38_v15 = vld [vmem:[%s1018_s0 + $0xc0] sm:$0xff]  ;;  %v19_v16 = vld [vmem:[%s1018_s0 + $0x28] sm:$0xff] }
   0x6   :  { %658 = vmatpush3.bf16.msra.mxu1 %v648_v3  ;;  %653 = vmatprep.subr.bf16.mxu0 %v652_v7  ;;  %v39_v17 = vld [vmem:[%s1018_s0 + $0xc8] sm:$0xff]  ;;  %v20_v18 = vld [vmem:[%s1018_s0 + $0x30] sm:$0xff]  ;;  %v21_v20 = vld [vmem:[%s1018_s0 + $0x38] sm:$0xff] }
   0x7   :  { %657 = vmatprep.subr.bf16.mxu1 %v652_v7  ;;  %v40_v19 = vld [vmem:[%s1018_s0 + $0xd0] sm:$0xff]  ;;  %v41_v21 = vld [vmem:[%s1018_s0 + $0xd8] sm:$0xff]  ;;  %v22_v22 = vld [vmem:[%s1018_s0 + $0x40] sm:$0xff] }
   0x8   :  { %v42_v23 = vld [vmem:[%s1018_s0 + $0xe0] sm:$0xff]  ;;  %v23_v24 = vld [vmem:[%s1018_s0 + $0x48] sm:$0xff]  ;;  %v24_v26 = vld [vmem:[%s1018_s0 + $0x50] sm:$0xff] }
   0x9   :  { %655 = vmatpush3.bf16.msra.mxu0 %v652_v7  ;;  %v43_v25 = vld [vmem:[%s1018_s0 + $0xe8] sm:$0xff]  ;;  %v44_v27 = vld [vmem:[%s1018_s0 + $0xf0] sm:$0xff]  ;;  %v25_v28 = vld [vmem:[%s1018_s0 + $0x58] sm:$0xff] }
   0xa   :  { %659 = vmatpush3.bf16.msra.mxu1 %v652_v7  ;;  %v45_v29 = vld [vmem:[%s1018_s0 + $0xf8] sm:$0xff]  ;;  %v26_v30 = vld [vmem:[%s1018_s0 + $0x60] sm:$0xff]  ;;  %v27_v32 = vld [vmem:[%s1018_s0 + $0x68] sm:$0xff] }
   0xb   :  { %v46_v31 = vld [vmem:[%s1018_s0 + $0x100] sm:$0xff]  ;;  %v47_v33 = vld [vmem:[%s1018_s0 + $0x108] sm:$0xff]  ;;  %v28_v34 = vld [vmem:[%s1018_s0 + $0x70] sm:$0xff] }
   0xc   :  { %589 = vmatmul.mubr.msk.f32.vlgmr.msra.gmra.mrb[0].mxu0 %vm65_vm0, %v15_v8  ;;  %v48_v35 = vld [vmem:[%s1018_s0 + $0x110] sm:$0xff]  ;;  %v29_v36 = vld [vmem:[%s1018_s0 + $0x78] sm:$0xff]  ;;  %v30_v38 = vld [vmem:[%s1018_s0 + $0x80] sm:$0xff] }
   0xd   :  { %619 = vmatmul.mubr.msk.f32.vlgmr.msra.gmra.mrb[0].mxu1 %vm65_vm0, %v35_v9  ;;  %591 = vmatprep.mubr.msk.f32.mxu0 %vm65_vm0, %v16_v10  ;;  %v49_v37 = vld [vmem:[%s1018_s0 + $0x118] sm:$0xff]  ;;  %v50_v39 = vld [vmem:[%s1018_s0 + $0x120] sm:$0xff]  ;;  %v31_v40 = vld [vmem:[%s1018_s0 + $0x88] sm:$0xff] }
   0xe   :  { %621 = vmatprep.mubr.msk.f32.mxu1 %vm65_vm0, %v36_v11  ;;  %v51_v41 = vld [vmem:[%s1018_s0 + $0x128] sm:$0xff]  ;;  %v32_v42 = vld [vmem:[%s1018_s0 + $0x90] sm:$0xff]  ;;  %v33_v44 = vld [vmem:[%s1018_s0 + $0x98] sm:$0xff] }
   0xf   :  { %v52_v43 = vld [vmem:[%s1018_s0 + $0x130] sm:$0xff]  ;;  %v53_v45 = vld [vmem:[%s1018_s0 + $0x138] sm:$0xff]  ;;  %v855_v46 = vld [vmem:[%s1019_s2] ss:$0 sm:$0xff] }
  0x10   :  { %592 = vmatmul.mubr.msk.f32.gmra.mrb[2].mxu0 %vm65_vm0, %v17_v12 }
  0x11   :  { %622 = vmatmul.mubr.msk.f32.gmra.mrb[2].mxu1 %vm65_vm0, %v37_v13  ;;  %594 = vmatprep.mubr.msk.f32.mxu0 %vm65_vm0, %v18_v14 }
  0x12   :  { %624 = vmatprep.mubr.msk.f32.mxu1 %vm65_vm0, %v38_v15 }
  0x14   :  { %595 = vmatmul.mubr.msk.f32.gmra.mrb[4].mxu0 %vm65_vm0, %v19_v16 }
  0x15   :  { %625 = vmatmul.mubr.msk.f32.gmra.mrb[4].mxu1 %vm65_vm0, %v39_v17  ;;  %597 = vmatprep.mubr.msk.f32.mxu0 %vm65_vm0, %v20_v18 }
  0x16   :  { %627 = vmatprep.mubr.msk.f32.mxu1 %vm65_vm0, %v40_v19 }
  0x18   :  { %598 = vmatmul.mubr.msk.f32.gmra.mrb[6].mxu0 %vm65_vm0, %v21_v20 }
  0x19   :  { %628 = vmatmul.mubr.msk.f32.gmra.mrb[6].mxu1 %vm65_vm0, %v41_v21  ;;  %600 = vmatprep.mubr.msk.f32.mxu0 %vm65_vm0, %v22_v22 }
  0x1a   :  { %630 = vmatprep.mubr.msk.f32.mxu1 %vm65_vm0, %v42_v23 }
  0x1c   :  { %601 = vmatmul.mubr.msk.f32.gmra.mrb[8].mxu0 %vm65_vm0, %v23_v24 }
  0x1d   :  { %631 = vmatmul.mubr.msk.f32.gmra.mrb[8].mxu1 %vm65_vm0, %v43_v25  ;;  %603 = vmatprep.mubr.msk.f32.mxu0 %vm65_vm0, %v24_v26 }
  0x1e   :  { %633 = vmatprep.mubr.msk.f32.mxu1 %vm65_vm0, %v44_v27 }
  0x20   :  { %604 = vmatmul.mubr.msk.f32.gmra.mrb[10].mxu0 %vm65_vm0, %v25_v28 }
  0x21   :  { %634 = vmatmul.mubr.msk.f32.gmra.mrb[10].mxu1 %vm65_vm0, %v45_v29  ;;  %606 = vmatprep.mubr.msk.f32.mxu0 %vm65_vm0, %v26_v30 }
  0x22   :  { %636 = vmatprep.mubr.msk.f32.mxu1 %vm65_vm0, %v46_v31 }
  0x24   :  { %607 = vmatmul.mubr.msk.f32.gmra.mrb[12].mxu0 %vm65_vm0, %v27_v32 }
  0x25   :  { %637 = vmatmul.mubr.msk.f32.gmra.mrb[12].mxu1 %vm65_vm0, %v47_v33  ;;  %609 = vmatprep.mubr.msk.f32.mxu0 %vm65_vm0, %v28_v34 }
  0x26   :  { %639 = vmatprep.mubr.msk.f32.mxu1 %vm65_vm0, %v48_v35 }
  0x28   :  { %610 = vmatmul.mubr.msk.f32.gmra.mrb[14].mxu0 %vm65_vm0, %v29_v36 }
  0x29   :  { %640 = vmatmul.mubr.msk.f32.gmra.mrb[14].mxu1 %vm65_vm0, %v49_v37  ;;  %612 = vmatprep.mubr.msk.f32.mxu0 %vm65_vm0, %v30_v38 }
  0x2a   :  { %642 = vmatprep.mubr.msk.f32.mxu1 %vm65_vm0, %v50_v39 }
  0x2c   :  { %613 = vmatmul.mubr.msk.f32.gmra.mrb[16].mxu0 %vm65_vm0, %v31_v40 }
  0x2d   :  { %643 = vmatmul.mubr.msk.f32.gmra.mrb[16].mxu1 %vm65_vm0, %v51_v41  ;;  %615 = vmatprep.mubr.msk.f32.mxu0 %vm65_vm0, %v32_v42 }
  0x2e   :  { %645 = vmatprep.mubr.msk.f32.mxu1 %vm65_vm0, %v52_v43 }
  0x30   :  { %616 = vmatmul.mubr.msk.f32.gmra.mrb[18].mxu0 %vm65_vm0, %v33_v44 }
  0x31   :  { %646 = vmatmul.mubr.msk.f32.gmra.mrb[18].mxu1 %vm65_vm0, %v53_v45 }
  0xdf   :  { %v590_v47 = vpop.f32.mrb[0].mxu0 }
  0xe0   :  { %v620_v48 = vpop.f32.mrb[0].mxu1  ;;  %v258_v49 = vadd.f32 %v590_v47, %v855_v46  ;;  %v252_v51 = vpop.f32.mrb[1].mxu0 }
  0xe1   :  { %v358_v50 = vadd.f32 %v620_v48, %v855_v46  ;;  %v352_v52 = vpop.f32.mrb[1].mxu1  ;;  %v253_v53 = vadd.f32 %v855_v46, %v252_v51 }
  0xe2   :  { %v353_v54 = vadd.f32 %v855_v46, %v352_v52  ;;  %452 = vst [vmem:[%s1020_s3 + $0x8] sm:$0xff] %v258_v49 }
  0xe3   :  { %472 = vst [vmem:[%s1020_s3 + $0xa8] sm:$0xff] %v358_v50  ;;  %451 = vst [vmem:[%s1020_s3] sm:$0xff] %v253_v53  ;;  %v593_v55 = vpop.f32.mrb[2].mxu0 }
  0xe4   :  { %471 = vst [vmem:[%s1020_s3 + $0xa0] sm:$0xff] %v353_v54  ;;  %v623_v56 = vpop.f32.mrb[2].mxu1  ;;  %v268_v57 = vadd.f32 %v593_v55, %v855_v46  ;;  %v262_v59 = vpop.f32.mrb[3].mxu0 }
  0xe5   :  { %v368_v58 = vadd.f32 %v623_v56, %v855_v46  ;;  %v362_v60 = vpop.f32.mrb[3].mxu1  ;;  %v263_v61 = vadd.f32 %v855_v46, %v262_v59 }
  0xe6   :  { %v363_v62 = vadd.f32 %v855_v46, %v362_v60  ;;  %454 = vst [vmem:[%s1020_s3 + $0x18] sm:$0xff] %v268_v57 }
  0xe7   :  { %474 = vst [vmem:[%s1020_s3 + $0xb8] sm:$0xff] %v368_v58  ;;  %453 = vst [vmem:[%s1020_s3 + $0x10] sm:$0xff] %v263_v61  ;;  %v596_v63 = vpop.f32.mrb[4].mxu0 }
  0xe8   :  { %473 = vst [vmem:[%s1020_s3 + $0xb0] sm:$0xff] %v363_v62  ;;  %v626_v0 = vpop.f32.mrb[4].mxu1  ;;  %v278_v1 = vadd.f32 %v596_v63, %v855_v46  ;;  %v272_v3 = vpop.f32.mrb[5].mxu0 }
  0xe9   :  { %v378_v2 = vadd.f32 %v626_v0, %v855_v46  ;;  %v372_v4 = vpop.f32.mrb[5].mxu1  ;;  %v273_v5 = vadd.f32 %v855_v46, %v272_v3 }
  0xea   :  { %v373_v6 = vadd.f32 %v855_v46, %v372_v4  ;;  %456 = vst [vmem:[%s1020_s3 + $0x28] sm:$0xff] %v278_v1 }
  0xeb   :  { %476 = vst [vmem:[%s1020_s3 + $0xc8] sm:$0xff] %v378_v2  ;;  %455 = vst [vmem:[%s1020_s3 + $0x20] sm:$0xff] %v273_v5  ;;  %v599_v7 = vpop.f32.mrb[6].mxu0 }
  0xec   :  { %475 = vst [vmem:[%s1020_s3 + $0xc0] sm:$0xff] %v373_v6  ;;  %v629_v8 = vpop.f32.mrb[6].mxu1  ;;  %v288_v9 = vadd.f32 %v599_v7, %v855_v46  ;;  %v282_v11 = vpop.f32.mrb[7].mxu0 }
  0xed   :  { %v388_v10 = vadd.f32 %v629_v8, %v855_v46  ;;  %v382_v12 = vpop.f32.mrb[7].mxu1  ;;  %v283_v13 = vadd.f32 %v855_v46, %v282_v11 }
  0xee   :  { %v383_v14 = vadd.f32 %v855_v46, %v382_v12  ;;  %458 = vst [vmem:[%s1020_s3 + $0x38] sm:$0xff] %v288_v9 }
  0xef   :  { %478 = vst [vmem:[%s1020_s3 + $0xd8] sm:$0xff] %v388_v10  ;;  %457 = vst [vmem:[%s1020_s3 + $0x30] sm:$0xff] %v283_v13  ;;  %v602_v15 = vpop.f32.mrb[8].mxu0 }
  0xf0   :  { %477 = vst [vmem:[%s1020_s3 + $0xd0] sm:$0xff] %v383_v14  ;;  %v632_v16 = vpop.f32.mrb[8].mxu1  ;;  %v298_v17 = vadd.f32 %v602_v15, %v855_v46  ;;  %v292_v19 = vpop.f32.mrb[9].mxu0 }
  0xf1   :  { %v398_v18 = vadd.f32 %v632_v16, %v855_v46  ;;  %v392_v20 = vpop.f32.mrb[9].mxu1  ;;  %v293_v21 = vadd.f32 %v855_v46, %v292_v19 }
  0xf2   :  { %v393_v22 = vadd.f32 %v855_v46, %v392_v20  ;;  %460 = vst [vmem:[%s1020_s3 + $0x48] sm:$0xff] %v298_v17 }
  0xf3   :  { %480 = vst [vmem:[%s1020_s3 + $0xe8] sm:$0xff] %v398_v18  ;;  %459 = vst [vmem:[%s1020_s3 + $0x40] sm:$0xff] %v293_v21  ;;  %v605_v23 = vpop.f32.mrb[10].mxu0 }
  0xf4   :  { %479 = vst [vmem:[%s1020_s3 + $0xe0] sm:$0xff] %v393_v22  ;;  %v635_v24 = vpop.f32.mrb[10].mxu1  ;;  %v308_v25 = vadd.f32 %v605_v23, %v855_v46  ;;  %v302_v27 = vpop.f32.mrb[11].mxu0 }
  0xf5   :  { %v408_v26 = vadd.f32 %v635_v24, %v855_v46  ;;  %v402_v28 = vpop.f32.mrb[11].mxu1  ;;  %v303_v29 = vadd.f32 %v855_v46, %v302_v27 }
  0xf6   :  { %v403_v30 = vadd.f32 %v855_v46, %v402_v28  ;;  %462 = vst [vmem:[%s1020_s3 + $0x58] sm:$0xff] %v308_v25 }
  0xf7   :  { %482 = vst [vmem:[%s1020_s3 + $0xf8] sm:$0xff] %v408_v26  ;;  %461 = vst [vmem:[%s1020_s3 + $0x50] sm:$0xff] %v303_v29  ;;  %v608_v31 = vpop.f32.mrb[12].mxu0 }
  0xf8   :  { %481 = vst [vmem:[%s1020_s3 + $0xf0] sm:$0xff] %v403_v30  ;;  %v638_v32 = vpop.f32.mrb[12].mxu1  ;;  %v318_v33 = vadd.f32 %v608_v31, %v855_v46  ;;  %v312_v35 = vpop.f32.mrb[13].mxu0 }
  0xf9   :  { %v418_v34 = vadd.f32 %v638_v32, %v855_v46  ;;  %v412_v36 = vpop.f32.mrb[13].mxu1  ;;  %v313_v37 = vadd.f32 %v855_v46, %v312_v35 }
  0xfa   :  { %v413_v38 = vadd.f32 %v855_v46, %v412_v36  ;;  %464 = vst [vmem:[%s1020_s3 + $0x68] sm:$0xff] %v318_v33 }
  0xfb   :  { %484 = vst [vmem:[%s1020_s3 + $0x108] sm:$0xff] %v418_v34  ;;  %463 = vst [vmem:[%s1020_s3 + $0x60] sm:$0xff] %v313_v37  ;;  %v611_v39 = vpop.f32.mrb[14].mxu0 }
  0xfc   :  { %483 = vst [vmem:[%s1020_s3 + $0x100] sm:$0xff] %v413_v38  ;;  %v641_v40 = vpop.f32.mrb[14].mxu1  ;;  %v328_v41 = vadd.f32 %v611_v39, %v855_v46  ;;  %v322_v43 = vpop.f32.mrb[15].mxu0 }
  0xfd   :  { %v428_v42 = vadd.f32 %v641_v40, %v855_v46  ;;  %v422_v44 = vpop.f32.mrb[15].mxu1  ;;  %v323_v45 = vadd.f32 %v855_v46, %v322_v43 }
  0xfe   :  { %v423_v47 = vadd.f32 %v855_v46, %v422_v44  ;;  %466 = vst [vmem:[%s1020_s3 + $0x78] sm:$0xff] %v328_v41 }
  0xff   :  { %486 = vst [vmem:[%s1020_s3 + $0x118] sm:$0xff] %v428_v42  ;;  %465 = vst [vmem:[%s1020_s3 + $0x70] sm:$0xff] %v323_v45  ;;  %v614_v48 = vpop.f32.mrb[16].mxu0 }
 0x100   :  { %485 = vst [vmem:[%s1020_s3 + $0x110] sm:$0xff] %v423_v47  ;;  %v644_v49 = vpop.f32.mrb[16].mxu1  ;;  %v338_v50 = vadd.f32 %v614_v48, %v855_v46  ;;  %v332_v52 = vpop.f32.mrb[17].mxu0 }
 0x101   :  { %v438_v51 = vadd.f32 %v644_v49, %v855_v46  ;;  %v432_v53 = vpop.f32.mrb[17].mxu1  ;;  %v333_v54 = vadd.f32 %v855_v46, %v332_v52 }
 0x102   :  { %v433_v55 = vadd.f32 %v855_v46, %v432_v53  ;;  %468 = vst [vmem:[%s1020_s3 + $0x88] sm:$0xff] %v338_v50 }
 0x103   :  { %488 = vst [vmem:[%s1020_s3 + $0x128] sm:$0xff] %v438_v51  ;;  %467 = vst [vmem:[%s1020_s3 + $0x80] sm:$0xff] %v333_v54  ;;  %v617_v56 = vpop.f32.mrb[18].mxu0 }
 0x104   :  { %487 = vst [vmem:[%s1020_s3 + $0x120] sm:$0xff] %v433_v55  ;;  %v647_v57 = vpop.f32.mrb[18].mxu1  ;;  %v348_v58 = vadd.f32 %v617_v56, %v855_v46  ;;  %v342_v60 = vpop.f32.mrb[19].mxu0 }
 0x105   :  { %v448_v59 = vadd.f32 %v647_v57, %v855_v46  ;;  %v442_v61 = vpop.f32.mrb[19].mxu1  ;;  %v343_v62 = vadd.f32 %v855_v46, %v342_v60 }
 0x106   :  { %v443_v63 = vadd.f32 %v855_v46, %v442_v61  ;;  %470 = vst [vmem:[%s1020_s3 + $0x98] sm:$0xff] %v348_v58 }
 0x107   :  { %490 = vst [vmem:[%s1020_s3 + $0x138] sm:$0xff] %v448_v59  ;;  %469 = vst [vmem:[%s1020_s3 + $0x90] sm:$0xff] %v343_v62 }
 0x108   :  { %489 = vst [vmem:[%s1020_s3 + $0x130] sm:$0xff] %v443_v63 }

// kernel: spatial_cross_attention_forward.7
= control target key start
LH: loop header
LB: loop body
LE: loop exit
PB: predicated region body
PF: predicated region fallthrough
CT: control target
= control target key end

     0   :  { %vm29_vm0 = vcmask 261120   ;;  %s237_s1 = inlined_call_operand.vmem [shape: f32[32,128], index: 1, kind: input, shape index: {}]   ;;  %s238_s0 = inlined_call_operand.vmem [shape: f32[32,32], index: 0, kind: input, shape index: {}]   ;;  %s239_s2 = inlined_call_operand.vmem [shape: f32[1,128], index: 2, kind: input, shape index: {}]   ;;  %s240_s3 = inlined_call_operand.vmem [shape: f32[32,128], index: 3, kind: output, shape index: {}]  }
   0x1   :  { %v18_v0 = vld [vmem:[%s237_s1] sm:$0xff]  ;;  %v19_v1 = vld [vmem:[%s237_s1 + $0x8] sm:$0xff]  ;;  %v20_v2 = vld [vmem:[%s237_s1 + $0x10] sm:$0xff] }
   0x2   :  { %v162_v3 = vpack.c.bf16 %v19_v1, %v18_v0  ;;  %v21_v4 = vld [vmem:[%s237_s1 + $0x18] sm:$0xff]  ;;  %v14_v5 = vld [vmem:[%s238_s0] sm:$0xff]  ;;  %v16_v6 = vld [vmem:[%s238_s0 + $0x10] sm:$0xff] }
   0x3   :  { %v166_v7 = vpack.c.bf16 %v21_v4, %v20_v2  ;;  %156 = vmatprep.mubr.msk.f32.mxu0 %vm29_vm0, %v14_v5  ;;  %159 = vmatprep.mubr.msk.f32.mxu1 %vm29_vm0, %v16_v6  ;;  %v15_v8 = vld [vmem:[%s238_s0 + $0x8] sm:$0xff]  ;;  %v17_v9 = vld [vmem:[%s238_s0 + $0x18] sm:$0xff]  ;;  %v135_v10 = vld [vmem:[%s239_s2] ss:$0 sm:$0xff] }
   0x4   :  { %163 = vmatprep.subr.bf16.mxu0 %v162_v3  ;;  %170 = vmatprep.subr.bf16.mxu1 %v162_v3 }
   0x5   :  { %165 = vmatpush3.bf16.msra.mxu0 %v162_v3  ;;  %172 = vmatpush3.bf16.msra.mxu1 %v162_v3 }
   0x6   :  { %167 = vmatprep.subr.bf16.mxu0 %v166_v7  ;;  %171 = vmatprep.subr.bf16.mxu1 %v166_v7 }
   0x9   :  { %169 = vmatpush3.bf16.msra.mxu0 %v166_v7  ;;  %173 = vmatpush3.bf16.msra.mxu1 %v166_v7 }
   0xc   :  { %157 = vmatmul.mubr.msk.f32.vlgmr.msra.gmra.mrb[0].mxu0 %vm29_vm0, %v15_v8  ;;  %160 = vmatmul.mubr.msk.f32.vlgmr.msra.gmra.mrb[0].mxu1 %vm29_vm0, %v17_v9 }
  0xdf   :  { %v158_v11 = vpop.f32.mrb[0].mxu0  ;;  %v161_v12 = vpop.f32.mrb[0].mxu1 }
  0xe0   :  { %v114_v13 = vadd.f32 %v158_v11, %v135_v10  ;;  %v124_v14 = vadd.f32 %v161_v12, %v135_v10  ;;  %v108_v15 = vpop.f32.mrb[1].mxu0  ;;  %v118_v16 = vpop.f32.mrb[1].mxu1 }
  0xe1   :  { %v109_v17 = vadd.f32 %v135_v10, %v108_v15  ;;  %v119_v18 = vadd.f32 %v135_v10, %v118_v16 }
  0xe2   :  { %128 = vst [vmem:[%s240_s3 + $0x8] sm:$0xff] %v114_v13  ;;  %130 = vst [vmem:[%s240_s3 + $0x18] sm:$0xff] %v124_v14 }
  0xe3   :  { %127 = vst [vmem:[%s240_s3] sm:$0xff] %v109_v17  ;;  %129 = vst [vmem:[%s240_s3 + $0x10] sm:$0xff] %v119_v18 }

// kernel: spatial_cross_attention_forward.6
= control target key start
LH: loop header
LB: loop body
LE: loop exit
PB: predicated region body
PF: predicated region fallthrough
CT: control target
= control target key end

     0   :  { %8 = vsyncpa [#allocation4], 0  ;;  %s4549_s0 = inlined_call_operand.vmem [shape: s32[16,16,16], index: 0, kind: input, shape index: {}]   ;;  %s4550_s1 = inlined_call_operand.vmem [shape: f32[16,80,8], index: 1, kind: input, shape index: {}]   ;;  %s4551_s2 = inlined_call_operand.vmem [shape: f32[16,16,32], index: 2, kind: input, shape index: {}]   ;;  %s4552_s3 = inlined_call_operand.vmem [shape: f32[16,16,8], index: 3, kind: output, shape index: {}]  }
   0x1   :  { %10 = vsyncpa [#allocation4 + $0x1], 0  ;;  %s3563_s12 = smov 0   ;;  %s3565_s13 = smov 0  }
   0x2   :  { %s3567_s14 = smov 0   ;;  %s3569_s15 = smov 0  }
   0x3   :  { %s3571_s16 = smov 0   ;;  %s3573_s17 = smov 0  }
   0x4 LB: > { %s3261_s18 = sadd.s32 4294967295, %s3503_s17   ;;  %s28_s19 = sadd.s32 1, %s3499_s16  ;;  %s3503_s17 = sphi %s3573_s17, %s16_s17   ;;  %s3499_s16 = sphi %s3571_s16, %s4560_s16   ;;  %s3495_s15 = sphi %s3569_s15, %s4559_s15   ;;  %s3491_s14 = sphi %s3567_s14, %s4558_s14   ;;  %s3487_s13 = sphi %s3565_s13, %s4557_s13   ;;  %s3483_s12 = sphi %s3563_s12, %s4556_s12  }
   0x5   : > { %p30_p0 = scmp.ge.s32.totalorder %s28_s19, 16  ;;  %s37_s20 = sadd.s32 1, %s3491_s14 }
   0x6   : > { %p44_p1 = scmp.ne.s32.totalorder %s3491_s14, %s3487_s13  ;;  %p45_p2 = scmp.eq.s32.totalorder %s3503_s17, 0 }
   0x7   : > { %s4562_s19 = smov (%p30_p0, %s28_s19), 0  ;;  %p50_p4 = scmp.ne.s32.totalorder %s3487_s13, %s3483_s12 }
   0x8   : > { %p3599_p3 = por %p45_p2, %p44_p1  ;;  %s32_s22 = ssub.s32 %s3499_s16, %s4562_s19 }
   0x9   : > { %p51_p5 = scmp.eq.s32.totalorder %s3261_s18, 0  ;;  %p35_p6 = scmp.eq.s32.totalorder %s32_s22, 0 }
   0xa   : > { %p3289_p8 = scmp.lt.s32.totalorder %s3503_s17, 16  ;;  %s156_s25 = sand.u32 1, %s3491_s14  }
   0xb   : > { %p3606_p7 = por %p51_p5, %p50_p4  ;;  %s3279_s26 = sshll.u32 %s3499_s16, 4 }
   0xc   : > { %s3612_s24 = scalar_select %p35_p6, %s3491_s14, %s37_s20  }
   0xd   : > { %s3265_s27 = sshll.u32 %s156_s25, 11  ;;  %s168_s30 = scalar_lea.vmem %s4549_s0, %s3279_s26 }
   0xe   : > { %s169_s4 = sshll.u32 %s168_s30, 4  ;;  %p3621_p9 = pnand %p3289_p8, %p3599_p3  ;;  %s170_s4 = int_to_ptr.vmem [resolvable:$true] %s169_s4 }
   0xf   : > { %s160_s6 = scalar_lea.smem [#allocation3], %s3265_s27  ;;  %s157_s7 = scalar_lea.sflag [#allocation4], %s156_s25 }
  0x10   : > { %s3434_s8 = scalar_lea.vmem %s170_s4, 256  ;;  %p3436_p11 = pneg %p3621_p9 }
  0x11   : > { %p3435_p10 = scmp.ne.s32.totalorder %s170_s4, %s3434_s8  ;;  %s3439_s11 = sshll.u32 %s4549_s0, 4  ;;  %s3440_s11 = int_to_ptr.vmem [resolvable:$false] %s3439_s11 }
  0x12   : > { %s3441_s12 = scalar_lea.vmem %s3440_s11, 4096  ;;  %p3442_p0 = scmp.lt.s32.totalorder %s170_s4, %s3440_s11 }
  0x13   : > { %p3437_p12 = pnand %p3436_p11, %p3435_p10  ;;  %p3443_p1 = scmp.lt.s32.totalorder %s3441_s12, %s3434_s8 }
  0x15   : > { %p3438_p13 = pneg %p3437_p12  ;;  %p3444_p2 = por %p3443_p1, %p3442_p0 }
  0x17   : > { %p3445_p3 = pnand %p3444_p2, %p3438_p13 }
  0x19   : > { %3448 = shalt.err (!%p3445_p3)
}
  0x1a   : > { %s3509_s18 = smov 128   ;;  %s3510_s20 = smov 8  }
  0x1b   : > { %3288 = dma.vmem_to_smem (!%p3621_p9), %s170_s4, 256, %s160_s6, %s157_s7, %s3509_s18, %s3509_s18, %s3510_s20  }
  0x1c   : > { %p3268_p4 = scmp.ge.s32.totalorder %s3503_s17, 1  ;;  %p198_p5 = scmp.lt.s32.totalorder %s3503_s17, 17 }
  0x1e   : > { %p199_p6 = pnand %p3268_p4, %p198_p5 }
  0x1f   : > { %s204_s21 = sand.u32 (!%p199_p6), 1, %s3487_s13  }
  0x20   : > { %202 = sbr.rel (%p199_p6) target bundleno = 580 (0x244), region = 32  ;;  %s3269_s22 = sshll.u32 (!%p199_p6), %s204_s21, 11 }
  0x21   : > { %s205_s25 = scalar_lea.sflag (!%p199_p6), [#allocation4], %s204_s21  ;;  %s3635_s26 = scalar_lea.smem (!%p199_p6), [#allocation3], %s3269_s22 }
  0x27   : > { %3478 = dma.done.wait (%p3606_p7), %s205_s25, 256  }
  0x28   : > { %3480 = vsyncadd (%p3606_p7), %s205_s25, 4294967040 }
  0x29   : > { %213 = sfence }
  0x2a   : > { %p251_p8 = scmp.lt.s32.totalorder %s3495_s15, 15  ;;  %s3658_s10 = smov 0  }
  0x2c   : > { %s4564_s15 = smov (!%p251_p8, %s3495_s15), 15 }
  0x2d   : > { %s3282_s27 = smul.u32 80, %s4564_s15  ;;  %s3280_s28 = sshll.u32 %s4564_s15, 4 }
  0x2e   : > { %s3646_s4 = scalar_lea.vmem %s4551_s2, %s3280_s28  ;;  %s3651_s7 = scalar_lea.vmem %s4552_s3, %s3280_s28 }
  0x2f   : > { %s3656_s9 = scalar_lea.vmem %s4550_s1, %s3282_s27 }
  0x30 LB: >> { %s3664_s15 = sshll.u32 %s3507_s10, 7  ;;  %s3276_s11 = sshll.u32 %s3507_s10, 5  ;;  %vm288_vm0 = vcmask 58368   ;;  %s3507_s10 = sphi %s3658_s10, %s281_s10  }
  0x31   : >> { %s283_s12 = sld [smem:[%s3635_s26 + %s3664_s15]]  ;;  %s290_s18 = sadd.s32 1, %s3664_s15 }
  0x32   : >> { %s295_s20 = sadd.s32 2, %s3664_s15  ;;  %s291_s21 = sld [smem:[%s3635_s26 + %s290_s18]] }
  0x33   : >> { %s296_s22 = sld [smem:[%s3635_s26 + %s295_s20]]  ;;  %s300_s25 = sadd.s32 3, %s3664_s15 }
  0x34   : >> { %s305_s27 = sadd.s32 4, %s3664_s15  ;;  %s301_s28 = sld [smem:[%s3635_s26 + %s300_s25]] }
  0x35   : >> { %s306_s29 = sld [smem:[%s3635_s26 + %s305_s27]]  ;;  %s310_s30 = sadd.s32 5, %s3664_s15 }
  0x36   : >> { %s315_s5 = sadd.s32 6, %s3664_s15  ;;  %s311_s8 = sld [smem:[%s3635_s26 + %s310_s30]] }
  0x37   : >> { %s284_s6 = scalar_lea.vmem %s3656_s9, %s283_s12  ;;  %s316_s23 = sld [smem:[%s3635_s26 + %s315_s5]] }
  0x38   : >> { %v285_v0 = vld [vmem:[%s284_s6] sm:$0x3]  ;;  %s320_s18 = sadd.s32 7, %s3664_s15  ;;  %s3683_s20 = scalar_lea.vmem [#allocation2], %s3276_s11 }
  0x39   : >> { %289 = vst.msk [vmem:[%s3683_s20] sm:$0x3] %vm288_vm0, %v285_v0  ;;  %s292_s25 = scalar_lea.vmem %s3656_s9, %s291_s21  ;;  %s297_s27 = scalar_lea.vmem %s3656_s9, %s296_s22 }
  0x3a   : >> { %v293_v1 = vld [vmem:[%s292_s25] sm:$0x3]  ;;  %s321_s12 = sld [smem:[%s3635_s26 + %s320_s18]]  ;;  %s325_s30 = sadd.s32 8, %s3664_s15 }
  0x3b   : >> { %v298_v2 = vld [vmem:[%s297_s27] sm:$0x3]  ;;  %294 = vst.msk [vmem:[%s3683_s20 + $0x2] sm:$0x3] %vm288_vm0, %v293_v1  ;;  %s302_s11 = scalar_lea.vmem %s3656_s9, %s301_s28  ;;  %s307_s5 = scalar_lea.vmem %s3656_s9, %s306_s29 }
  0x3c   : >> { %299 = vst.msk [vmem:[%s3683_s20 + $0x4] sm:$0x3] %vm288_vm0, %v298_v2  ;;  %v303_v3 = vld [vmem:[%s302_s11] sm:$0x3]  ;;  %s326_s21 = sld [smem:[%s3635_s26 + %s325_s30]]  ;;  %s330_s22 = sadd.s32 9, %s3664_s15 }
  0x3d   : >> { %v308_v4 = vld [vmem:[%s307_s5] sm:$0x3]  ;;  %304 = vst.msk [vmem:[%s3683_s20 + $0x6] sm:$0x3] %vm288_vm0, %v303_v3  ;;  %s312_s6 = scalar_lea.vmem %s3656_s9, %s311_s8  ;;  %s331_s18 = sld [smem:[%s3635_s26 + %s330_s22]] }
  0x3e   : >> { %309 = vst.msk [vmem:[%s3683_s20 + $0x8] sm:$0x3] %vm288_vm0, %v308_v4  ;;  %v313_v5 = vld [vmem:[%s312_s6] sm:$0x3]  ;;  %s317_s28 = scalar_lea.vmem %s3656_s9, %s316_s23  ;;  %s335_s29 = sadd.s32 10, %s3664_s15 }
  0x3f   : >> { %314 = vst.msk [vmem:[%s3683_s20 + $0xa] sm:$0x3] %vm288_vm0, %v313_v5  ;;  %v318_v6 = vld [vmem:[%s317_s28] sm:$0x3]  ;;  %s336_s25 = sld [smem:[%s3635_s26 + %s335_s29]]  ;;  %s340_s27 = sadd.s32 11, %s3664_s15 }
  0x40   : >> { %319 = vst.msk [vmem:[%s3683_s20 + $0xc] sm:$0x3] %vm288_vm0, %v318_v6  ;;  %s322_s8 = scalar_lea.vmem %s3656_s9, %s321_s12  ;;  %s341_s30 = sld [smem:[%s3635_s26 + %s340_s27]] }
  0x41   : >> { %v323_v7 = vld [vmem:[%s322_s8] sm:$0x3]  ;;  %s345_s23 = sadd.s32 12, %s3664_s15  ;;  %s350_s11 = sadd.s32 13, %s3664_s15 }
  0x42   : >> { %324 = vst.msk [vmem:[%s3683_s20 + $0xe] sm:$0x3] %vm288_vm0, %v323_v7  ;;  %s327_s5 = scalar_lea.vmem %s3656_s9, %s326_s21  ;;  %s346_s22 = sld [smem:[%s3635_s26 + %s345_s23]] }
  0x43   : >> { %v328_v8 = vld [vmem:[%s327_s5] sm:$0x3]  ;;  %s332_s6 = scalar_lea.vmem %s3656_s9, %s331_s18  ;;  %s351_s28 = sld [smem:[%s3635_s26 + %s350_s11]] }
  0x44   : >> { %329 = vst.msk [vmem:[%s3683_s20 + $0x10] sm:$0x3] %vm288_vm0, %v328_v8  ;;  %v333_v9 = vld [vmem:[%s332_s6] sm:$0x3]  ;;  %s355_s12 = sadd.s32 14, %s3664_s15  ;;  %s360_s29 = sadd.s32 15, %s3664_s15 }
  0x45   : >> { %334 = vst.msk [vmem:[%s3683_s20 + $0x12] sm:$0x3] %vm288_vm0, %v333_v9  ;;  %s337_s27 = scalar_lea.vmem %s3656_s9, %s336_s25  ;;  %s356_s21 = sld [smem:[%s3635_s26 + %s355_s12]] }
  0x46   : >> { %v338_v10 = vld [vmem:[%s337_s27] sm:$0x3]  ;;  %s342_s8 = scalar_lea.vmem %s3656_s9, %s341_s30  ;;  %s361_s18 = sld [smem:[%s3635_s26 + %s360_s29]] }
  0x47   : >> { %339 = vst.msk [vmem:[%s3683_s20 + $0x14] sm:$0x3] %vm288_vm0, %v338_v10  ;;  %v343_v11 = vld [vmem:[%s342_s8] sm:$0x3]  ;;  %s281_s10 = sadd.s32 1, %s3507_s10  }
  0x48   : >> { %344 = vst.msk [vmem:[%s3683_s20 + $0x16] sm:$0x3] %vm288_vm0, %v343_v11  ;;  %s347_s23 = scalar_lea.vmem %s3656_s9, %s346_s22  ;;  %p278_p7 = scmp.ge.s32.totalorder %s281_s10, 16  }
  0x49   : >> { %v348_v12 = vld [vmem:[%s347_s23] sm:$0x3]  ;;  %s352_s11 = scalar_lea.vmem %s3656_s9, %s351_s28  ;;  %v3511_v17 = vmov (%p278_p7), 1   ;;  %v3512_v18 = vmov (%p278_p7), 0   ;;  %v3758_v19 = vld [vmem:[%s3646_s4 + $0x8] sm:$0xff] (%p278_p7)  ;;  %v3513_v20 = vmov (%p278_p7), 2  }
  0x4a   : >> { %349 = vst.msk [vmem:[%s3683_s20 + $0x18] sm:$0x3] %vm288_vm0, %v348_v12  ;;  %v353_v13 = vld [vmem:[%s352_s11] sm:$0x3]  ;;  %280 = sbr.rel (!%p278_p7) target bundleno = 48 (0x30), region = 102  ;;  %3381 = vset.pattern.permute.xlu1 (%p278_p7), %v3511_v17  ;;  %3380 = vset.pattern.permute.xlu0 (%p278_p7), %v3512_v18  ;;  %v3514_v21 = vmov (%p278_p7), 3  }
  0x4b   : >> { %354 = vst.msk [vmem:[%s3683_s20 + $0x1a] sm:$0x3] %vm288_vm0, %v353_v13  ;;  %s357_s15 = scalar_lea.vmem %s3656_s9, %s356_s21  ;;  %v3753_v16 = vld [vmem:[%s3646_s4] sm:$0xff] (%p278_p7)  ;;  %v3515_v22 = vmov (%p278_p7), 4   ;;  %v3516_v23 = vmov (%p278_p7), 5   ;;  %v3517_v24 = vmov (%p278_p7), 6  }
  0x4c   : >> { %v358_v14 = vld [vmem:[%s357_s15] sm:$0x3]  ;;  %s362_s25 = scalar_lea.vmem %s3656_s9, %s361_s18  ;;  %470 = vperm.xlu1 (%p278_p7), %3381, %v3753_v16   ;;  %385 = vperm.xlu0 (%p278_p7), %3380, %v3753_v16   ;;  %v3518_v25 = vmov (%p278_p7), 8   ;;  %v3519_v26 = vmov (%p278_p7), 9   ;;  %v3520_v27 = vmov (%p278_p7), 7   ;;  %v3521_v28 = vmov (%p278_p7), 11  }
  0x4d   : >> { %359 = vst.msk [vmem:[%s3683_s20 + $0x1c] sm:$0x3] %vm288_vm0, %v358_v14  ;;  %v363_v15 = vld [vmem:[%s362_s25] sm:$0x3]  ;;  %v3522_v29 = vmov (%p278_p7), 12   ;;  %v3523_v30 = vmov (%p278_p7), 14  }
  0x4e   : >> { %364 = vst.msk [vmem:[%s3683_s20 + $0x1e] sm:$0x3] %vm288_vm0, %v363_v15  ;;  %v3524_v31 = vmov (%p278_p7), 15   ;;  %v3525_v32 = vmov (%p278_p7), 10   ;;  %v3526_v33 = vmov (%p278_p7), 17   ;;  %v3527_v34 = vmov (%p278_p7), 18  }
  0x4f   : > { %v3528_v35 = vmov (%p278_p7), 20   ;;  %v3529_v36 = vmov (%p278_p7), 21   ;;  %v3530_v37 = vmov (%p278_p7), 13   ;;  %v3531_v38 = vmov (%p278_p7), 23  }
  0x50   : > { %473 = vperm.xlu1 (%p278_p7), %3381, %v3758_v19   ;;  %389 = vperm.xlu0 (%p278_p7), %3380, %v3758_v19   ;;  %v3532_v39 = vmov (%p278_p7), 24   ;;  %v3533_v40 = vmov (%p278_p7), 26   ;;  %v3534_v41 = vmov (%p278_p7), 27   ;;  %v3535_v42 = vmov (%p278_p7), 16  }
  0x51   : > { %v3536_v43 = vmov 29   ;;  %v3537_v44 = vmov 30   ;;  %v3538_v45 = vmov 19   ;;  %v3539_v46 = vmov 31  }
  0x52   : > { %vm3074_vm1 = vcmask 1041409   ;;  %vm3077_vm2 = vcmask 1042434   ;;  %vm3080_vm3 = vcmask 1043459   ;;  %vm3083_vm4 = vcmask 1044484  }
  0x53   : > { %vm3086_vm5 = vcmask 1045509   ;;  %vm3089_vm6 = vcmask 1046534   ;;  %vm3092_vm7 = vcmask 1047559   ;;  %vm3110_vm8 = vcmask 64512  }
  0x54   : > { %3383 = vset.pattern.permute.xlu1 %v3513_v20  ;;  %3382 = vset.pattern.permute.xlu0 %v3513_v20 }
  0x55   : > { %557 = vperm.xlu1 %3383, %v3758_v19   ;;  %554 = vperm.xlu0 %3382, %v3753_v16   ;;  %v453_v47 = vld [vmem:[#allocation2 + $0x1] sm:$0x1]  ;;  %v367_v60 = vld [vmem:[#allocation2] sm:$0x1] }
  0x56   : > { %v454_v48 = vld [vmem:[#allocation2 + $0x21] sm:$0x1]  ;;  %v368_v2 = vld [vmem:[#allocation2 + $0x20] sm:$0x1] }
  0x57   : > { %v455_v49 = vld [vmem:[#allocation2 + $0x41] sm:$0x1]  ;;  %v369_v7 = vld [vmem:[#allocation2 + $0x40] sm:$0x1] }
  0x58   : > { %v456_v50 = vld [vmem:[#allocation2 + $0x61] sm:$0x1]  ;;  %v370_v8 = vld [vmem:[#allocation2 + $0x60] sm:$0x1] }
  0x59   : > { %3384 = vset.pattern.permute.xlu1 %v3514_v21  ;;  %3385 = vset.pattern.permute.xlu0 %v3514_v21  ;;  %v457_v51 = vld [vmem:[#allocation2 + $0x81] sm:$0x1]  ;;  %v371_v9 = vld [vmem:[#allocation2 + $0x80] sm:$0x1] }
  0x5a   : > { %638 = vperm.xlu1 %3384, %v3753_v16   ;;  %641 = vperm.xlu0 %3385, %v3758_v19   ;;  %v458_v52 = vld [vmem:[#allocation2 + $0xa1] sm:$0x1]  ;;  %v372_v13 = vld [vmem:[#allocation2 + $0xa0] sm:$0x1] }
  0x5b   : > { %v459_v53 = vld [vmem:[#allocation2 + $0xc1] sm:$0x1]  ;;  %v373_v14 = vld [vmem:[#allocation2 + $0xc0] sm:$0x1] }
  0x5c   : > { %v460_v54 = vld [vmem:[#allocation2 + $0xe1] sm:$0x1]  ;;  %v374_v17 = vld [vmem:[#allocation2 + $0xe0] sm:$0x1] }
  0x5e   : > { %3386 = vset.pattern.permute.xlu1 %v3515_v22  ;;  %3387 = vset.pattern.permute.xlu0 %v3516_v23 }
  0x5f   : > { %722 = vperm.xlu1 %3386, %v3753_v16   ;;  %806 = vperm.xlu0 %3387, %v3753_v16  }
  0x63   : > { %725 = vperm.xlu1 %3386, %v3758_v19   ;;  %3390 = vset.pattern.permute.xlu0 %v3517_v24 }
  0x64   : > { %893 = vperm.xlu0 %3390, %v3758_v19  }
  0x67   : > { %3388 = vset.pattern.permute.xlu1 %v3516_v23  ;;  %v3540_v23 = vmov 22  }
  0x68   : > { %809 = vperm.xlu1 %3388, %v3758_v19   ;;  %3392 = vset.pattern.permute.xlu0 %v3518_v25 }
  0x69   : > { %1058 = vperm.xlu0 %3392, %v3753_v16  }
  0x6c   : > { %3389 = vset.pattern.permute.xlu1 %v3517_v24 }
  0x6d   : > { %890 = vperm.xlu1 %3389, %v3753_v16   ;;  %3395 = vset.pattern.permute.xlu0 %v3519_v26 }
  0x6e   : > { %1145 = vperm.xlu0 %3395, %v3758_v19  }
  0x71   : > { %3391 = vset.pattern.permute.xlu1 %v3520_v27 }
  0x72   : > { %974 = vperm.xlu1 %3391, %v3753_v16   ;;  %3397 = vset.pattern.permute.xlu0 %v3521_v28 }
  0x73   : > { %1310 = vperm.xlu0 %3397, %v3753_v16  }
  0x76   : > { %977 = vperm.xlu1 %3391, %v3758_v19  }
  0x77   : > { %3400 = vset.pattern.permute.xlu0 %v3522_v29 }
  0x78   : > { %1397 = vperm.xlu0 %3400, %v3758_v19  }
  0x7a   : > { %3393 = vset.pattern.permute.xlu1 %v3518_v25 }
  0x7b   : > { %1061 = vperm.xlu1 %3393, %v3758_v19  }
  0x7c   : > { %3402 = vset.pattern.permute.xlu0 %v3523_v30 }
  0x7d   : > { %1562 = vperm.xlu0 %3402, %v3753_v16  }
  0x7f   : > { %3394 = vset.pattern.permute.xlu1 %v3519_v26 }
  0x80   : > { %1142 = vperm.xlu1 %3394, %v3753_v16  }
  0x81   : > { %3405 = vset.pattern.permute.xlu0 %v3524_v31 }
  0x82   : > { %1649 = vperm.xlu0 %3405, %v3758_v19  }
  0x84   : > { %3396 = vset.pattern.permute.xlu1 %v3525_v32 }
  0x85   : > { %1226 = vperm.xlu1 %3396, %v3753_v16  }
  0x86   : > { %3407 = vset.pattern.permute.xlu0 %v3526_v33 }
  0x87   : > { %1814 = vperm.xlu0 %3407, %v3753_v16  }
  0x89   : > { %1229 = vperm.xlu1 %3396, %v3758_v19  }
  0x8b   : > { %3410 = vset.pattern.permute.xlu0 %v3527_v34 }
  0x8c   : > { %1901 = vperm.xlu0 %3410, %v3758_v19  }
  0x8d   : > { %3398 = vset.pattern.permute.xlu1 %v3521_v28 }
  0x8e   : > { %1313 = vperm.xlu1 %3398, %v3758_v19  }
  0x90   : > { %3412 = vset.pattern.permute.xlu0 %v3528_v35 }
  0x91   : > { %2066 = vperm.xlu0 %3412, %v3753_v16  }
  0x92   : > { %3399 = vset.pattern.permute.xlu1 %v3522_v29 }
  0x93   : > { %1394 = vperm.xlu1 %3399, %v3753_v16  }
  0x95   : > { %3415 = vset.pattern.permute.xlu0 %v3529_v36 }
  0x96   : > { %2153 = vperm.xlu0 %3415, %v3758_v19  }
  0x97   : > { %3401 = vset.pattern.permute.xlu1 %v3530_v37  ;;  %v461_v37 = vld [vmem:[#allocation2 + $0x101] sm:$0x1] }
  0x98   : > { %1478 = vperm.xlu1 %3401, %v3753_v16  }
  0x9a   : > { %3417 = vset.pattern.permute.xlu0 %v3531_v38 }
  0x9b   : > { %2318 = vperm.xlu0 %3417, %v3753_v16  }
  0x9c   : > { %1481 = vperm.xlu1 %3401, %v3758_v19  }
  0x9f   : > { %3420 = vset.pattern.permute.xlu0 %v3532_v39 }
  0xa0   : > { %3403 = vset.pattern.permute.xlu1 %v3523_v30  ;;  %2405 = vperm.xlu0 %3420, %v3758_v19  }
  0xa1   : > { %1565 = vperm.xlu1 %3403, %v3758_v19  }
  0xa4   : > { %3422 = vset.pattern.permute.xlu0 %v3533_v40 }
  0xa5   : > { %3404 = vset.pattern.permute.xlu1 %v3524_v31  ;;  %2570 = vperm.xlu0 %3422, %v3753_v16  }
  0xa6   : > { %1646 = vperm.xlu1 %3404, %v3753_v16  }
  0xa9   : > { %3425 = vset.pattern.permute.xlu0 %v3534_v41 }
  0xaa   : > { %3406 = vset.pattern.permute.xlu1 %v3535_v42  ;;  %2657 = vperm.xlu0 %3425, %v3758_v19   ;;  %v462_v42 = vld [vmem:[#allocation2 + $0x121] sm:$0x1] }
  0xab   : > { %1730 = vperm.xlu1 %3406, %v3753_v16  }
  0xae   : > { %3427 = vset.pattern.permute.xlu0 %v3536_v43 }
  0xaf   : > { %1733 = vperm.xlu1 %3406, %v3758_v19   ;;  %2822 = vperm.xlu0 %3427, %v3753_v16  }
  0xb3   : > { %3408 = vset.pattern.permute.xlu1 %v3526_v33  ;;  %3430 = vset.pattern.permute.xlu0 %v3537_v44 }
  0xb4   : > { %1817 = vperm.xlu1 %3408, %v3758_v19   ;;  %2909 = vperm.xlu0 %3430, %v3758_v19  }
  0xb8   : > { %3409 = vset.pattern.permute.xlu1 %v3527_v34  ;;  %3432 = vset.pattern.permute.xlu0 %v3539_v46 }
  0xb9   : > { %1898 = vperm.xlu1 %3409, %v3753_v16  }
  0xbd   : > { %3411 = vset.pattern.permute.xlu1 %v3538_v45  ;;  %v463_v45 = vld [vmem:[#allocation2 + $0x141] sm:$0x1] }
  0xbe   : > { %1982 = vperm.xlu1 %3411, %v3753_v16  }
  0xc2   : > { %1985 = vperm.xlu1 %3411, %v3758_v19  }
  0xc6   : > { %3413 = vset.pattern.permute.xlu1 %v3528_v35 }
  0xc7   : > { %2069 = vperm.xlu1 %3413, %v3758_v19  }
  0xcb   : > { %3414 = vset.pattern.permute.xlu1 %v3529_v36  ;;  %v471_v55 = vpop.permute.xlu1 %470  ;;  %v386_v61 = vpop.permute.xlu0 %385 }
  0xcc   : > { %v475_v56 = vrot.slane %v471_v55, 1  ;;  %v476_v57 = vrot.slane %v471_v55, 2  ;;  %v477_v58 = vrot.slane %v471_v55, 3  ;;  %v478_v59 = vrot.slane %v471_v55, 4  ;;  %2150 = vperm.xlu1 %3414, %v3753_v16  }
  0xcd   : > { %v479_v62 = vrot.slane %v471_v55, 5  ;;  %v480_v63 = vrot.slane %v471_v55, 6  ;;  %v481_v0 = vrot.slane %v471_v55, 7  ;;  %v505_v1 = vmul.f32 %v471_v55, %v453_v47 }
  0xce   : > { %v506_v3 = vmul.f32 %v475_v56, %v454_v48  ;;  %v507_v4 = vmul.f32 %v476_v57, %v455_v49  ;;  %v508_v5 = vmul.f32 %v477_v58, %v456_v50  ;;  %v509_v6 = vmul.f32 %v478_v59, %v457_v51  ;;  %v464_v51 = vld [vmem:[#allocation2 + $0x161] sm:$0x1] }
  0xcf   : > { %v510_v10 = vmul.f32 %v479_v62, %v458_v52  ;;  %v511_v11 = vmul.f32 %v480_v63, %v459_v53  ;;  %v512_v12 = vmul.f32 %v481_v0, %v460_v54  ;;  %v391_v15 = vrot.slane %v386_v61, 1  ;;  %v474_v32 = vpop.permute.xlu1 %473  ;;  %v465_v52 = vld [vmem:[#allocation2 + $0x181] sm:$0x1]  ;;  %v375_v0 = vld [vmem:[#allocation2 + $0x100] sm:$0x1] }
  0xd0   : > { %v392_v18 = vrot.slane %v386_v61, 2  ;;  %v393_v20 = vrot.slane %v386_v61, 3  ;;  %v394_v21 = vrot.slane %v386_v61, 4  ;;  %v395_v22 = vrot.slane %v386_v61, 5  ;;  %3416 = vset.pattern.permute.xlu1 %v3540_v23  ;;  %v466_v53 = vld [vmem:[#allocation2 + $0x1a1] sm:$0x1] }
  0xd1   : > { %v396_v24 = vrot.slane %v386_v61, 6  ;;  %v397_v25 = vrot.slane %v386_v61, 7  ;;  %v421_v26 = vmul.f32 %v386_v61, %v367_v60  ;;  %v422_v27 = vmul.f32 %v391_v15, %v368_v2  ;;  %2234 = vperm.xlu1 %3416, %v3753_v16   ;;  %v467_v56 = vld [vmem:[#allocation2 + $0x1c1] sm:$0x1]  ;;  %v390_v2 = vpop.permute.xlu0 %389  ;;  %v381_v15 = vld [vmem:[#allocation2 + $0x1c0] sm:$0x1] }
  0xd2   : > { %v423_v28 = vmul.f32 %v392_v18, %v369_v7  ;;  %v424_v29 = vmul.f32 %v393_v20, %v370_v8  ;;  %v425_v30 = vmul.f32 %v394_v21, %v371_v9  ;;  %v426_v31 = vmul.f32 %v395_v22, %v372_v13  ;;  %v468_v57 = vld [vmem:[#allocation2 + $0x1e1] sm:$0x1]  ;;  %v377_v7 = vld [vmem:[#allocation2 + $0x140] sm:$0x1] }
  0xd3   : > { %v427_v33 = vmul.f32 %v396_v24, %v373_v14  ;;  %v428_v34 = vmul.f32 %v397_v25, %v374_v17  ;;  %v3816_v35 = vadd.f32 %v505_v1, %v421_v26  ;;  %v3818_v36 = vadd.f32 %v506_v3, %v422_v27  ;;  %v376_v1 = vld [vmem:[#allocation2 + $0x120] sm:$0x1] }
  0xd4   : > { %v3820_v47 = vadd.f32 %v507_v4, %v423_v28  ;;  %v3822_v48 = vadd.f32 %v508_v5, %v424_v29  ;;  %v3824_v49 = vadd.f32 %v509_v6, %v425_v30  ;;  %v3826_v50 = vadd.f32 %v510_v10, %v426_v31  ;;  %v378_v8 = vld [vmem:[#allocation2 + $0x160] sm:$0x1] }
  0xd5   : > { %v3828_v54 = vadd.f32 %v511_v11, %v427_v33  ;;  %v3830_v55 = vadd.f32 %v512_v12, %v428_v34  ;;  %v482_v58 = vrot.slane %v474_v32, 1  ;;  %v483_v59 = vrot.slane %v474_v32, 2  ;;  %2237 = vperm.xlu1 %3416, %v3758_v19   ;;  %v379_v13 = vld [vmem:[#allocation2 + $0x180] sm:$0x1] }
  0xd6   : > { %v484_v60 = vrot.slane %v474_v32, 3  ;;  %v485_v61 = vrot.slane %v474_v32, 4  ;;  %v486_v62 = vrot.slane %v474_v32, 5  ;;  %v487_v63 = vrot.slane %v474_v32, 6  ;;  %v380_v14 = vld [vmem:[#allocation2 + $0x1a0] sm:$0x1] }
  0xd7   : > { %v488_v3 = vrot.slane %v474_v32, 7  ;;  %v513_v4 = vmul.f32 %v474_v32, %v461_v37  ;;  %v514_v5 = vmul.f32 %v482_v58, %v462_v42  ;;  %v515_v6 = vmul.f32 %v483_v59, %v463_v45  ;;  %v382_v18 = vld [vmem:[#allocation2 + $0x1e0] sm:$0x1]  ;;  %v545_v37 = vld [vmem:[#allocation2 + $0x102] sm:$0x1]  ;;  %v558_v42 = vpop.permute.xlu1 %557 }
  0xd8   : > { %v516_v9 = vmul.f32 %v484_v60, %v464_v51  ;;  %v517_v10 = vmul.f32 %v485_v61, %v465_v52  ;;  %v518_v11 = vmul.f32 %v486_v62, %v466_v53  ;;  %v519_v12 = vmul.f32 %v487_v63, %v467_v56  ;;  %v546_v53 = vld [vmem:[#allocation2 + $0x122] sm:$0x1] }
  0xd9   : > { %v520_v17 = vmul.f32 %v488_v3, %v468_v57  ;;  %v398_v20 = vrot.slane %v390_v2, 1  ;;  %v399_v21 = vrot.slane %v390_v2, 2  ;;  %v400_v22 = vrot.slane %v390_v2, 3  ;;  %3418 = vset.pattern.permute.xlu1 %v3531_v38  ;;  %v547_v56 = vld [vmem:[#allocation2 + $0x142] sm:$0x1] }
  0xda   : > { %v401_v23 = vrot.slane %v390_v2, 4  ;;  %v402_v24 = vrot.slane %v390_v2, 5  ;;  %v403_v25 = vrot.slane %v390_v2, 6  ;;  %v404_v26 = vrot.slane %v390_v2, 7  ;;  %2321 = vperm.xlu1 %3418, %v3758_v19   ;;  %v548_v57 = vld [vmem:[#allocation2 + $0x162] sm:$0x1] }
  0xdb   : > { %v429_v27 = vmul.f32 %v390_v2, %v375_v0  ;;  %v430_v28 = vmul.f32 %v398_v20, %v376_v1  ;;  %v431_v29 = vmul.f32 %v399_v21, %v377_v7  ;;  %v432_v30 = vmul.f32 %v400_v22, %v378_v8  ;;  %v549_v62 = vld [vmem:[#allocation2 + $0x182] sm:$0x1] }
  0xdc   : > { %v433_v31 = vmul.f32 %v401_v23, %v379_v13  ;;  %v434_v32 = vmul.f32 %v402_v24, %v380_v14  ;;  %v435_v33 = vmul.f32 %v403_v25, %v381_v15  ;;  %v436_v34 = vmul.f32 %v404_v26, %v382_v18  ;;  %v550_v63 = vld [vmem:[#allocation2 + $0x1a2] sm:$0x1]  ;;  %v555_v14 = vpop.permute.xlu0 %554 }
  0xdd   : > { %v529_v45 = vadd.f32 %v513_v4, %v429_v27  ;;  %v530_v51 = vadd.f32 %v514_v5, %v430_v28  ;;  %v531_v52 = vadd.f32 %v515_v6, %v431_v29  ;;  %v532_v38 = vadd.f32 %v516_v9, %v432_v30  ;;  %v551_v0 = vld [vmem:[#allocation2 + $0x1c2] sm:$0x1] }
  0xde   : > { %v533_v58 = vadd.f32 %v517_v10, %v433_v31  ;;  %v534_v59 = vadd.f32 %v518_v11, %v434_v32  ;;  %v535_v60 = vadd.f32 %v519_v12, %v435_v33  ;;  %v536_v61 = vadd.f32 %v520_v17, %v436_v34  ;;  %3419 = vset.pattern.permute.xlu1 %v3532_v39  ;;  %v552_v1 = vld [vmem:[#allocation2 + $0x1e2] sm:$0x1] }
  0xdf   : > { %v566_v2 = vrot.slane %v558_v42, 1  ;;  %v567_v3 = vrot.slane %v558_v42, 2  ;;  %v568_v7 = vrot.slane %v558_v42, 3  ;;  %v569_v4 = vrot.slane %v558_v42, 4  ;;  %2402 = vperm.xlu1 %3419, %v3753_v16   ;;  %v537_v20 = vld [vmem:[#allocation2 + $0x2] sm:$0x1] }
  0xe0   : > { %v570_v5 = vrot.slane %v558_v42, 5  ;;  %v571_v6 = vrot.slane %v558_v42, 6  ;;  %v572_v8 = vrot.slane %v558_v42, 7  ;;  %v597_v9 = vmul.f32 %v558_v42, %v545_v37  ;;  %v538_v21 = vld [vmem:[#allocation2 + $0x22] sm:$0x1] }
  0xe1   : > { %v598_v10 = vmul.f32 %v566_v2, %v546_v53  ;;  %v599_v11 = vmul.f32 %v567_v3, %v547_v56  ;;  %v600_v12 = vmul.f32 %v568_v7, %v548_v57  ;;  %v601_v13 = vmul.f32 %v569_v4, %v549_v62  ;;  %v539_v26 = vld [vmem:[#allocation2 + $0x42] sm:$0x1]  ;;  %v621_v7 = vld [vmem:[#allocation2 + $0x3] sm:$0x1] }
  0xe2   : > { %v602_v15 = vmul.f32 %v570_v5, %v550_v63  ;;  %v603_v17 = vmul.f32 %v571_v6, %v551_v0  ;;  %v604_v18 = vmul.f32 %v572_v8, %v552_v1  ;;  %v3837_v39 = vadd.f32 %v597_v9, %v529_v45  ;;  %v540_v27 = vld [vmem:[#allocation2 + $0x62] sm:$0x1]  ;;  %v622_v4 = vld [vmem:[#allocation2 + $0x23] sm:$0x1] }
  0xe3   : > { %v3839_v22 = vadd.f32 %v598_v10, %v530_v51  ;;  %v3841_v23 = vadd.f32 %v599_v11, %v531_v52  ;;  %v3843_v24 = vadd.f32 %v600_v12, %v532_v38  ;;  %v3845_v25 = vadd.f32 %v601_v13, %v533_v58  ;;  %v541_v28 = vld [vmem:[#allocation2 + $0x82] sm:$0x1]  ;;  %v623_v10 = vld [vmem:[#allocation2 + $0x43] sm:$0x1] }
  0xe4   : > { %v3541_v29 = vmov 25   ;;  %v3847_v30 = vadd.f32 %v602_v15, %v534_v59  ;;  %v3849_v31 = vadd.f32 %v603_v17, %v535_v60  ;;  %v3851_v32 = vadd.f32 %v604_v18, %v536_v61  ;;  %v542_v33 = vld [vmem:[#allocation2 + $0xa2] sm:$0x1]  ;;  %v639_v61 = vpop.permute.xlu1 %638  ;;  %v624_v11 = vld [vmem:[#allocation2 + $0x63] sm:$0x1] }
  0xe5   : > { %3421 = vset.pattern.permute.xlu1 %v3541_v29  ;;  %v543_v34 = vld [vmem:[#allocation2 + $0xc2] sm:$0x1]  ;;  %v559_v37 = vrot.slane %v555_v14, 1  ;;  %v560_v45 = vrot.slane %v555_v14, 2  ;;  %v561_v51 = vrot.slane %v555_v14, 3  ;;  %v562_v52 = vrot.slane %v555_v14, 4 }
  0xe6   : > { %2486 = vperm.xlu1 %3421, %v3753_v16   ;;  %v544_v42 = vld [vmem:[#allocation2 + $0xe2] sm:$0x1]  ;;  %v563_v38 = vrot.slane %v555_v14, 5  ;;  %v564_v53 = vrot.slane %v555_v14, 6  ;;  %v565_v56 = vrot.slane %v555_v14, 7  ;;  %v589_v57 = vmul.f32 %v555_v14, %v537_v20 }
  0xe7   : > { %v590_v58 = vmul.f32 %v559_v37, %v538_v21  ;;  %v591_v59 = vmul.f32 %v560_v45, %v539_v26  ;;  %v592_v62 = vmul.f32 %v561_v51, %v540_v27  ;;  %v593_v60 = vmul.f32 %v562_v52, %v541_v28  ;;  %v625_v12 = vld [vmem:[#allocation2 + $0x83] sm:$0x1] }
  0xe8   : > { %v594_v63 = vmul.f32 %v563_v38, %v542_v33  ;;  %v595_v0 = vmul.f32 %v564_v53, %v543_v34  ;;  %v596_v1 = vmul.f32 %v565_v56, %v544_v42  ;;  %v605_v2 = vadd.f32 %v589_v57, %v3816_v35  ;;  %v627_v14 = vld [vmem:[#allocation2 + $0xc3] sm:$0x1] }
  0xe9   : > { %v606_v3 = vadd.f32 %v590_v58, %v3818_v36  ;;  %v607_v5 = vadd.f32 %v591_v59, %v3820_v47  ;;  %v608_v6 = vadd.f32 %v592_v62, %v3822_v48  ;;  %v609_v8 = vadd.f32 %v593_v60, %v3824_v49  ;;  %v626_v36 = vld [vmem:[#allocation2 + $0xa3] sm:$0x1] }
  0xea   : > { %2489 = vperm.xlu1 %3421, %v3758_v19   ;;  %v610_v9 = vadd.f32 %v594_v63, %v3826_v50  ;;  %v611_v13 = vadd.f32 %v595_v0, %v3828_v54  ;;  %v612_v35 = vadd.f32 %v596_v1, %v3830_v55  ;;  %v643_v15 = vrot.slane %v639_v61, 1  ;;  %v628_v18 = vld [vmem:[#allocation2 + $0xe3] sm:$0x1]  ;;  %v642_v55 = vpop.permute.xlu0 %641 }
  0xeb   : > { %v644_v17 = vrot.slane %v639_v61, 2  ;;  %v645_v20 = vrot.slane %v639_v61, 3  ;;  %v646_v47 = vrot.slane %v639_v61, 4  ;;  %v647_v21 = vrot.slane %v639_v61, 5  ;;  %v629_v51 = vld [vmem:[#allocation2 + $0x103] sm:$0x1] }
  0xec   : > { %v648_v48 = vrot.slane %v639_v61, 6  ;;  %v649_v26 = vrot.slane %v639_v61, 7  ;;  %v673_v49 = vmul.f32 %v639_v61, %v621_v7  ;;  %v674_v27 = vmul.f32 %v643_v15, %v622_v4  ;;  %v630_v56 = vld [vmem:[#allocation2 + $0x123] sm:$0x1]  ;;  %v708_v15 = vld [vmem:[#allocation2 + $0x64] sm:$0x1] }
  0xed   : > { %v675_v50 = vmul.f32 %v644_v17, %v623_v10  ;;  %v676_v28 = vmul.f32 %v645_v20, %v624_v11  ;;  %v677_v29 = vmul.f32 %v646_v47, %v625_v12  ;;  %v678_v54 = vmul.f32 %v647_v21, %v626_v36  ;;  %v631_v57 = vld [vmem:[#allocation2 + $0x143] sm:$0x1]  ;;  %v723_v10 = vpop.permute.xlu1 %722  ;;  %v706_v36 = vld [vmem:[#allocation2 + $0x24] sm:$0x1] }
  0xee   : > { %3423 = vset.pattern.permute.xlu1 %v3533_v40  ;;  %v679_v33 = vmul.f32 %v648_v48, %v627_v14  ;;  %v680_v34 = vmul.f32 %v649_v26, %v628_v18  ;;  %v3865_v37 = vadd.f32 %v673_v49, %v605_v2  ;;  %v3867_v42 = vadd.f32 %v674_v27, %v606_v3  ;;  %v632_v58 = vld [vmem:[#allocation2 + $0x163] sm:$0x1]  ;;  %v707_v14 = vld [vmem:[#allocation2 + $0x44] sm:$0x1] }
  0xef   : > { %2573 = vperm.xlu1 %3423, %v3758_v19   ;;  %v3869_v45 = vadd.f32 %v675_v50, %v607_v5  ;;  %v692_v52 = vadd.f32 %v676_v28, %v608_v6  ;;  %v693_v38 = vadd.f32 %v677_v29, %v609_v8  ;;  %v3871_v53 = vadd.f32 %v678_v54, %v610_v9  ;;  %v633_v62 = vld [vmem:[#allocation2 + $0x183] sm:$0x1]  ;;  %v705_v9 = vld [vmem:[#allocation2 + $0x4] sm:$0x1] }
  0xf0   : > { %v3873_v40 = vadd.f32 %v679_v33, %v611_v13  ;;  %v696_v59 = vadd.f32 %v680_v34, %v612_v35  ;;  %v650_v60 = vrot.slane %v642_v55, 1  ;;  %v651_v63 = vrot.slane %v642_v55, 2  ;;  %v634_v0 = vld [vmem:[#allocation2 + $0x1a3] sm:$0x1]  ;;  %v709_v47 = vld [vmem:[#allocation2 + $0x84] sm:$0x1] }
  0xf1   : > { %v652_v61 = vrot.slane %v642_v55, 3  ;;  %v653_v1 = vrot.slane %v642_v55, 4  ;;  %v654_v2 = vrot.slane %v642_v55, 5  ;;  %v655_v3 = vrot.slane %v642_v55, 6  ;;  %v635_v4 = vld [vmem:[#allocation2 + $0x1c3] sm:$0x1] }
  0xf2   : > { %v656_v7 = vrot.slane %v642_v55, 7  ;;  %v636_v5 = vld [vmem:[#allocation2 + $0x1e3] sm:$0x1]  ;;  %v681_v6 = vmul.f32 %v642_v55, %v629_v51  ;;  %v682_v8 = vmul.f32 %v650_v60, %v630_v56  ;;  %v683_v11 = vmul.f32 %v651_v63, %v631_v57  ;;  %v710_v21 = vld [vmem:[#allocation2 + $0xa4] sm:$0x1]  ;;  %v807_v57 = vpop.permute.xlu0 %806 }
  0xf3   : > { %3424 = vset.pattern.permute.xlu1 %v3534_v41  ;;  %v684_v12 = vmul.f32 %v652_v61, %v632_v58  ;;  %v685_v13 = vmul.f32 %v653_v1, %v633_v62  ;;  %v686_v35 = vmul.f32 %v654_v2, %v634_v0  ;;  %v687_v17 = vmul.f32 %v655_v3, %v635_v4  ;;  %v711_v48 = vld [vmem:[#allocation2 + $0xc4] sm:$0x1]  ;;  %v789_v3 = vld [vmem:[#allocation2 + $0x5] sm:$0x1] }
  0xf4   : > { %2654 = vperm.xlu1 %3424, %v3753_v16   ;;  %v688_v18 = vmul.f32 %v656_v7, %v636_v5  ;;  %v3878_v20 = vadd.f32 %v681_v6, %v3837_v39  ;;  %v3881_v41 = vadd.f32 %v682_v8, %v3839_v22  ;;  %v712_v26 = vld [vmem:[#allocation2 + $0xe4] sm:$0x1]  ;;  %v727_v49 = vrot.slane %v723_v10, 1  ;;  %v790_v7 = vld [vmem:[#allocation2 + $0x25] sm:$0x1] }
  0xf5   : > { %v728_v27 = vrot.slane %v723_v10, 2  ;;  %v729_v50 = vrot.slane %v723_v10, 3  ;;  %v730_v28 = vrot.slane %v723_v10, 4  ;;  %v3542_v29 = vmov 28   ;;  %v791_v4 = vld [vmem:[#allocation2 + $0x45] sm:$0x1] }
  0xf6   : > { %v731_v54 = vrot.slane %v723_v10, 5  ;;  %v732_v33 = vrot.slane %v723_v10, 6  ;;  %v733_v55 = vrot.slane %v723_v10, 7  ;;  %v757_v34 = vmul.f32 %v723_v10, %v705_v9 }
  0xf7   : > { %v758_v39 = vmul.f32 %v727_v49, %v706_v36  ;;  %v759_v51 = vmul.f32 %v728_v27, %v707_v14  ;;  %v760_v22 = vmul.f32 %v729_v50, %v708_v15  ;;  %v761_v56 = vmul.f32 %v730_v28, %v709_v47  ;;  %v795_v14 = vld [vmem:[#allocation2 + $0xc5] sm:$0x1]  ;;  %v726_v27 = vpop.permute.xlu1 %725 }
  0xf8   : > { %3426 = vset.pattern.permute.xlu1 %v3542_v29  ;;  %v762_v58 = vmul.f32 %v731_v54, %v710_v21  ;;  %v763_v62 = vmul.f32 %v732_v33, %v711_v48  ;;  %v764_v60 = vmul.f32 %v733_v55, %v712_v26  ;;  %v773_v63 = vadd.f32 %v757_v34, %v3865_v37  ;;  %v792_v37 = vld [vmem:[#allocation2 + $0x65] sm:$0x1]  ;;  %v713_v33 = vld [vmem:[#allocation2 + $0x104] sm:$0x1] }
  0xf9   : > { %2738 = vperm.xlu1 %3426, %v3753_v16   ;;  %v774_v61 = vadd.f32 %v758_v39, %v3867_v42  ;;  %v3887_v0 = vadd.f32 %v759_v51, %v3869_v45  ;;  %v3889_v1 = vadd.f32 %v760_v22, %v692_v52  ;;  %v3891_v2 = vadd.f32 %v761_v56, %v693_v38  ;;  %v793_v42 = vld [vmem:[#allocation2 + $0x85] sm:$0x1]  ;;  %v714_v55 = vld [vmem:[#allocation2 + $0x124] sm:$0x1] }
  0xfa   : > { %v3894_v5 = vadd.f32 %v762_v58, %v3871_v53  ;;  %v3897_v6 = vadd.f32 %v763_v62, %v3873_v40  ;;  %v3899_v8 = vadd.f32 %v764_v60, %v696_v59  ;;  %v811_v9 = vrot.slane %v807_v57, 1  ;;  %v794_v45 = vld [vmem:[#allocation2 + $0xa5] sm:$0x1]  ;;  %v720_v34 = vld [vmem:[#allocation2 + $0x1e4] sm:$0x1] }
  0xfb   : > { %v812_v52 = vrot.slane %v807_v57, 2  ;;  %v813_v38 = vrot.slane %v807_v57, 3  ;;  %v814_v10 = vrot.slane %v807_v57, 4  ;;  %v815_v36 = vrot.slane %v807_v57, 5  ;;  %v796_v15 = vld [vmem:[#allocation2 + $0xe5] sm:$0x1] }
  0xfc   : > { %v816_v47 = vrot.slane %v807_v57, 6  ;;  %v817_v53 = vrot.slane %v807_v57, 7  ;;  %v841_v21 = vmul.f32 %v807_v57, %v789_v3  ;;  %v842_v48 = vmul.f32 %v811_v9, %v790_v7 }
  0xfd   : > { %2741 = vperm.xlu1 %3426, %v3758_v19   ;;  %v699_v40 = vadd.f32 %v683_v11, %v3841_v23  ;;  %v700_v59 = vadd.f32 %v684_v12, %v3843_v24  ;;  %v701_v26 = vadd.f32 %v685_v13, %v3845_v25  ;;  %v702_v49 = vadd.f32 %v686_v35, %v3847_v30  ;;  %v715_v11 = vld [vmem:[#allocation2 + $0x144] sm:$0x1] }
  0xfe   : > { %v703_v50 = vadd.f32 %v687_v17, %v3849_v31  ;;  %v704_v28 = vadd.f32 %v688_v18, %v3851_v32  ;;  %v3908_v29 = vmul.f32 %v812_v52, %v791_v4  ;;  %v3910_v54 = vmul.f32 %v813_v38, %v792_v37  ;;  %v716_v31 = vld [vmem:[#allocation2 + $0x164] sm:$0x1]  ;;  %v797_v4 = vld [vmem:[#allocation2 + $0x105] sm:$0x1] }
  0xff   : > { %v3913_v23 = vmul.f32 %v814_v10, %v793_v42  ;;  %v3915_v24 = vmul.f32 %v815_v36, %v794_v45  ;;  %v3917_v25 = vmul.f32 %v816_v47, %v795_v14  ;;  %v3919_v30 = vmul.f32 %v817_v53, %v796_v15  ;;  %v717_v12 = vld [vmem:[#allocation2 + $0x184] sm:$0x1]  ;;  %v798_v52 = vld [vmem:[#allocation2 + $0x125] sm:$0x1] }
 0x100   : > { %v3922_v32 = vadd.f32 %v841_v21, %v773_v63  ;;  %v3924_v13 = vadd.f32 %v842_v48, %v774_v61  ;;  %v718_v35 = vld [vmem:[#allocation2 + $0x1a4] sm:$0x1]  ;;  %v735_v18 = vrot.slane %v726_v27, 2  ;;  %v736_v39 = vrot.slane %v726_v27, 3  ;;  %v810_v61 = vpop.permute.xlu1 %809  ;;  %v799_v38 = vld [vmem:[#allocation2 + $0x145] sm:$0x1] }
 0x101   : > { %3428 = vset.pattern.permute.xlu1 %v3536_v43  ;;  %v719_v17 = vld [vmem:[#allocation2 + $0x1c4] sm:$0x1]  ;;  %v734_v43 = vrot.slane %v726_v27, 1  ;;  %v737_v51 = vrot.slane %v726_v27, 4  ;;  %v738_v22 = vrot.slane %v726_v27, 5  ;;  %v739_v56 = vrot.slane %v726_v27, 6 }
 0x102   : > { %2825 = vperm.xlu1 %3428, %v3758_v19   ;;  %v740_v57 = vrot.slane %v726_v27, 7  ;;  %v765_v58 = vmul.f32 %v726_v27, %v713_v33  ;;  %v767_v60 = vmul.f32 %v735_v18, %v715_v11  ;;  %v768_v3 = vmul.f32 %v736_v39, %v716_v31  ;;  %v800_v10 = vld [vmem:[#allocation2 + $0x165] sm:$0x1]  ;;  %v894_v18 = vpop.permute.xlu0 %893 }
 0x103   : > { %v766_v62 = vmul.f32 %v734_v43, %v714_v55  ;;  %v769_v7 = vmul.f32 %v737_v51, %v717_v12  ;;  %v770_v19 = vmul.f32 %v738_v22, %v718_v35  ;;  %v771_v63 = vmul.f32 %v739_v56, %v719_v17  ;;  %v801_v53 = vld [vmem:[#allocation2 + $0x185] sm:$0x1]  ;;  %v881_v22 = vld [vmem:[#allocation2 + $0x106] sm:$0x1] }
 0x104   : > { %v772_v37 = vmul.f32 %v740_v57, %v720_v34  ;;  %v781_v42 = vadd.f32 %v765_v58, %v3878_v20  ;;  %v783_v45 = vadd.f32 %v767_v60, %v699_v40  ;;  %v784_v36 = vadd.f32 %v768_v3, %v700_v59  ;;  %v802_v21 = vld [vmem:[#allocation2 + $0x1a5] sm:$0x1]  ;;  %v882_v56 = vld [vmem:[#allocation2 + $0x126] sm:$0x1] }
 0x105   : > { %v782_v9 = vadd.f32 %v766_v62, %v3881_v41  ;;  %v785_v14 = vadd.f32 %v769_v7, %v701_v26  ;;  %v786_v15 = vadd.f32 %v770_v19, %v702_v49  ;;  %v787_v47 = vadd.f32 %v771_v63, %v703_v50  ;;  %v803_v48 = vld [vmem:[#allocation2 + $0x1c5] sm:$0x1]  ;;  %v883_v60 = vld [vmem:[#allocation2 + $0x146] sm:$0x1] }
 0x106   : > { %3429 = vset.pattern.permute.xlu1 %v3537_v44  ;;  %v788_v27 = vadd.f32 %v772_v37, %v704_v28  ;;  %v804_v44 = vld [vmem:[#allocation2 + $0x1e5] sm:$0x1]  ;;  %v818_v33 = vrot.slane %v810_v61, 1  ;;  %v819_v55 = vrot.slane %v810_v61, 2  ;;  %v820_v20 = vrot.slane %v810_v61, 3 }
 0x107   : > { %2906 = vperm.xlu1 %3429, %v3753_v16   ;;  %v821_v11 = vrot.slane %v810_v61, 4  ;;  %v822_v41 = vrot.slane %v810_v61, 5  ;;  %v823_v40 = vrot.slane %v810_v61, 6  ;;  %v824_v31 = vrot.slane %v810_v61, 7  ;;  %v884_v3 = vld [vmem:[#allocation2 + $0x166] sm:$0x1] }
 0x108   : > { %v849_v12 = vmul.f32 %v810_v61, %v797_v4  ;;  %v850_v35 = vmul.f32 %v818_v33, %v798_v52  ;;  %v851_v17 = vmul.f32 %v819_v55, %v799_v38  ;;  %v852_v43 = vmul.f32 %v820_v20, %v800_v10  ;;  %v886_v7 = vld [vmem:[#allocation2 + $0x1a6] sm:$0x1]  ;;  %v3433_v38 = vld [vmem:[%s3646_s4 + $0x8] sm:$0xff] }
 0x109   : > { %v853_v59 = vmul.f32 %v821_v11, %v801_v53  ;;  %v854_v26 = vmul.f32 %v822_v41, %v802_v21  ;;  %v855_v49 = vmul.f32 %v823_v40, %v803_v48  ;;  %v856_v50 = vmul.f32 %v824_v31, %v804_v44  ;;  %v887_v37 = vld [vmem:[#allocation2 + $0x1c6] sm:$0x1]  ;;  %v891_v53 = vpop.permute.xlu1 %890 }
 0x10a   : > { %v865_v28 = vadd.f32 %v849_v12, %v781_v42  ;;  %v866_v34 = vadd.f32 %v850_v35, %v782_v9  ;;  %v3932_v39 = vadd.f32 %v851_v17, %v783_v45  ;;  %v3934_v51 = vadd.f32 %v852_v43, %v784_v36  ;;  %v875_v33 = vld [vmem:[#allocation2 + $0x46] sm:$0x1] }
 0x10b   : > { %3431 = vset.pattern.permute.xlu1 %v3539_v46  ;;  %v3936_v57 = vadd.f32 %v853_v59, %v785_v14  ;;  %v3938_v58 = vadd.f32 %v854_v26, %v786_v15  ;;  %v3940_v46 = vadd.f32 %v855_v49, %v787_v47  ;;  %v3942_v62 = vadd.f32 %v856_v50, %v788_v27  ;;  %v888_v15 = vld [vmem:[#allocation2 + $0x1e6] sm:$0x1] }
 0x10c   : > { %2990 = vperm.xlu1 %3431, %v3753_v16   ;;  %v885_v16 = vld [vmem:[#allocation2 + $0x186] sm:$0x1]  ;;  %v902_v19 = vrot.slane %v894_v18, 1  ;;  %v903_v63 = vrot.slane %v894_v18, 2  ;;  %v904_v4 = vrot.slane %v894_v18, 3  ;;  %v905_v61 = vrot.slane %v894_v18, 4 }
 0x10d   : > { %v906_v42 = vrot.slane %v894_v18, 5  ;;  %v907_v9 = vrot.slane %v894_v18, 6  ;;  %v908_v45 = vrot.slane %v894_v18, 7  ;;  %v933_v52 = vmul.f32 %v894_v18, %v881_v22  ;;  %v880_v11 = vld [vmem:[#allocation2 + $0xe6] sm:$0x1] }
 0x10e   : > { %v859_v10 = vadd.f32 %v3908_v29, %v3887_v0  ;;  %v860_v36 = vadd.f32 %v3910_v54, %v3889_v1  ;;  %v861_v14 = vadd.f32 %v3913_v23, %v3891_v2  ;;  %v934_v47 = vmul.f32 %v902_v19, %v882_v56  ;;  %v873_v0 = vld [vmem:[#allocation2 + $0x6] sm:$0x1] }
 0x10f   : > { %v862_v21 = vadd.f32 %v3915_v24, %v3894_v5  ;;  %v863_v48 = vadd.f32 %v3917_v25, %v3897_v6  ;;  %v864_v27 = vadd.f32 %v3919_v30, %v3899_v8  ;;  %v3957_v44 = vmul.f32 %v903_v63, %v883_v60  ;;  %v874_v29 = vld [vmem:[#allocation2 + $0x26] sm:$0x1] }
 0x110   : > { %2993 = vperm.xlu1 %3431, %v3433_v38   ;;  %v3959_v1 = vmul.f32 %v904_v4, %v884_v3  ;;  %v3961_v54 = vmul.f32 %v905_v61, %v885_v16  ;;  %v3963_v2 = vmul.f32 %v906_v42, %v886_v7  ;;  %v3965_v23 = vmul.f32 %v907_v9, %v887_v37  ;;  %v876_v5 = vld [vmem:[#allocation2 + $0x66] sm:$0x1]  ;;  %v957_v3 = vld [vmem:[#allocation2 + $0x7] sm:$0x1] }
 0x111   : > { %v877_v24 = vld [vmem:[#allocation2 + $0x86] sm:$0x1]  ;;  %v3967_v55 = vmul.f32 %v908_v45, %v888_v15  ;;  %v3969_v6 = vadd.f32 %v933_v52, %v865_v28  ;;  %v3971_v8 = vadd.f32 %v934_v47, %v866_v34  ;;  %v895_v20 = vrot.slane %v891_v53, 1  ;;  %v975_v28 = vpop.permute.xlu1 %974  ;;  %v958_v16 = vld [vmem:[#allocation2 + $0x27] sm:$0x1] }
 0x112   : > { %v878_v25 = vld [vmem:[#allocation2 + $0xa6] sm:$0x1]  ;;  %v896_v41 = vrot.slane %v891_v53, 2  ;;  %v897_v40 = vrot.slane %v891_v53, 3  ;;  %v898_v31 = vrot.slane %v891_v53, 4  ;;  %v899_v12 = vrot.slane %v891_v53, 5 }
 0x113   : > { %v879_v30 = vld [vmem:[#allocation2 + $0xc6] sm:$0x1]  ;;  %v900_v35 = vrot.slane %v891_v53, 6  ;;  %v901_v17 = vrot.slane %v891_v53, 7  ;;  %v925_v43 = vmul.f32 %v891_v53, %v873_v0  ;;  %v926_v59 = vmul.f32 %v895_v20, %v874_v29  ;;  %v959_v61 = vld [vmem:[#allocation2 + $0x47] sm:$0x1] }
 0x114   : > { %v927_v26 = vmul.f32 %v896_v41, %v875_v33  ;;  %v928_v49 = vmul.f32 %v897_v40, %v876_v5  ;;  %v929_v50 = vmul.f32 %v898_v31, %v877_v24  ;;  %v930_v18 = vmul.f32 %v899_v12, %v878_v25  ;;  %v960_v37 = vld [vmem:[#allocation2 + $0x67] sm:$0x1]  ;;  %v1041_v41 = vld [vmem:[#allocation2 + $0x8] sm:$0x1] }
 0x115   : > { %v931_v22 = vmul.f32 %v900_v35, %v879_v30  ;;  %v932_v34 = vmul.f32 %v901_v17, %v880_v11  ;;  %v941_v56 = vadd.f32 %v925_v43, %v3922_v32  ;;  %v942_v60 = vadd.f32 %v926_v59, %v3924_v13  ;;  %v961_v42 = vld [vmem:[#allocation2 + $0x87] sm:$0x1]  ;;  %v1059_v30 = vpop.permute.xlu0 %1058  ;;  %v1042_v17 = vld [vmem:[#allocation2 + $0x28] sm:$0x1] }
 0x116   : > { %v943_v7 = vadd.f32 %v927_v26, %v859_v10  ;;  %v944_v19 = vadd.f32 %v928_v49, %v860_v36  ;;  %v945_v63 = vadd.f32 %v929_v50, %v861_v14  ;;  %v946_v4 = vadd.f32 %v930_v18, %v862_v21  ;;  %v962_v52 = vld [vmem:[#allocation2 + $0xa7] sm:$0x1]  ;;  %v1043_v43 = vld [vmem:[#allocation2 + $0x48] sm:$0x1] }
 0x117   : > { %v947_v9 = vadd.f32 %v931_v22, %v863_v48  ;;  %v948_v45 = vadd.f32 %v932_v34, %v864_v27  ;;  %v963_v38 = vld [vmem:[#allocation2 + $0xc7] sm:$0x1]  ;;  %v979_v15 = vrot.slane %v975_v28, 1  ;;  %v980_v47 = vrot.slane %v975_v28, 2  ;;  %v1044_v59 = vld [vmem:[#allocation2 + $0x68] sm:$0x1] }
 0x118   : > { %v964_v53 = vld [vmem:[#allocation2 + $0xe7] sm:$0x1]  ;;  %v981_v0 = vrot.slane %v975_v28, 3  ;;  %v982_v32 = vrot.slane %v975_v28, 4  ;;  %v983_v29 = vrot.slane %v975_v28, 5  ;;  %v984_v13 = vrot.slane %v975_v28, 6 }
 0x119   : > { %v985_v33 = vrot.slane %v975_v28, 7  ;;  %v1009_v5 = vmul.f32 %v975_v28, %v957_v3  ;;  %v1010_v10 = vmul.f32 %v979_v15, %v958_v16  ;;  %v1011_v36 = vmul.f32 %v980_v47, %v959_v61  ;;  %v1045_v49 = vld [vmem:[#allocation2 + $0x88] sm:$0x1]  ;;  %v966_v15 = vld [vmem:[#allocation2 + $0x127] sm:$0x1] }
 0x11a   : > { %v1012_v14 = vmul.f32 %v981_v0, %v960_v37  ;;  %v1013_v21 = vmul.f32 %v982_v32, %v961_v42  ;;  %v1014_v24 = vmul.f32 %v983_v29, %v962_v52  ;;  %v1015_v25 = vmul.f32 %v984_v13, %v963_v38  ;;  %v1046_v22 = vld [vmem:[#allocation2 + $0xa8] sm:$0x1]  ;;  %v978_v37 = vpop.permute.xlu1 %977 }
 0x11b   : > { %v1016_v48 = vmul.f32 %v985_v33, %v964_v53  ;;  %v1025_v27 = vadd.f32 %v1009_v5, %v941_v56  ;;  %v1026_v20 = vadd.f32 %v1010_v10, %v942_v60  ;;  %v3975_v11 = vadd.f32 %v1011_v36, %v943_v7  ;;  %v972_v53 = vld [vmem:[#allocation2 + $0x1e7] sm:$0x1] }
 0x11c   : > { %v3977_v40 = vadd.f32 %v1012_v14, %v944_v19  ;;  %v3979_v31 = vadd.f32 %v1013_v21, %v945_v63  ;;  %v3981_v12 = vadd.f32 %v1014_v24, %v946_v4  ;;  %v3983_v35 = vadd.f32 %v1015_v25, %v947_v9  ;;  %v1047_v19 = vld [vmem:[#allocation2 + $0xc8] sm:$0x1] }
 0x11d   : > { %v3985_v26 = vadd.f32 %v1016_v48, %v948_v45  ;;  %v1063_v50 = vrot.slane %v1059_v30, 1  ;;  %v1064_v18 = vrot.slane %v1059_v30, 2  ;;  %v1065_v28 = vrot.slane %v1059_v30, 3  ;;  %v1048_v63 = vld [vmem:[#allocation2 + $0xe8] sm:$0x1] }
 0x11e   : > { %v1066_v34 = vrot.slane %v1059_v30, 4  ;;  %v1067_v56 = vrot.slane %v1059_v30, 5  ;;  %v1068_v60 = vrot.slane %v1059_v30, 6  ;;  %v1069_v3 = vrot.slane %v1059_v30, 7 }
 0x11f   : > { %v951_v16 = vadd.f32 %v3957_v44, %v3932_v39  ;;  %v952_v7 = vadd.f32 %v3959_v1, %v3934_v51  ;;  %v1093_v4 = vmul.f32 %v1059_v30, %v1041_v41  ;;  %v1094_v61 = vmul.f32 %v1063_v50, %v1042_v17  ;;  %v965_v44 = vld [vmem:[#allocation2 + $0x107] sm:$0x1]  ;;  %v1062_v30 = vpop.permute.xlu1 %1061  ;;  %v1049_v17 = vld [vmem:[#allocation2 + $0x108] sm:$0x1] }
 0x120   : > { %v953_v42 = vadd.f32 %v3961_v54, %v3936_v57  ;;  %v954_v9 = vadd.f32 %v3963_v2, %v3938_v58  ;;  %v955_v45 = vadd.f32 %v3965_v23, %v3940_v46  ;;  %v956_v39 = vadd.f32 %v3967_v55, %v3942_v62  ;;  %v967_v57 = vld [vmem:[#allocation2 + $0x147] sm:$0x1] }
 0x121   : > { %v3999_v52 = vmul.f32 %v1064_v18, %v1043_v43  ;;  %v4001_v51 = vmul.f32 %v1065_v28, %v1044_v59  ;;  %v4003_v1 = vmul.f32 %v1066_v34, %v1045_v49  ;;  %v4005_v38 = vmul.f32 %v1067_v56, %v1046_v22  ;;  %v968_v54 = vld [vmem:[#allocation2 + $0x167] sm:$0x1]  ;;  %v1050_v43 = vld [vmem:[#allocation2 + $0x128] sm:$0x1] }
 0x122   : > { %v4007_v47 = vmul.f32 %v1068_v60, %v1047_v19  ;;  %v4009_v58 = vmul.f32 %v1069_v3, %v1048_v63  ;;  %v4011_v46 = vadd.f32 %v1093_v4, %v1025_v27  ;;  %v4013_v2 = vadd.f32 %v1094_v61, %v1026_v20  ;;  %v969_v62 = vld [vmem:[#allocation2 + $0x187] sm:$0x1]  ;;  %v1051_v28 = vld [vmem:[#allocation2 + $0x148] sm:$0x1] }
 0x123   : > { %v970_v23 = vld [vmem:[#allocation2 + $0x1a7] sm:$0x1]  ;;  %v986_v0 = vrot.slane %v978_v37, 1  ;;  %v987_v32 = vrot.slane %v978_v37, 2  ;;  %v988_v29 = vrot.slane %v978_v37, 3  ;;  %v989_v13 = vrot.slane %v978_v37, 4 }
 0x124   : > { %v971_v55 = vld [vmem:[#allocation2 + $0x1c7] sm:$0x1]  ;;  %v990_v33 = vrot.slane %v978_v37, 5  ;;  %v991_v5 = vrot.slane %v978_v37, 6  ;;  %v992_v10 = vrot.slane %v978_v37, 7  ;;  %v1017_v36 = vmul.f32 %v978_v37, %v965_v44 }
 0x125   : > { %v1018_v14 = vmul.f32 %v986_v0, %v966_v15  ;;  %v1019_v21 = vmul.f32 %v987_v32, %v967_v57  ;;  %v1020_v24 = vmul.f32 %v988_v29, %v968_v54  ;;  %v1021_v25 = vmul.f32 %v989_v13, %v969_v62  ;;  %v1052_v22 = vld [vmem:[#allocation2 + $0x168] sm:$0x1] }
 0x126   : > { %v1022_v48 = vmul.f32 %v990_v33, %v970_v23  ;;  %v1023_v27 = vmul.f32 %v991_v5, %v971_v55  ;;  %v1024_v20 = vmul.f32 %v992_v10, %v972_v53  ;;  %v1033_v41 = vadd.f32 %v1017_v36, %v3969_v6  ;;  %v1053_v34 = vld [vmem:[#allocation2 + $0x188] sm:$0x1]  ;;  %v1146_v55 = vpop.permute.xlu0 %1145  ;;  %v1133_v33 = vld [vmem:[#allocation2 + $0x109] sm:$0x1] }
 0x127   : > { %v1034_v59 = vadd.f32 %v1018_v14, %v3971_v8  ;;  %v1035_v49 = vadd.f32 %v1019_v21, %v951_v16  ;;  %v1036_v50 = vadd.f32 %v1020_v24, %v952_v7  ;;  %v1037_v18 = vadd.f32 %v1021_v25, %v953_v42  ;;  %v1054_v19 = vld [vmem:[#allocation2 + $0x1a8] sm:$0x1]  ;;  %v1134_v5 = vld [vmem:[#allocation2 + $0x129] sm:$0x1] }
 0x128   : > { %v1038_v56 = vadd.f32 %v1022_v48, %v954_v9  ;;  %v1039_v60 = vadd.f32 %v1023_v27, %v955_v45  ;;  %v1040_v3 = vadd.f32 %v1024_v20, %v956_v39  ;;  %v1055_v63 = vld [vmem:[#allocation2 + $0x1c8] sm:$0x1]  ;;  %v1070_v4 = vrot.slane %v1062_v30, 1  ;;  %v1135_v10 = vld [vmem:[#allocation2 + $0x149] sm:$0x1] }
 0x129   : > { %v1056_v61 = vld [vmem:[#allocation2 + $0x1e8] sm:$0x1]  ;;  %v1071_v37 = vrot.slane %v1062_v30, 2  ;;  %v1072_v44 = vrot.slane %v1062_v30, 3  ;;  %v1073_v6 = vrot.slane %v1062_v30, 4  ;;  %v1074_v15 = vrot.slane %v1062_v30, 5 }
 0x12a   : > { %v1075_v57 = vrot.slane %v1062_v30, 6  ;;  %v1076_v54 = vrot.slane %v1062_v30, 7  ;;  %v1101_v8 = vmul.f32 %v1062_v30, %v1049_v17  ;;  %v1102_v16 = vmul.f32 %v1070_v4, %v1050_v43  ;;  %v1136_v21 = vld [vmem:[#allocation2 + $0x169] sm:$0x1] }
 0x12b   : > { %v1103_v7 = vmul.f32 %v1071_v37, %v1051_v28  ;;  %v1104_v42 = vmul.f32 %v1072_v44, %v1052_v22  ;;  %v1105_v62 = vmul.f32 %v1073_v6, %v1053_v34  ;;  %v1106_v23 = vmul.f32 %v1074_v15, %v1054_v19  ;;  %v1137_v24 = vld [vmem:[#allocation2 + $0x189] sm:$0x1]  ;;  %v1143_v19 = vpop.permute.xlu1 %1142 }
 0x12c   : > { %v1107_v9 = vmul.f32 %v1075_v57, %v1055_v63  ;;  %v1108_v45 = vmul.f32 %v1076_v54, %v1056_v61  ;;  %v1117_v39 = vadd.f32 %v1101_v8, %v1033_v41  ;;  %v1118_v53 = vadd.f32 %v1102_v16, %v1034_v59  ;;  %v1138_v48 = vld [vmem:[#allocation2 + $0x1a9] sm:$0x1] }
 0x12d   : > { %v4017_v0 = vadd.f32 %v1103_v7, %v1035_v49  ;;  %v4019_v32 = vadd.f32 %v1104_v42, %v1036_v50  ;;  %v4021_v29 = vadd.f32 %v1105_v62, %v1037_v18  ;;  %v4023_v13 = vadd.f32 %v1106_v23, %v1038_v56  ;;  %v1139_v59 = vld [vmem:[#allocation2 + $0x1c9] sm:$0x1] }
 0x12e   : > { %v4025_v36 = vadd.f32 %v1107_v9, %v1039_v60  ;;  %v4027_v14 = vadd.f32 %v1108_v45, %v1040_v3  ;;  %v1154_v25 = vrot.slane %v1146_v55, 1  ;;  %v1155_v30 = vrot.slane %v1146_v55, 2  ;;  %v1140_v49 = vld [vmem:[#allocation2 + $0x1e9] sm:$0x1] }
 0x12f   : > { %v1156_v27 = vrot.slane %v1146_v55, 3  ;;  %v1157_v20 = vrot.slane %v1146_v55, 4  ;;  %v1158_v41 = vrot.slane %v1146_v55, 5  ;;  %v1159_v17 = vrot.slane %v1146_v55, 6  ;;  %v1125_v3 = vld [vmem:[#allocation2 + $0x9] sm:$0x1] }
 0x130   : > { %v1111_v43 = vadd.f32 %v3999_v52, %v3975_v11  ;;  %v1160_v50 = vrot.slane %v1146_v55, 7  ;;  %v1185_v18 = vmul.f32 %v1146_v55, %v1133_v33  ;;  %v1186_v28 = vmul.f32 %v1154_v25, %v1134_v5  ;;  %v1130_v61 = vld [vmem:[#allocation2 + $0xa9] sm:$0x1]  ;;  %v1209_v33 = vld [vmem:[#allocation2 + $0xa] sm:$0x1]  ;;  %v1227_v5 = vpop.permute.xlu1 %1226 }
 0x131   : > { %v1112_v22 = vadd.f32 %v4001_v51, %v3977_v40  ;;  %v1113_v34 = vadd.f32 %v4003_v1, %v3979_v31  ;;  %v1114_v56 = vadd.f32 %v4005_v38, %v3981_v12  ;;  %v1115_v60 = vadd.f32 %v4007_v47, %v3983_v35  ;;  %v1126_v40 = vld [vmem:[#allocation2 + $0x29] sm:$0x1]  ;;  %v1210_v25 = vld [vmem:[#allocation2 + $0x2a] sm:$0x1] }
 0x132   : > { %v1116_v11 = vadd.f32 %v4009_v58, %v3985_v26  ;;  %v4041_v52 = vmul.f32 %v1155_v30, %v1135_v10  ;;  %v4043_v63 = vmul.f32 %v1156_v27, %v1136_v21  ;;  %v4045_v4 = vmul.f32 %v1157_v20, %v1137_v24  ;;  %v1127_v51 = vld [vmem:[#allocation2 + $0x49] sm:$0x1]  ;;  %v1211_v30 = vld [vmem:[#allocation2 + $0x4a] sm:$0x1] }
 0x133   : > { %v1128_v31 = vld [vmem:[#allocation2 + $0x69] sm:$0x1]  ;;  %v4047_v1 = vmul.f32 %v1158_v41, %v1138_v48  ;;  %v4049_v12 = vmul.f32 %v1159_v17, %v1139_v59  ;;  %v4051_v38 = vmul.f32 %v1160_v50, %v1140_v49  ;;  %v4053_v35 = vadd.f32 %v1185_v18, %v1117_v39  ;;  %v1212_v48 = vld [vmem:[#allocation2 + $0x6a] sm:$0x1] }
 0x134   : > { %v1129_v47 = vld [vmem:[#allocation2 + $0x89] sm:$0x1]  ;;  %v4055_v58 = vadd.f32 %v1186_v28, %v1118_v53  ;;  %v1147_v44 = vrot.slane %v1143_v19, 1  ;;  %v1148_v6 = vrot.slane %v1143_v19, 2  ;;  %v1149_v15 = vrot.slane %v1143_v19, 3 }
 0x135   : > { %v1131_v26 = vld [vmem:[#allocation2 + $0xc9] sm:$0x1]  ;;  %v1150_v57 = vrot.slane %v1143_v19, 4  ;;  %v1151_v54 = vrot.slane %v1143_v19, 5  ;;  %v1152_v8 = vrot.slane %v1143_v19, 6  ;;  %v1153_v16 = vrot.slane %v1143_v19, 7 }
 0x136   : > { %v1132_v37 = vld [vmem:[#allocation2 + $0xe9] sm:$0x1]  ;;  %v1177_v7 = vmul.f32 %v1143_v19, %v1125_v3  ;;  %v1178_v42 = vmul.f32 %v1147_v44, %v1126_v40  ;;  %v1179_v62 = vmul.f32 %v1148_v6, %v1127_v51  ;;  %v1180_v23 = vmul.f32 %v1149_v15, %v1128_v31  ;;  %v1213_v59 = vld [vmem:[#allocation2 + $0x8a] sm:$0x1] }
 0x137   : > { %v1181_v55 = vmul.f32 %v1150_v57, %v1129_v47  ;;  %v1182_v9 = vmul.f32 %v1151_v54, %v1130_v61  ;;  %v1183_v45 = vmul.f32 %v1152_v8, %v1131_v26  ;;  %v1184_v39 = vmul.f32 %v1153_v16, %v1132_v37  ;;  %v1214_v49 = vld [vmem:[#allocation2 + $0xaa] sm:$0x1]  ;;  %v1293_v57 = vld [vmem:[#allocation2 + $0xb] sm:$0x1] }
 0x138   : > { %v1193_v53 = vadd.f32 %v1177_v7, %v4011_v46  ;;  %v1194_v10 = vadd.f32 %v1178_v42, %v4013_v2  ;;  %v1195_v21 = vadd.f32 %v1179_v62, %v1111_v43  ;;  %v1196_v24 = vadd.f32 %v1180_v23, %v1112_v22  ;;  %v1215_v50 = vld [vmem:[#allocation2 + $0xca] sm:$0x1]  ;;  %v1294_v54 = vld [vmem:[#allocation2 + $0x2b] sm:$0x1] }
 0x139   : > { %v1197_v27 = vadd.f32 %v1181_v55, %v1113_v34  ;;  %v1198_v20 = vadd.f32 %v1182_v9, %v1114_v56  ;;  %v1199_v41 = vadd.f32 %v1183_v45, %v1115_v60  ;;  %v1200_v17 = vadd.f32 %v1184_v39, %v1116_v11  ;;  %v1216_v18 = vld [vmem:[#allocation2 + $0xea] sm:$0x1]  ;;  %v1311_v34 = vpop.permute.xlu0 %1310  ;;  %v1295_v8 = vld [vmem:[#allocation2 + $0x4b] sm:$0x1] }
 0x13a   : > { %v1231_v28 = vrot.slane %v1227_v5, 1  ;;  %v1232_v3 = vrot.slane %v1227_v5, 2  ;;  %v1233_v19 = vrot.slane %v1227_v5, 3  ;;  %v1234_v40 = vrot.slane %v1227_v5, 4  ;;  %v1296_v62 = vld [vmem:[#allocation2 + $0x6b] sm:$0x1] }
 0x13b   : > { %v1235_v46 = vrot.slane %v1227_v5, 5  ;;  %v1236_v51 = vrot.slane %v1227_v5, 6  ;;  %v1237_v2 = vrot.slane %v1227_v5, 7  ;;  %v1261_v43 = vmul.f32 %v1227_v5, %v1209_v33  ;;  %v1297_v23 = vld [vmem:[#allocation2 + $0x8b] sm:$0x1] }
 0x13c   : > { %v1262_v22 = vmul.f32 %v1231_v28, %v1210_v25  ;;  %v1263_v31 = vmul.f32 %v1232_v3, %v1211_v30  ;;  %v1264_v47 = vmul.f32 %v1233_v19, %v1212_v48  ;;  %v1265_v61 = vmul.f32 %v1234_v40, %v1213_v59  ;;  %v1298_v9 = vld [vmem:[#allocation2 + $0xab] sm:$0x1]  ;;  %v1223_v28 = vld [vmem:[#allocation2 + $0x1ca] sm:$0x1] }
 0x13d   : > { %v1266_v56 = vmul.f32 %v1235_v46, %v1214_v49  ;;  %v1267_v60 = vmul.f32 %v1236_v51, %v1215_v50  ;;  %v1268_v11 = vmul.f32 %v1237_v2, %v1216_v18  ;;  %v1277_v26 = vadd.f32 %v1261_v43, %v1193_v53  ;;  %v1299_v53 = vld [vmem:[#allocation2 + $0xcb] sm:$0x1]  ;;  %v1224_v40 = vld [vmem:[#allocation2 + $0x1ea] sm:$0x1] }
 0x13e   : > { %v1278_v37 = vadd.f32 %v1262_v22, %v1194_v10  ;;  %v4059_v44 = vadd.f32 %v1263_v31, %v1195_v21  ;;  %v4061_v6 = vadd.f32 %v1264_v47, %v1196_v24  ;;  %v4063_v15 = vadd.f32 %v1265_v61, %v1197_v27  ;;  %v1300_v10 = vld [vmem:[#allocation2 + $0xeb] sm:$0x1] }
 0x13f   : > { %v4065_v16 = vadd.f32 %v1266_v56, %v1198_v20  ;;  %v4067_v7 = vadd.f32 %v1267_v60, %v1199_v41  ;;  %v4069_v42 = vadd.f32 %v1268_v11, %v1200_v17  ;;  %v1315_v55 = vrot.slane %v1311_v34, 1  ;;  %v1230_v17 = vpop.permute.xlu1 %1229 }
 0x140   : > { %v1316_v45 = vrot.slane %v1311_v34, 2  ;;  %v1317_v39 = vrot.slane %v1311_v34, 3  ;;  %v1318_v33 = vrot.slane %v1311_v34, 4  ;;  %v1319_v5 = vrot.slane %v1311_v34, 5 }
 0x141   : > { %v1320_v21 = vrot.slane %v1311_v34, 6  ;;  %v1321_v24 = vrot.slane %v1311_v34, 7  ;;  %v1345_v25 = vmul.f32 %v1311_v34, %v1293_v57  ;;  %v1346_v30 = vmul.f32 %v1315_v55, %v1294_v54  ;;  %v1303_v55 = vld [vmem:[#allocation2 + $0x14b] sm:$0x1] }
 0x142   : > { %v1203_v48 = vadd.f32 %v4041_v52, %v4017_v0  ;;  %v1204_v27 = vadd.f32 %v4043_v63, %v4019_v32  ;;  %v1205_v20 = vadd.f32 %v4045_v4, %v4021_v29  ;;  %v1206_v41 = vadd.f32 %v4047_v1, %v4023_v13  ;;  %v1217_v0 = vld [vmem:[#allocation2 + $0x10a] sm:$0x1] }
 0x143   : > { %v1207_v59 = vadd.f32 %v4049_v12, %v4025_v36  ;;  %v1208_v49 = vadd.f32 %v4051_v38, %v4027_v14  ;;  %v4083_v50 = vmul.f32 %v1316_v45, %v1295_v8  ;;  %v4085_v18 = vmul.f32 %v1317_v39, %v1296_v62  ;;  %v1218_v52 = vld [vmem:[#allocation2 + $0x12a] sm:$0x1] }
 0x144   : > { %v4087_v32 = vmul.f32 %v1318_v33, %v1297_v23  ;;  %v4089_v63 = vmul.f32 %v1319_v5, %v1298_v9  ;;  %v4091_v29 = vmul.f32 %v1320_v21, %v1299_v53  ;;  %v4093_v13 = vmul.f32 %v1321_v24, %v1300_v10  ;;  %v1219_v4 = vld [vmem:[#allocation2 + $0x14a] sm:$0x1]  ;;  %v1302_v23 = vld [vmem:[#allocation2 + $0x12b] sm:$0x1] }
 0x145   : > { %v1220_v1 = vld [vmem:[#allocation2 + $0x16a] sm:$0x1]  ;;  %v4095_v12 = vadd.f32 %v1345_v25, %v1277_v26  ;;  %v4097_v14 = vadd.f32 %v1346_v30, %v1278_v37  ;;  %v1238_v3 = vrot.slane %v1230_v17, 1  ;;  %v1239_v19 = vrot.slane %v1230_v17, 2  ;;  %v1301_v26 = vld [vmem:[#allocation2 + $0x10b] sm:$0x1]  ;;  %v1314_v37 = vpop.permute.xlu1 %1313 }
 0x146   : > { %v1221_v36 = vld [vmem:[#allocation2 + $0x18a] sm:$0x1]  ;;  %v1240_v46 = vrot.slane %v1230_v17, 3  ;;  %v1241_v51 = vrot.slane %v1230_v17, 4  ;;  %v1242_v2 = vrot.slane %v1230_v17, 5  ;;  %v1243_v43 = vrot.slane %v1230_v17, 6 }
 0x147   : > { %v1222_v38 = vld [vmem:[#allocation2 + $0x1aa] sm:$0x1]  ;;  %v1244_v22 = vrot.slane %v1230_v17, 7  ;;  %v1269_v31 = vmul.f32 %v1230_v17, %v1217_v0  ;;  %v1270_v47 = vmul.f32 %v1238_v3, %v1218_v52  ;;  %v1271_v61 = vmul.f32 %v1239_v19, %v1219_v4  ;;  %v1304_v9 = vld [vmem:[#allocation2 + $0x16b] sm:$0x1] }
 0x148   : > { %v1272_v34 = vmul.f32 %v1240_v46, %v1220_v1  ;;  %v1273_v56 = vmul.f32 %v1241_v51, %v1221_v36  ;;  %v1274_v60 = vmul.f32 %v1242_v2, %v1222_v38  ;;  %v1275_v11 = vmul.f32 %v1243_v43, %v1223_v28  ;;  %v1305_v53 = vld [vmem:[#allocation2 + $0x18b] sm:$0x1]  ;;  %v1398_v28 = vpop.permute.xlu0 %1397  ;;  %v1385_v46 = vld [vmem:[#allocation2 + $0x10c] sm:$0x1] }
 0x149   : > { %v1276_v57 = vmul.f32 %v1244_v22, %v1224_v40  ;;  %v1285_v54 = vadd.f32 %v1269_v31, %v4053_v35  ;;  %v1286_v8 = vadd.f32 %v1270_v47, %v4055_v58  ;;  %v1287_v62 = vadd.f32 %v1271_v61, %v1203_v48  ;;  %v1306_v10 = vld [vmem:[#allocation2 + $0x1ab] sm:$0x1]  ;;  %v1386_v51 = vld [vmem:[#allocation2 + $0x12c] sm:$0x1] }
 0x14a   : > { %v1288_v45 = vadd.f32 %v1272_v34, %v1204_v27  ;;  %v1289_v39 = vadd.f32 %v1273_v56, %v1205_v20  ;;  %v1290_v33 = vadd.f32 %v1274_v60, %v1206_v41  ;;  %v1291_v5 = vadd.f32 %v1275_v11, %v1207_v59  ;;  %v1307_v21 = vld [vmem:[#allocation2 + $0x1cb] sm:$0x1]  ;;  %v1387_v47 = vld [vmem:[#allocation2 + $0x14c] sm:$0x1] }
 0x14b   : > { %v1292_v24 = vadd.f32 %v1276_v57, %v1208_v49  ;;  %v1308_v25 = vld [vmem:[#allocation2 + $0x1eb] sm:$0x1]  ;;  %v1322_v30 = vrot.slane %v1314_v37, 1  ;;  %v1323_v17 = vrot.slane %v1314_v37, 2  ;;  %v1324_v0 = vrot.slane %v1314_v37, 3 }
 0x14c   : > { %v1325_v52 = vrot.slane %v1314_v37, 4  ;;  %v1326_v35 = vrot.slane %v1314_v37, 5  ;;  %v1327_v4 = vrot.slane %v1314_v37, 6  ;;  %v1328_v58 = vrot.slane %v1314_v37, 7  ;;  %v1388_v61 = vld [vmem:[#allocation2 + $0x16c] sm:$0x1] }
 0x14d   : > { %v1353_v48 = vmul.f32 %v1314_v37, %v1301_v26  ;;  %v1354_v1 = vmul.f32 %v1322_v30, %v1302_v23  ;;  %v1355_v36 = vmul.f32 %v1323_v17, %v1303_v55  ;;  %v1356_v38 = vmul.f32 %v1324_v0, %v1304_v9  ;;  %v1389_v34 = vld [vmem:[#allocation2 + $0x18c] sm:$0x1] }
 0x14e   : > { %v1357_v27 = vmul.f32 %v1325_v52, %v1305_v53  ;;  %v1358_v20 = vmul.f32 %v1326_v35, %v1306_v10  ;;  %v1359_v41 = vmul.f32 %v1327_v4, %v1307_v21  ;;  %v1360_v59 = vmul.f32 %v1328_v58, %v1308_v25  ;;  %v1390_v56 = vld [vmem:[#allocation2 + $0x1ac] sm:$0x1] }
 0x14f   : > { %v1369_v3 = vadd.f32 %v1353_v48, %v1285_v54  ;;  %v1370_v19 = vadd.f32 %v1354_v1, %v1286_v8  ;;  %v1371_v49 = vadd.f32 %v1355_v36, %v1287_v62  ;;  %v1372_v40 = vadd.f32 %v1356_v38, %v1288_v45  ;;  %v1391_v57 = vld [vmem:[#allocation2 + $0x1cc] sm:$0x1] }
 0x150   : > { %v4101_v2 = vadd.f32 %v1357_v27, %v1289_v39  ;;  %v4103_v43 = vadd.f32 %v1358_v20, %v1290_v33  ;;  %v4105_v22 = vadd.f32 %v1359_v41, %v1291_v5  ;;  %v4107_v31 = vadd.f32 %v1360_v59, %v1292_v24  ;;  %v1392_v39 = vld [vmem:[#allocation2 + $0x1ec] sm:$0x1]  ;;  %v1395_v5 = vpop.permute.xlu1 %1394 }
 0x151   : > { %v1406_v60 = vrot.slane %v1398_v28, 1  ;;  %v1407_v11 = vrot.slane %v1398_v28, 2  ;;  %v1408_v26 = vrot.slane %v1398_v28, 3  ;;  %v1409_v37 = vrot.slane %v1398_v28, 4  ;;  %v1380_v30 = vld [vmem:[#allocation2 + $0x6c] sm:$0x1] }
 0x152   : > { %v1410_v54 = vrot.slane %v1398_v28, 5  ;;  %v1411_v8 = vrot.slane %v1398_v28, 6  ;;  %v1412_v62 = vrot.slane %v1398_v28, 7  ;;  %v1437_v23 = vmul.f32 %v1398_v28, %v1385_v46  ;;  %v1381_v17 = vld [vmem:[#allocation2 + $0x8c] sm:$0x1] }
 0x153   : > { %v1363_v55 = vadd.f32 %v4083_v50, %v4059_v44  ;;  %v1364_v9 = vadd.f32 %v4085_v18, %v4061_v6  ;;  %v1365_v45 = vadd.f32 %v4087_v32, %v4063_v15  ;;  %v1438_v33 = vmul.f32 %v1406_v60, %v1386_v51  ;;  %v1377_v44 = vld [vmem:[#allocation2 + $0xc] sm:$0x1] }
 0x154   : > { %v1366_v53 = vadd.f32 %v4089_v63, %v4065_v16  ;;  %v1367_v10 = vadd.f32 %v4091_v29, %v4067_v7  ;;  %v1368_v21 = vadd.f32 %v4093_v13, %v4069_v42  ;;  %v1439_v24 = vmul.f32 %v1407_v11, %v1387_v47  ;;  %v1378_v50 = vld [vmem:[#allocation2 + $0x2c] sm:$0x1]  ;;  %v1479_v28 = vpop.permute.xlu1 %1478  ;;  %v1461_v47 = vld [vmem:[#allocation2 + $0xd] sm:$0x1] }
 0x155   : > { %v1440_v25 = vmul.f32 %v1408_v26, %v1388_v61  ;;  %v4121_v6 = vmul.f32 %v1409_v37, %v1389_v34  ;;  %v4123_v18 = vmul.f32 %v1410_v54, %v1390_v56  ;;  %v4125_v15 = vmul.f32 %v1411_v8, %v1391_v57  ;;  %v1379_v32 = vld [vmem:[#allocation2 + $0x4c] sm:$0x1]  ;;  %v1462_v61 = vld [vmem:[#allocation2 + $0x2d] sm:$0x1] }
 0x156   : > { %v4127_v16 = vmul.f32 %v1412_v62, %v1392_v39  ;;  %v4129_v63 = vadd.f32 %v1437_v23, %v1369_v3  ;;  %v4131_v7 = vadd.f32 %v1438_v33, %v1370_v19  ;;  %v1382_v42 = vld [vmem:[#allocation2 + $0xac] sm:$0x1]  ;;  %v1399_v13 = vrot.slane %v1395_v5, 1  ;;  %v1463_v26 = vld [vmem:[#allocation2 + $0x4d] sm:$0x1] }
 0x157   : > { %v1383_v29 = vld [vmem:[#allocation2 + $0xcc] sm:$0x1]  ;;  %v1400_v52 = vrot.slane %v1395_v5, 2  ;;  %v1401_v35 = vrot.slane %v1395_v5, 3  ;;  %v1402_v4 = vrot.slane %v1395_v5, 4  ;;  %v1403_v58 = vrot.slane %v1395_v5, 5 }
 0x158   : > { %v1384_v0 = vld [vmem:[#allocation2 + $0xec] sm:$0x1]  ;;  %v1404_v48 = vrot.slane %v1395_v5, 6  ;;  %v1405_v1 = vrot.slane %v1395_v5, 7  ;;  %v1429_v36 = vmul.f32 %v1395_v5, %v1377_v44  ;;  %v1430_v38 = vmul.f32 %v1399_v13, %v1378_v50  ;;  %v1464_v37 = vld [vmem:[#allocation2 + $0x6d] sm:$0x1] }
 0x159   : > { %v1431_v27 = vmul.f32 %v1400_v52, %v1379_v32  ;;  %v1432_v20 = vmul.f32 %v1401_v35, %v1380_v30  ;;  %v1433_v41 = vmul.f32 %v1402_v4, %v1381_v17  ;;  %v1434_v59 = vmul.f32 %v1403_v58, %v1382_v42  ;;  %v1465_v57 = vld [vmem:[#allocation2 + $0x8d] sm:$0x1]  ;;  %v1563_v17 = vpop.permute.xlu0 %1562  ;;  %v1545_v13 = vld [vmem:[#allocation2 + $0xe] sm:$0x1] }
 0x15a   : > { %v4133_v3 = vadd.f32 %v1439_v24, %v1371_v49  ;;  %v4135_v19 = vadd.f32 %v1440_v25, %v1372_v40  ;;  %v1435_v46 = vmul.f32 %v1404_v48, %v1383_v29  ;;  %v1436_v51 = vmul.f32 %v1405_v1, %v1384_v0  ;;  %v1466_v62 = vld [vmem:[#allocation2 + $0xad] sm:$0x1]  ;;  %v1546_v58 = vld [vmem:[#allocation2 + $0x2e] sm:$0x1] }
 0x15b   : > { %v1445_v34 = vadd.f32 %v1429_v36, %v4095_v12  ;;  %v1446_v56 = vadd.f32 %v1430_v38, %v4097_v14  ;;  %v1447_v60 = vadd.f32 %v1431_v27, %v1363_v55  ;;  %v1448_v11 = vadd.f32 %v1432_v20, %v1364_v9  ;;  %v1467_v49 = vld [vmem:[#allocation2 + $0xcd] sm:$0x1]  ;;  %v1548_v48 = vld [vmem:[#allocation2 + $0x6e] sm:$0x1] }
 0x15c   : > { %v1449_v54 = vadd.f32 %v1433_v41, %v1365_v45  ;;  %v1450_v8 = vadd.f32 %v1434_v59, %v1366_v53  ;;  %v1483_v23 = vrot.slane %v1479_v28, 1  ;;  %v1484_v40 = vrot.slane %v1479_v28, 2  ;;  %v1468_v39 = vld [vmem:[#allocation2 + $0xed] sm:$0x1]  ;;  %v1550_v20 = vld [vmem:[#allocation2 + $0xae] sm:$0x1] }
 0x15d   : > { %v1485_v33 = vrot.slane %v1479_v28, 3  ;;  %v1486_v5 = vrot.slane %v1479_v28, 4  ;;  %v1487_v24 = vrot.slane %v1479_v28, 5  ;;  %v1488_v44 = vrot.slane %v1479_v28, 6 }
 0x15e   : > { %v1451_v50 = vadd.f32 %v1435_v46, %v1367_v10  ;;  %v1489_v12 = vrot.slane %v1479_v28, 7  ;;  %v1513_v25 = vmul.f32 %v1479_v28, %v1461_v47  ;;  %v1514_v14 = vmul.f32 %v1483_v23, %v1462_v61  ;;  %v1547_v10 = vld [vmem:[#allocation2 + $0x4e] sm:$0x1] }
 0x15f   : > { %v1452_v55 = vadd.f32 %v1436_v51, %v1368_v21  ;;  %v1517_v9 = vmul.f32 %v1486_v5, %v1465_v57  ;;  %v1518_v32 = vmul.f32 %v1487_v24, %v1466_v62  ;;  %v1519_v30 = vmul.f32 %v1488_v44, %v1467_v49  ;;  %v1549_v21 = vld [vmem:[#allocation2 + $0x8e] sm:$0x1]  ;;  %v1470_v5 = vld [vmem:[#allocation2 + $0x12d] sm:$0x1] }
 0x160   : > { %v1515_v45 = vmul.f32 %v1484_v40, %v1463_v26  ;;  %v1516_v53 = vmul.f32 %v1485_v33, %v1464_v37  ;;  %v1520_v42 = vmul.f32 %v1489_v12, %v1468_v39  ;;  %v1529_v29 = vadd.f32 %v1513_v25, %v1445_v34  ;;  %v1551_v61 = vld [vmem:[#allocation2 + $0xce] sm:$0x1]  ;;  %v1482_v37 = vpop.permute.xlu1 %1481  ;;  %v1469_v40 = vld [vmem:[#allocation2 + $0x10d] sm:$0x1] }
 0x161   : > { %v1530_v0 = vadd.f32 %v1514_v14, %v1446_v56  ;;  %v1533_v52 = vadd.f32 %v1517_v9, %v1449_v54  ;;  %v1534_v35 = vadd.f32 %v1518_v32, %v1450_v8  ;;  %v4139_v4 = vadd.f32 %v1519_v30, %v1451_v50  ;;  %v1552_v34 = vld [vmem:[#allocation2 + $0xee] sm:$0x1]  ;;  %v1471_v24 = vld [vmem:[#allocation2 + $0x14d] sm:$0x1] }
 0x162   : > { %v4141_v1 = vadd.f32 %v1520_v42, %v1452_v55  ;;  %v1567_v36 = vrot.slane %v1563_v17, 1  ;;  %v1568_v38 = vrot.slane %v1563_v17, 2  ;;  %v1569_v27 = vrot.slane %v1563_v17, 3  ;;  %v1472_v44 = vld [vmem:[#allocation2 + $0x16d] sm:$0x1] }
 0x163   : > { %v1570_v41 = vrot.slane %v1563_v17, 4  ;;  %v1571_v59 = vrot.slane %v1563_v17, 5  ;;  %v1572_v28 = vrot.slane %v1563_v17, 6  ;;  %v1573_v46 = vrot.slane %v1563_v17, 7  ;;  %v1476_v50 = vld [vmem:[#allocation2 + $0x1ed] sm:$0x1] }
 0x164   : > { %v4145_v51 = vadd.f32 %v4121_v6, %v4101_v2  ;;  %v1458_v47 = vadd.f32 %v4123_v18, %v4103_v43  ;;  %v1597_v56 = vmul.f32 %v1563_v17, %v1545_v13  ;;  %v1598_v26 = vmul.f32 %v1567_v36, %v1546_v58  ;;  %v1473_v12 = vld [vmem:[#allocation2 + $0x18d] sm:$0x1]  ;;  %v1553_v36 = vld [vmem:[#allocation2 + $0x10e] sm:$0x1] }
 0x165   : > { %v1459_v57 = vadd.f32 %v4125_v15, %v4105_v22  ;;  %v1460_v54 = vadd.f32 %v4127_v16, %v4107_v31  ;;  %v1531_v8 = vadd.f32 %v1515_v45, %v1447_v60  ;;  %v1532_v62 = vadd.f32 %v1516_v53, %v1448_v11  ;;  %v1474_v22 = vld [vmem:[#allocation2 + $0x1ad] sm:$0x1]  ;;  %v1566_v53 = vpop.permute.xlu1 %1565 }
 0x166   : > { %v1599_v49 = vmul.f32 %v1568_v38, %v1547_v10  ;;  %v1600_v23 = vmul.f32 %v1569_v27, %v1548_v48  ;;  %v1601_v2 = vmul.f32 %v1570_v41, %v1549_v21  ;;  %v1602_v6 = vmul.f32 %v1571_v59, %v1550_v20  ;;  %v1475_v15 = vld [vmem:[#allocation2 + $0x1cd] sm:$0x1]  ;;  %v1554_v38 = vld [vmem:[#allocation2 + $0x12e] sm:$0x1] }
 0x167   : > { %v1603_v39 = vmul.f32 %v1572_v28, %v1551_v61  ;;  %v1604_v43 = vmul.f32 %v1573_v46, %v1552_v34  ;;  %v4153_v18 = vadd.f32 %v1597_v56, %v1529_v29  ;;  %v4155_v33 = vadd.f32 %v1598_v26, %v1530_v0  ;;  %v1555_v27 = vld [vmem:[#allocation2 + $0x14e] sm:$0x1] }
 0x168   : > { %v1490_v31 = vrot.slane %v1482_v37, 1  ;;  %v1491_v16 = vrot.slane %v1482_v37, 2  ;;  %v1492_v60 = vrot.slane %v1482_v37, 3  ;;  %v1493_v11 = vrot.slane %v1482_v37, 4  ;;  %v1557_v28 = vld [vmem:[#allocation2 + $0x18e] sm:$0x1] }
 0x169   : > { %v1494_v25 = vrot.slane %v1482_v37, 5  ;;  %v1495_v14 = vrot.slane %v1482_v37, 6  ;;  %v1496_v55 = vrot.slane %v1482_v37, 7  ;;  %v1521_v9 = vmul.f32 %v1482_v37, %v1469_v40  ;;  %v1560_v46 = vld [vmem:[#allocation2 + $0x1ee] sm:$0x1] }
 0x16a   : > { %v4157_v32 = vadd.f32 %v1599_v49, %v1531_v8  ;;  %v4159_v30 = vadd.f32 %v1600_v23, %v1532_v62  ;;  %v4161_v17 = vadd.f32 %v1601_v2, %v1533_v52  ;;  %v4163_v45 = vadd.f32 %v1602_v6, %v1534_v35  ;;  %v1556_v52 = vld [vmem:[#allocation2 + $0x16e] sm:$0x1]  ;;  %v1650_v6 = vpop.permute.xlu0 %1649 }
 0x16b   : > { %v1526_v42 = vmul.f32 %v1494_v25, %v1474_v22  ;;  %v1527_v29 = vmul.f32 %v1495_v14, %v1475_v15  ;;  %v1528_v13 = vmul.f32 %v1496_v55, %v1476_v50  ;;  %v1537_v0 = vadd.f32 %v1521_v9, %v4129_v63  ;;  %v1558_v37 = vld [vmem:[#allocation2 + $0x1ae] sm:$0x1]  ;;  %v1637_v50 = vld [vmem:[#allocation2 + $0x10f] sm:$0x1] }
 0x16c   : > { %v1522_v58 = vmul.f32 %v1490_v31, %v1470_v5  ;;  %v1523_v10 = vmul.f32 %v1491_v16, %v1471_v24  ;;  %v1524_v48 = vmul.f32 %v1492_v60, %v1472_v44  ;;  %v1525_v21 = vmul.f32 %v1493_v11, %v1473_v12  ;;  %v1559_v8 = vld [vmem:[#allocation2 + $0x1ce] sm:$0x1]  ;;  %v1638_v31 = vld [vmem:[#allocation2 + $0x12f] sm:$0x1] }
 0x16d   : > { %v1542_v20 = vadd.f32 %v1526_v42, %v1458_v47  ;;  %v1543_v41 = vadd.f32 %v1527_v29, %v1459_v57  ;;  %v1544_v59 = vadd.f32 %v1528_v13, %v1460_v54  ;;  %v1574_v35 = vrot.slane %v1566_v53, 1  ;;  %v1641_v60 = vld [vmem:[#allocation2 + $0x18f] sm:$0x1] }
 0x16e   : > { %v1575_v61 = vrot.slane %v1566_v53, 2  ;;  %v1576_v34 = vrot.slane %v1566_v53, 3  ;;  %v1577_v56 = vrot.slane %v1566_v53, 4  ;;  %v1578_v26 = vrot.slane %v1566_v53, 5  ;;  %v1643_v9 = vld [vmem:[#allocation2 + $0x1cf] sm:$0x1] }
 0x16f   : > { %v4167_v63 = vadd.f32 %v1603_v39, %v4139_v4  ;;  %v1579_v62 = vrot.slane %v1566_v53, 6  ;;  %v1580_v49 = vrot.slane %v1566_v53, 7  ;;  %v1605_v23 = vmul.f32 %v1566_v53, %v1553_v36  ;;  %v1644_v53 = vld [vmem:[#allocation2 + $0x1ef] sm:$0x1] }
 0x170   : > { %v4170_v47 = vadd.f32 %v1604_v43, %v4141_v1  ;;  %v1538_v57 = vadd.f32 %v1522_v58, %v4131_v7  ;;  %v1539_v54 = vadd.f32 %v1523_v10, %v4133_v3  ;;  %v1540_v2 = vadd.f32 %v1524_v48, %v4135_v19  ;;  %v1639_v1 = vld [vmem:[#allocation2 + $0x14f] sm:$0x1] }
 0x171   : > { %v1541_v40 = vadd.f32 %v1525_v21, %v4145_v51  ;;  %v1606_v5 = vmul.f32 %v1574_v35, %v1554_v38  ;;  %v1607_v4 = vmul.f32 %v1575_v61, %v1555_v27  ;;  %v1612_v39 = vmul.f32 %v1580_v49, %v1560_v46  ;;  %v1640_v7 = vld [vmem:[#allocation2 + $0x16f] sm:$0x1]  ;;  %v1647_v21 = vpop.permute.xlu1 %1646 }
 0x172   : > { %v1608_v24 = vmul.f32 %v1576_v34, %v1556_v52  ;;  %v1609_v44 = vmul.f32 %v1577_v56, %v1557_v28  ;;  %v1610_v22 = vmul.f32 %v1578_v26, %v1558_v37  ;;  %v1611_v15 = vmul.f32 %v1579_v62, %v1559_v8  ;;  %v1642_v19 = vld [vmem:[#allocation2 + $0x1af] sm:$0x1] }
 0x173   : > { %v1621_v43 = vadd.f32 %v1605_v23, %v1537_v0  ;;  %v1628_v16 = vadd.f32 %v1612_v39, %v1544_v59  ;;  %v1658_v3 = vrot.slane %v1650_v6, 1  ;;  %v1659_v11 = vrot.slane %v1650_v6, 2  ;;  %v1629_v52 = vld [vmem:[#allocation2 + $0xf] sm:$0x1] }
 0x174   : > { %v1660_v12 = vrot.slane %v1650_v6, 3  ;;  %v1661_v25 = vrot.slane %v1650_v6, 4  ;;  %v1662_v51 = vrot.slane %v1650_v6, 5  ;;  %v1663_v14 = vrot.slane %v1650_v6, 6  ;;  %v1630_v34 = vld [vmem:[#allocation2 + $0x2f] sm:$0x1] }
 0x175   : > { %v1622_v55 = vadd.f32 %v1606_v5, %v1538_v57  ;;  %v1664_v42 = vrot.slane %v1650_v6, 7  ;;  %v1689_v29 = vmul.f32 %v1650_v6, %v1637_v50  ;;  %v1690_v13 = vmul.f32 %v1658_v3, %v1638_v31  ;;  %v1631_v56 = vld [vmem:[#allocation2 + $0x4f] sm:$0x1]  ;;  %v1731_v31 = vpop.permute.xlu1 %1730  ;;  %v1713_v3 = vld [vmem:[#allocation2 + $0x10] sm:$0x1] }
 0x176   : > { %v1623_v58 = vadd.f32 %v1607_v4, %v1539_v54  ;;  %v1624_v10 = vadd.f32 %v1608_v24, %v1540_v2  ;;  %v1625_v48 = vadd.f32 %v1609_v44, %v1541_v40  ;;  %v1626_v0 = vadd.f32 %v1610_v22, %v1542_v20  ;;  %v1632_v26 = vld [vmem:[#allocation2 + $0x6f] sm:$0x1] }
 0x177   : > { %v1627_v36 = vadd.f32 %v1611_v15, %v1543_v41  ;;  %v1691_v38 = vmul.f32 %v1659_v11, %v1639_v1  ;;  %v1692_v27 = vmul.f32 %v1660_v12, %v1640_v7  ;;  %v1693_v59 = vmul.f32 %v1661_v25, %v1641_v60  ;;  %v1633_v8 = vld [vmem:[#allocation2 + $0x8f] sm:$0x1]  ;;  %v1714_v11 = vld [vmem:[#allocation2 + $0x30] sm:$0x1] }
 0x178   : > { %v1694_v28 = vmul.f32 %v1662_v51, %v1642_v19  ;;  %v1695_v35 = vmul.f32 %v1663_v14, %v1643_v9  ;;  %v1696_v46 = vmul.f32 %v1664_v42, %v1644_v53  ;;  %v4176_v61 = vadd.f32 %v1689_v29, %v1621_v43  ;;  %v1634_v23 = vld [vmem:[#allocation2 + $0xaf] sm:$0x1]  ;;  %v1715_v14 = vld [vmem:[#allocation2 + $0x50] sm:$0x1] }
 0x179   : > { %v4178_v37 = vadd.f32 %v1690_v13, %v1622_v55  ;;  %v1651_v62 = vrot.slane %v1647_v21, 1  ;;  %v1652_v49 = vrot.slane %v1647_v21, 2  ;;  %v1653_v20 = vrot.slane %v1647_v21, 3  ;;  %v1635_v5 = vld [vmem:[#allocation2 + $0xcf] sm:$0x1] }
 0x17a   : > { %v1654_v41 = vrot.slane %v1647_v21, 4  ;;  %v1655_v57 = vrot.slane %v1647_v21, 5  ;;  %v1656_v54 = vrot.slane %v1647_v21, 6  ;;  %v1657_v2 = vrot.slane %v1647_v21, 7  ;;  %v1636_v4 = vld [vmem:[#allocation2 + $0xef] sm:$0x1] }
 0x17b   : > { %v4180_v6 = vadd.f32 %v1691_v38, %v1623_v58  ;;  %v4182_v40 = vadd.f32 %v1692_v27, %v1624_v10  ;;  %v1681_v39 = vmul.f32 %v1647_v21, %v1629_v52  ;;  %v1682_v24 = vmul.f32 %v1651_v62, %v1630_v34  ;;  %v1716_v55 = vld [vmem:[#allocation2 + $0x70] sm:$0x1]  ;;  %v1797_v62 = vld [vmem:[#allocation2 + $0x11] sm:$0x1] }
 0x17c   : > { %v4184_v44 = vadd.f32 %v1693_v59, %v1625_v48  ;;  %v4186_v22 = vadd.f32 %v1694_v28, %v1626_v0  ;;  %v4188_v15 = vadd.f32 %v1695_v35, %v1627_v36  ;;  %v4190_v50 = vadd.f32 %v1696_v46, %v1628_v16  ;;  %v1717_v9 = vld [vmem:[#allocation2 + $0x90] sm:$0x1]  ;;  %v1815_v59 = vpop.permute.xlu0 %1814 }
 0x17d   : > { %v1683_v1 = vmul.f32 %v1652_v49, %v1631_v56  ;;  %v1684_v43 = vmul.f32 %v1653_v20, %v1632_v26  ;;  %v1685_v7 = vmul.f32 %v1654_v41, %v1633_v8  ;;  %v1686_v60 = vmul.f32 %v1655_v57, %v1634_v23  ;;  %v1718_v53 = vld [vmem:[#allocation2 + $0xb0] sm:$0x1]  ;;  %v1799_v49 = vld [vmem:[#allocation2 + $0x51] sm:$0x1] }
 0x17e   : > { %v1687_v19 = vmul.f32 %v1656_v54, %v1635_v5  ;;  %v1688_v12 = vmul.f32 %v1657_v2, %v1636_v4  ;;  %v1697_v25 = vadd.f32 %v1681_v39, %v4153_v18  ;;  %v1698_v51 = vadd.f32 %v1682_v24, %v4155_v33  ;;  %v1719_v58 = vld [vmem:[#allocation2 + $0xd0] sm:$0x1]  ;;  %v1800_v23 = vld [vmem:[#allocation2 + $0x71] sm:$0x1] }
 0x17f   : > { %v1735_v42 = vrot.slane %v1731_v31, 1  ;;  %v1736_v16 = vrot.slane %v1731_v31, 2  ;;  %v1737_v29 = vrot.slane %v1731_v31, 3  ;;  %v1738_v13 = vrot.slane %v1731_v31, 4  ;;  %v1720_v33 = vld [vmem:[#allocation2 + $0xf0] sm:$0x1] }
 0x180   : > { %v1739_v10 = vrot.slane %v1731_v31, 5  ;;  %v1740_v48 = vrot.slane %v1731_v31, 6  ;;  %v1741_v0 = vrot.slane %v1731_v31, 7  ;;  %v1765_v21 = vmul.f32 %v1731_v31, %v1713_v3  ;;  %v1801_v41 = vld [vmem:[#allocation2 + $0x91] sm:$0x1] }
 0x181   : > { %v1699_v36 = vadd.f32 %v1683_v1, %v4157_v32  ;;  %v1700_v38 = vadd.f32 %v1684_v43, %v4159_v30  ;;  %v1701_v18 = vadd.f32 %v1685_v7, %v4161_v17  ;;  %v1766_v27 = vmul.f32 %v1735_v42, %v1714_v11  ;;  %v1798_v32 = vld [vmem:[#allocation2 + $0x31] sm:$0x1]  ;;  %v1734_v11 = vpop.permute.xlu1 %1733  ;;  %v1721_v42 = vld [vmem:[#allocation2 + $0x110] sm:$0x1] }
 0x182   : > { %v1702_v52 = vadd.f32 %v1686_v60, %v4163_v45  ;;  %v1703_v28 = vadd.f32 %v1687_v19, %v4167_v63  ;;  %v1704_v35 = vadd.f32 %v1688_v12, %v4170_v47  ;;  %v1767_v46 = vmul.f32 %v1736_v16, %v1715_v14  ;;  %v1802_v54 = vld [vmem:[#allocation2 + $0xb1] sm:$0x1]  ;;  %v1722_v16 = vld [vmem:[#allocation2 + $0x130] sm:$0x1] }
 0x183   : > { %v1768_v34 = vmul.f32 %v1737_v29, %v1716_v55  ;;  %v1769_v56 = vmul.f32 %v1738_v13, %v1717_v9  ;;  %v1770_v26 = vmul.f32 %v1739_v10, %v1718_v53  ;;  %v1771_v8 = vmul.f32 %v1740_v48, %v1719_v58  ;;  %v1803_v47 = vld [vmem:[#allocation2 + $0xd1] sm:$0x1]  ;;  %v1723_v29 = vld [vmem:[#allocation2 + $0x150] sm:$0x1] }
 0x184   : > { %v1772_v30 = vmul.f32 %v1741_v0, %v1720_v33  ;;  %v1781_v20 = vadd.f32 %v1765_v21, %v1697_v25  ;;  %v1782_v17 = vadd.f32 %v1766_v27, %v1698_v51  ;;  %v1819_v57 = vrot.slane %v1815_v59, 1  ;;  %v1804_v4 = vld [vmem:[#allocation2 + $0xf1] sm:$0x1]  ;;  %v1724_v10 = vld [vmem:[#allocation2 + $0x170] sm:$0x1] }
 0x185   : > { %v1820_v45 = vrot.slane %v1815_v59, 2  ;;  %v1821_v2 = vrot.slane %v1815_v59, 3  ;;  %v1822_v63 = vrot.slane %v1815_v59, 4  ;;  %v1823_v5 = vrot.slane %v1815_v59, 5  ;;  %v1725_v48 = vld [vmem:[#allocation2 + $0x190] sm:$0x1] }
 0x186   : > { %v1824_v39 = vrot.slane %v1815_v59, 6  ;;  %v1825_v24 = vrot.slane %v1815_v59, 7  ;;  %v1849_v31 = vmul.f32 %v1815_v59, %v1797_v62  ;;  %v1850_v1 = vmul.f32 %v1819_v57, %v1798_v32  ;;  %v1818_v32 = vpop.permute.xlu1 %1817 }
 0x187   : > { %v1783_v43 = vadd.f32 %v1767_v46, %v1699_v36  ;;  %v1784_v7 = vadd.f32 %v1768_v34, %v1700_v38  ;;  %v1785_v60 = vadd.f32 %v1769_v56, %v1701_v18  ;;  %v1786_v3 = vadd.f32 %v1770_v26, %v1702_v52  ;;  %v1726_v36 = vld [vmem:[#allocation2 + $0x1b0] sm:$0x1] }
 0x188   : > { %v1787_v19 = vadd.f32 %v1771_v8, %v1703_v28  ;;  %v1788_v12 = vadd.f32 %v1772_v30, %v1704_v35  ;;  %v1851_v25 = vmul.f32 %v1820_v45, %v1799_v49  ;;  %v1852_v51 = vmul.f32 %v1821_v2, %v1800_v23  ;;  %v1727_v52 = vld [vmem:[#allocation2 + $0x1d0] sm:$0x1]  ;;  %v1805_v23 = vld [vmem:[#allocation2 + $0x111] sm:$0x1] }
 0x189   : > { %v1853_v14 = vmul.f32 %v1822_v63, %v1801_v41  ;;  %v1854_v55 = vmul.f32 %v1823_v5, %v1802_v54  ;;  %v1855_v9 = vmul.f32 %v1824_v39, %v1803_v47  ;;  %v1856_v53 = vmul.f32 %v1825_v24, %v1804_v4  ;;  %v1728_v28 = vld [vmem:[#allocation2 + $0x1f0] sm:$0x1]  ;;  %v1806_v2 = vld [vmem:[#allocation2 + $0x131] sm:$0x1] }
 0x18a   : > { %v4200_v13 = vadd.f32 %v1849_v31, %v1781_v20  ;;  %v4202_v58 = vadd.f32 %v1850_v1, %v1782_v17  ;;  %v1742_v0 = vrot.slane %v1734_v11, 1  ;;  %v1743_v21 = vrot.slane %v1734_v11, 2  ;;  %v1807_v63 = vld [vmem:[#allocation2 + $0x151] sm:$0x1] }
 0x18b   : > { %v1744_v38 = vrot.slane %v1734_v11, 3  ;;  %v1745_v18 = vrot.slane %v1734_v11, 4  ;;  %v1746_v33 = vrot.slane %v1734_v11, 5  ;;  %v1747_v27 = vrot.slane %v1734_v11, 6  ;;  %v1808_v5 = vld [vmem:[#allocation2 + $0x171] sm:$0x1] }
 0x18c   : > { %v4204_v59 = vadd.f32 %v1851_v25, %v1783_v43  ;;  %v1748_v35 = vrot.slane %v1734_v11, 7  ;;  %v1773_v46 = vmul.f32 %v1734_v11, %v1721_v42  ;;  %v1774_v34 = vmul.f32 %v1742_v0, %v1722_v16  ;;  %v1809_v4 = vld [vmem:[#allocation2 + $0x191] sm:$0x1] }
 0x18d   : > { %v4206_v56 = vadd.f32 %v1852_v51, %v1784_v7  ;;  %v4208_v26 = vadd.f32 %v1853_v14, %v1785_v60  ;;  %v4210_v8 = vadd.f32 %v1854_v55, %v1786_v3  ;;  %v4212_v62 = vadd.f32 %v1855_v9, %v1787_v19  ;;  %v1810_v1 = vld [vmem:[#allocation2 + $0x1b1] sm:$0x1] }
 0x18e   : > { %v4214_v49 = vadd.f32 %v1856_v53, %v1788_v12  ;;  %v1775_v30 = vmul.f32 %v1743_v21, %v1723_v29  ;;  %v1776_v20 = vmul.f32 %v1744_v38, %v1724_v10  ;;  %v1777_v17 = vmul.f32 %v1745_v18, %v1725_v48  ;;  %v1811_v12 = vld [vmem:[#allocation2 + $0x1d1] sm:$0x1]  ;;  %v1902_v53 = vpop.permute.xlu0 %1901  ;;  %v1890_v48 = vld [vmem:[#allocation2 + $0x132] sm:$0x1] }
 0x18f   : > { %v1778_v41 = vmul.f32 %v1746_v33, %v1726_v36  ;;  %v1779_v57 = vmul.f32 %v1747_v27, %v1727_v52  ;;  %v1780_v54 = vmul.f32 %v1748_v35, %v1728_v28  ;;  %v1789_v45 = vadd.f32 %v1773_v46, %v4176_v61  ;;  %v1812_v61 = vld [vmem:[#allocation2 + $0x1f1] sm:$0x1]  ;;  %v1891_v38 = vld [vmem:[#allocation2 + $0x152] sm:$0x1] }
 0x190   : > { %v1790_v47 = vadd.f32 %v1774_v34, %v4178_v37  ;;  %v1826_v39 = vrot.slane %v1818_v32, 1  ;;  %v1827_v24 = vrot.slane %v1818_v32, 2  ;;  %v1828_v31 = vrot.slane %v1818_v32, 3  ;;  %v1892_v18 = vld [vmem:[#allocation2 + $0x172] sm:$0x1] }
 0x191   : > { %v1829_v43 = vrot.slane %v1818_v32, 4  ;;  %v1830_v7 = vrot.slane %v1818_v32, 5  ;;  %v1831_v60 = vrot.slane %v1818_v32, 6  ;;  %v1832_v3 = vrot.slane %v1818_v32, 7  ;;  %v1894_v33 = vld [vmem:[#allocation2 + $0x1b2] sm:$0x1] }
 0x192   : > { %v1791_v11 = vadd.f32 %v1775_v30, %v4180_v6  ;;  %v1792_v19 = vadd.f32 %v1776_v20, %v4182_v40  ;;  %v1857_v25 = vmul.f32 %v1818_v32, %v1805_v23  ;;  %v1858_v51 = vmul.f32 %v1826_v39, %v1806_v2  ;;  %v1889_v6 = vld [vmem:[#allocation2 + $0x112] sm:$0x1] }
 0x193   : > { %v1793_v14 = vadd.f32 %v1777_v17, %v4184_v44  ;;  %v1794_v37 = vadd.f32 %v1778_v41, %v4186_v22  ;;  %v1795_v55 = vadd.f32 %v1779_v57, %v4188_v15  ;;  %v1796_v9 = vadd.f32 %v1780_v54, %v4190_v50  ;;  %v1893_v44 = vld [vmem:[#allocation2 + $0x192] sm:$0x1]  ;;  %v1899_v41 = vpop.permute.xlu1 %1898 }
 0x194   : > { %v1859_v42 = vmul.f32 %v1827_v24, %v1807_v63  ;;  %v1860_v16 = vmul.f32 %v1828_v31, %v1808_v5  ;;  %v1861_v29 = vmul.f32 %v1829_v43, %v1809_v4  ;;  %v1862_v10 = vmul.f32 %v1830_v7, %v1810_v1  ;;  %v1895_v50 = vld [vmem:[#allocation2 + $0x1d2] sm:$0x1] }
 0x195   : > { %v1863_v40 = vmul.f32 %v1831_v60, %v1811_v12  ;;  %v1864_v0 = vmul.f32 %v1832_v3, %v1812_v61  ;;  %v1873_v21 = vadd.f32 %v1857_v25, %v1789_v45  ;;  %v1874_v36 = vadd.f32 %v1858_v51, %v1790_v47  ;;  %v1896_v17 = vld [vmem:[#allocation2 + $0x1f2] sm:$0x1] }
 0x196   : > { %v1910_v22 = vrot.slane %v1902_v53, 1  ;;  %v1911_v27 = vrot.slane %v1902_v53, 2  ;;  %v1912_v15 = vrot.slane %v1902_v53, 3  ;;  %v1913_v52 = vrot.slane %v1902_v53, 4  ;;  %v1881_v39 = vld [vmem:[#allocation2 + $0x12] sm:$0x1] }
 0x197   : > { %v1914_v28 = vrot.slane %v1902_v53, 5  ;;  %v1915_v35 = vrot.slane %v1902_v53, 6  ;;  %v1916_v46 = vrot.slane %v1902_v53, 7  ;;  %v1941_v34 = vmul.f32 %v1902_v53, %v1889_v6  ;;  %v1882_v24 = vld [vmem:[#allocation2 + $0x32] sm:$0x1] }
 0x198   : > { %v1875_v32 = vadd.f32 %v1859_v42, %v1791_v11  ;;  %v1876_v30 = vadd.f32 %v1860_v16, %v1792_v19  ;;  %v1877_v20 = vadd.f32 %v1861_v29, %v1793_v14  ;;  %v1942_v23 = vmul.f32 %v1910_v22, %v1890_v48  ;;  %v1883_v31 = vld [vmem:[#allocation2 + $0x52] sm:$0x1]  ;;  %v1983_v48 = vpop.permute.xlu1 %1982  ;;  %v1965_v22 = vld [vmem:[#allocation2 + $0x13] sm:$0x1] }
 0x199   : > { %v1878_v57 = vadd.f32 %v1862_v10, %v1794_v37  ;;  %v1879_v54 = vadd.f32 %v1863_v40, %v1795_v55  ;;  %v1880_v45 = vadd.f32 %v1864_v0, %v1796_v9  ;;  %v1943_v2 = vmul.f32 %v1911_v27, %v1891_v38  ;;  %v1884_v60 = vld [vmem:[#allocation2 + $0x72] sm:$0x1]  ;;  %v1966_v27 = vld [vmem:[#allocation2 + $0x33] sm:$0x1] }
 0x19a   : > { %v1944_v63 = vmul.f32 %v1912_v15, %v1892_v18  ;;  %v1945_v5 = vmul.f32 %v1913_v52, %v1893_v44  ;;  %v1946_v47 = vmul.f32 %v1914_v28, %v1894_v33  ;;  %v1947_v4 = vmul.f32 %v1915_v35, %v1895_v50  ;;  %v1885_v3 = vld [vmem:[#allocation2 + $0x92] sm:$0x1]  ;;  %v1967_v15 = vld [vmem:[#allocation2 + $0x53] sm:$0x1] }
 0x19b   : > { %v1948_v1 = vmul.f32 %v1916_v46, %v1896_v17  ;;  %v4224_v43 = vadd.f32 %v1941_v34, %v1873_v21  ;;  %v4226_v7 = vadd.f32 %v1942_v23, %v1874_v36  ;;  %v1903_v11 = vrot.slane %v1899_v41, 1  ;;  %v1886_v19 = vld [vmem:[#allocation2 + $0xb2] sm:$0x1]  ;;  %v1968_v28 = vld [vmem:[#allocation2 + $0x73] sm:$0x1] }
 0x19c   : > { %v1904_v12 = vrot.slane %v1899_v41, 2  ;;  %v1905_v61 = vrot.slane %v1899_v41, 3  ;;  %v1906_v25 = vrot.slane %v1899_v41, 4  ;;  %v1907_v51 = vrot.slane %v1899_v41, 5  ;;  %v1887_v14 = vld [vmem:[#allocation2 + $0xd2] sm:$0x1] }
 0x19d   : > { %v1888_v37 = vld [vmem:[#allocation2 + $0xf2] sm:$0x1]  ;;  %v1908_v55 = vrot.slane %v1899_v41, 6  ;;  %v1909_v9 = vrot.slane %v1899_v41, 7  ;;  %v1933_v53 = vmul.f32 %v1899_v41, %v1881_v39  ;;  %v1934_v42 = vmul.f32 %v1903_v11, %v1882_v24  ;;  %v1969_v35 = vld [vmem:[#allocation2 + $0x93] sm:$0x1] }
 0x19e   : > { %v4228_v16 = vadd.f32 %v1943_v2, %v1875_v32  ;;  %v4230_v29 = vadd.f32 %v1944_v63, %v1876_v30  ;;  %v4232_v10 = vadd.f32 %v1945_v5, %v1877_v20  ;;  %v4234_v6 = vadd.f32 %v1946_v47, %v1878_v57  ;;  %v1970_v32 = vld [vmem:[#allocation2 + $0xb3] sm:$0x1] }
 0x19f   : > { %v4236_v40 = vadd.f32 %v1947_v4, %v1879_v54  ;;  %v4238_v0 = vadd.f32 %v1948_v1, %v1880_v45  ;;  %v1935_v21 = vmul.f32 %v1904_v12, %v1883_v31  ;;  %v1936_v36 = vmul.f32 %v1905_v61, %v1884_v60  ;;  %v1971_v57 = vld [vmem:[#allocation2 + $0xd3] sm:$0x1]  ;;  %v2067_v4 = vpop.permute.xlu0 %2066  ;;  %v2050_v12 = vld [vmem:[#allocation2 + $0x34] sm:$0x1] }
 0x1a0   : > { %v1937_v38 = vmul.f32 %v1906_v25, %v1885_v3  ;;  %v1938_v18 = vmul.f32 %v1907_v51, %v1886_v19  ;;  %v1939_v44 = vmul.f32 %v1908_v55, %v1887_v14  ;;  %v1940_v33 = vmul.f32 %v1909_v9, %v1888_v37  ;;  %v1972_v54 = vld [vmem:[#allocation2 + $0xf3] sm:$0x1]  ;;  %v2051_v61 = vld [vmem:[#allocation2 + $0x54] sm:$0x1] }
 0x1a1   : > { %v1949_v52 = vadd.f32 %v1933_v53, %v4200_v13  ;;  %v1950_v50 = vadd.f32 %v1934_v42, %v4202_v58  ;;  %v1987_v46 = vrot.slane %v1983_v48, 1  ;;  %v1988_v34 = vrot.slane %v1983_v48, 2 }
 0x1a2   : > { %v1989_v30 = vrot.slane %v1983_v48, 3  ;;  %v1990_v20 = vrot.slane %v1983_v48, 4  ;;  %v1991_v17 = vrot.slane %v1983_v48, 5  ;;  %v1992_v23 = vrot.slane %v1983_v48, 6 }
 0x1a3   : > { %v1951_v41 = vadd.f32 %v1935_v21, %v4204_v59  ;;  %v1993_v45 = vrot.slane %v1983_v48, 7  ;;  %v2017_v2 = vmul.f32 %v1983_v48, %v1965_v22  ;;  %v2018_v63 = vmul.f32 %v1987_v46, %v1966_v27  ;;  %v2049_v59 = vld [vmem:[#allocation2 + $0x14] sm:$0x1]  ;;  %v1974_v46 = vld [vmem:[#allocation2 + $0x133] sm:$0x1] }
 0x1a4   : > { %v1952_v13 = vadd.f32 %v1936_v36, %v4206_v56  ;;  %v1953_v58 = vadd.f32 %v1937_v38, %v4208_v26  ;;  %v1954_v5 = vadd.f32 %v1938_v18, %v4210_v8  ;;  %v1955_v47 = vadd.f32 %v1939_v44, %v4212_v62  ;;  %v2052_v56 = vld [vmem:[#allocation2 + $0x74] sm:$0x1]  ;;  %v1986_v18 = vpop.permute.xlu1 %1985 }
 0x1a5   : > { %v1956_v39 = vadd.f32 %v1940_v33, %v4214_v49  ;;  %v2019_v24 = vmul.f32 %v1988_v34, %v1967_v15  ;;  %v2020_v31 = vmul.f32 %v1989_v30, %v1968_v28  ;;  %v2021_v1 = vmul.f32 %v1990_v20, %v1969_v35  ;;  %v2053_v26 = vld [vmem:[#allocation2 + $0x94] sm:$0x1]  ;;  %v1973_v35 = vld [vmem:[#allocation2 + $0x113] sm:$0x1] }
 0x1a6   : > { %v2022_v60 = vmul.f32 %v1991_v17, %v1970_v32  ;;  %v2023_v3 = vmul.f32 %v1992_v23, %v1971_v57  ;;  %v2024_v11 = vmul.f32 %v1993_v45, %v1972_v54  ;;  %v2033_v19 = vadd.f32 %v2017_v2, %v1949_v52  ;;  %v2054_v62 = vld [vmem:[#allocation2 + $0xb4] sm:$0x1]  ;;  %v1975_v17 = vld [vmem:[#allocation2 + $0x153] sm:$0x1] }
 0x1a7   : > { %v2034_v25 = vadd.f32 %v2018_v63, %v1950_v50  ;;  %v2071_v51 = vrot.slane %v2067_v4, 1  ;;  %v2072_v8 = vrot.slane %v2067_v4, 2  ;;  %v2073_v14 = vrot.slane %v2067_v4, 3  ;;  %v2055_v48 = vld [vmem:[#allocation2 + $0xd4] sm:$0x1] }
 0x1a8   : > { %v2074_v37 = vrot.slane %v2067_v4, 4  ;;  %v2075_v55 = vrot.slane %v2067_v4, 5  ;;  %v2076_v49 = vrot.slane %v2067_v4, 6  ;;  %v2077_v9 = vrot.slane %v2067_v4, 7  ;;  %v2056_v21 = vld [vmem:[#allocation2 + $0xf4] sm:$0x1] }
 0x1a9   : > { %v2035_v53 = vadd.f32 %v2019_v24, %v1951_v41  ;;  %v2036_v42 = vadd.f32 %v2020_v31, %v1952_v13  ;;  %v2101_v36 = vmul.f32 %v2067_v4, %v2049_v59  ;;  %v2102_v38 = vmul.f32 %v2071_v51, %v2050_v12  ;;  %v1976_v23 = vld [vmem:[#allocation2 + $0x173] sm:$0x1]  ;;  %v2057_v51 = vld [vmem:[#allocation2 + $0x114] sm:$0x1] }
 0x1aa   : > { %v2037_v44 = vadd.f32 %v2021_v1, %v1953_v58  ;;  %v2038_v33 = vadd.f32 %v2022_v60, %v1954_v5  ;;  %v2039_v22 = vadd.f32 %v2023_v3, %v1955_v47  ;;  %v2040_v27 = vadd.f32 %v2024_v11, %v1956_v39  ;;  %v1977_v41 = vld [vmem:[#allocation2 + $0x193] sm:$0x1]  ;;  %v2070_v60 = vpop.permute.xlu1 %2069 }
 0x1ab   : > { %v2103_v15 = vmul.f32 %v2072_v8, %v2051_v61  ;;  %v2104_v52 = vmul.f32 %v2073_v14, %v2052_v56  ;;  %v2105_v50 = vmul.f32 %v2074_v37, %v2053_v26  ;;  %v2106_v28 = vmul.f32 %v2075_v55, %v2054_v62  ;;  %v1978_v57 = vld [vmem:[#allocation2 + $0x1b3] sm:$0x1]  ;;  %v2058_v8 = vld [vmem:[#allocation2 + $0x134] sm:$0x1] }
 0x1ac   : > { %v2107_v34 = vmul.f32 %v2076_v49, %v2055_v48  ;;  %v2108_v32 = vmul.f32 %v2077_v9, %v2056_v21  ;;  %v4248_v30 = vadd.f32 %v2101_v36, %v2033_v19  ;;  %v4250_v20 = vadd.f32 %v2102_v38, %v2034_v25  ;;  %v1979_v13 = vld [vmem:[#allocation2 + $0x1d3] sm:$0x1]  ;;  %v2059_v14 = vld [vmem:[#allocation2 + $0x154] sm:$0x1] }
 0x1ad   : > { %v1994_v54 = vrot.slane %v1986_v18, 1  ;;  %v1995_v45 = vrot.slane %v1986_v18, 2  ;;  %v1996_v2 = vrot.slane %v1986_v18, 3  ;;  %v1997_v63 = vrot.slane %v1986_v18, 4  ;;  %v1980_v1 = vld [vmem:[#allocation2 + $0x1f3] sm:$0x1] }
 0x1ae   : > { %v1998_v58 = vrot.slane %v1986_v18, 5  ;;  %v1999_v5 = vrot.slane %v1986_v18, 6  ;;  %v2000_v47 = vrot.slane %v1986_v18, 7  ;;  %v2025_v4 = vmul.f32 %v1986_v18, %v1973_v35  ;;  %v2060_v49 = vld [vmem:[#allocation2 + $0x174] sm:$0x1] }
 0x1af   : > { %v4252_v39 = vadd.f32 %v2103_v15, %v2035_v53  ;;  %v4254_v24 = vadd.f32 %v2104_v52, %v2036_v42  ;;  %v4256_v31 = vadd.f32 %v2105_v50, %v2037_v44  ;;  %v2026_v59 = vmul.f32 %v1994_v54, %v1974_v46  ;;  %v2061_v9 = vld [vmem:[#allocation2 + $0x194] sm:$0x1]  ;;  %v2141_v54 = vld [vmem:[#allocation2 + $0x115] sm:$0x1] }
 0x1b0   : > { %v4258_v3 = vadd.f32 %v2106_v28, %v2038_v33  ;;  %v4260_v11 = vadd.f32 %v2107_v34, %v2039_v22  ;;  %v4262_v19 = vadd.f32 %v2108_v32, %v2040_v27  ;;  %v2027_v12 = vmul.f32 %v1995_v45, %v1975_v17  ;;  %v2062_v42 = vld [vmem:[#allocation2 + $0x1b4] sm:$0x1]  ;;  %v2154_v28 = vpop.permute.xlu0 %2153  ;;  %v2142_v45 = vld [vmem:[#allocation2 + $0x135] sm:$0x1] }
 0x1b1   : > { %v2028_v61 = vmul.f32 %v1996_v2, %v1976_v23  ;;  %v2029_v56 = vmul.f32 %v1997_v63, %v1977_v41  ;;  %v2030_v25 = vmul.f32 %v1998_v58, %v1978_v57  ;;  %v2031_v26 = vmul.f32 %v1999_v5, %v1979_v13  ;;  %v2063_v18 = vld [vmem:[#allocation2 + $0x1d4] sm:$0x1]  ;;  %v2144_v63 = vld [vmem:[#allocation2 + $0x175] sm:$0x1] }
 0x1b2   : > { %v2032_v62 = vmul.f32 %v2000_v47, %v1980_v1  ;;  %v2041_v37 = vadd.f32 %v2025_v4, %v4224_v43  ;;  %v2042_v55 = vadd.f32 %v2026_v59, %v4226_v7  ;;  %v2078_v53 = vrot.slane %v2070_v60, 1  ;;  %v2064_v44 = vld [vmem:[#allocation2 + $0x1f4] sm:$0x1]  ;;  %v2146_v58 = vld [vmem:[#allocation2 + $0x1b5] sm:$0x1] }
 0x1b3   : > { %v2079_v48 = vrot.slane %v2070_v60, 2  ;;  %v2080_v21 = vrot.slane %v2070_v60, 3  ;;  %v2081_v36 = vrot.slane %v2070_v60, 4  ;;  %v2082_v38 = vrot.slane %v2070_v60, 5  ;;  %v2147_v1 = vld [vmem:[#allocation2 + $0x1d5] sm:$0x1] }
 0x1b4   : > { %v2083_v33 = vrot.slane %v2070_v60, 6  ;;  %v2084_v22 = vrot.slane %v2070_v60, 7  ;;  %v2109_v27 = vmul.f32 %v2070_v60, %v2057_v51  ;;  %v2110_v15 = vmul.f32 %v2078_v53, %v2058_v8  ;;  %v2148_v59 = vld [vmem:[#allocation2 + $0x1f5] sm:$0x1]  ;;  %v2151_v8 = vpop.permute.xlu1 %2150 }
 0x1b5   : > { %v2043_v52 = vadd.f32 %v2027_v12, %v4228_v16  ;;  %v2044_v43 = vadd.f32 %v2028_v61, %v4230_v29  ;;  %v2045_v7 = vadd.f32 %v2029_v56, %v4232_v10  ;;  %v2046_v50 = vadd.f32 %v2030_v25, %v4234_v6  ;;  %v2143_v16 = vld [vmem:[#allocation2 + $0x155] sm:$0x1] }
 0x1b6   : > { %v2047_v35 = vadd.f32 %v2031_v26, %v4236_v40  ;;  %v2048_v46 = vadd.f32 %v2032_v62, %v4238_v0  ;;  %v2111_v34 = vmul.f32 %v2079_v48, %v2059_v14  ;;  %v2112_v32 = vmul.f32 %v2080_v21, %v2060_v49  ;;  %v2145_v10 = vld [vmem:[#allocation2 + $0x195] sm:$0x1] }
 0x1b7   : > { %v2113_v17 = vmul.f32 %v2081_v36, %v2061_v9  ;;  %v2114_v23 = vmul.f32 %v2082_v38, %v2062_v42  ;;  %v2115_v41 = vmul.f32 %v2083_v33, %v2063_v18  ;;  %v2116_v57 = vmul.f32 %v2084_v22, %v2064_v44  ;;  %v2133_v49 = vld [vmem:[#allocation2 + $0x15] sm:$0x1] }
 0x1b8   : > { %v2125_v2 = vadd.f32 %v2109_v27, %v2041_v37  ;;  %v2126_v29 = vadd.f32 %v2110_v15, %v2042_v55  ;;  %v2162_v13 = vrot.slane %v2154_v28, 1  ;;  %v2163_v6 = vrot.slane %v2154_v28, 2  ;;  %v2134_v21 = vld [vmem:[#allocation2 + $0x35] sm:$0x1] }
 0x1b9   : > { %v2164_v5 = vrot.slane %v2154_v28, 3  ;;  %v2165_v40 = vrot.slane %v2154_v28, 4  ;;  %v2166_v47 = vrot.slane %v2154_v28, 5  ;;  %v2167_v0 = vrot.slane %v2154_v28, 6  ;;  %v2135_v36 = vld [vmem:[#allocation2 + $0x55] sm:$0x1] }
 0x1ba   : > { %v2127_v4 = vadd.f32 %v2111_v34, %v2043_v52  ;;  %v2168_v60 = vrot.slane %v2154_v28, 7  ;;  %v2193_v12 = vmul.f32 %v2154_v28, %v2141_v54  ;;  %v2194_v61 = vmul.f32 %v2162_v13, %v2142_v45  ;;  %v2136_v38 = vld [vmem:[#allocation2 + $0x75] sm:$0x1]  ;;  %v2235_v45 = vpop.permute.xlu1 %2234  ;;  %v2218_v13 = vld [vmem:[#allocation2 + $0x36] sm:$0x1] }
 0x1bb   : > { %v2128_v56 = vadd.f32 %v2112_v32, %v2044_v43  ;;  %v2129_v25 = vadd.f32 %v2113_v17, %v2045_v7  ;;  %v2130_v26 = vadd.f32 %v2114_v23, %v2046_v50  ;;  %v2131_v51 = vadd.f32 %v2115_v41, %v2047_v35  ;;  %v2137_v44 = vld [vmem:[#allocation2 + $0x95] sm:$0x1] }
 0x1bc   : > { %v2132_v14 = vadd.f32 %v2116_v57, %v2048_v46  ;;  %v2195_v62 = vmul.f32 %v2163_v6, %v2143_v16  ;;  %v2196_v37 = vmul.f32 %v2164_v5, %v2144_v63  ;;  %v2197_v55 = vmul.f32 %v2165_v40, %v2145_v10  ;;  %v2138_v15 = vld [vmem:[#allocation2 + $0xb5] sm:$0x1]  ;;  %v2217_v10 = vld [vmem:[#allocation2 + $0x16] sm:$0x1] }
 0x1bd   : > { %v2198_v9 = vmul.f32 %v2166_v47, %v2146_v58  ;;  %v2199_v53 = vmul.f32 %v2167_v0, %v2147_v1  ;;  %v2200_v42 = vmul.f32 %v2168_v60, %v2148_v59  ;;  %v4272_v48 = vadd.f32 %v2193_v12, %v2125_v2  ;;  %v2139_v46 = vld [vmem:[#allocation2 + $0xd5] sm:$0x1]  ;;  %v2219_v47 = vld [vmem:[#allocation2 + $0x56] sm:$0x1] }
 0x1be   : > { %v4274_v18 = vadd.f32 %v2194_v61, %v2126_v29  ;;  %v2155_v33 = vrot.slane %v2151_v8, 1  ;;  %v2156_v22 = vrot.slane %v2151_v8, 2  ;;  %v2157_v27 = vrot.slane %v2151_v8, 3  ;;  %v2140_v34 = vld [vmem:[#allocation2 + $0xf5] sm:$0x1] }
 0x1bf   : > { %v2158_v52 = vrot.slane %v2151_v8, 4  ;;  %v2159_v43 = vrot.slane %v2151_v8, 5  ;;  %v2160_v7 = vrot.slane %v2151_v8, 6  ;;  %v2161_v50 = vrot.slane %v2151_v8, 7  ;;  %v2220_v0 = vld [vmem:[#allocation2 + $0x76] sm:$0x1] }
 0x1c0   : > { %v4276_v28 = vadd.f32 %v2195_v62, %v2127_v4  ;;  %v4278_v35 = vadd.f32 %v2196_v37, %v2128_v56  ;;  %v2185_v32 = vmul.f32 %v2151_v8, %v2133_v49  ;;  %v2186_v17 = vmul.f32 %v2155_v33, %v2134_v21  ;;  %v2221_v4 = vld [vmem:[#allocation2 + $0x96] sm:$0x1]  ;;  %v2301_v33 = vld [vmem:[#allocation2 + $0x17] sm:$0x1] }
 0x1c1   : > { %v4280_v23 = vadd.f32 %v2197_v55, %v2129_v25  ;;  %v4282_v41 = vadd.f32 %v2198_v9, %v2130_v26  ;;  %v4284_v57 = vadd.f32 %v2199_v53, %v2131_v51  ;;  %v4286_v54 = vadd.f32 %v2200_v42, %v2132_v14  ;;  %v2222_v1 = vld [vmem:[#allocation2 + $0xb6] sm:$0x1]  ;;  %v2319_v55 = vpop.permute.xlu0 %2318 }
 0x1c2   : > { %v2187_v16 = vmul.f32 %v2156_v22, %v2135_v36  ;;  %v2188_v2 = vmul.f32 %v2157_v27, %v2136_v38  ;;  %v2189_v29 = vmul.f32 %v2158_v52, %v2137_v44  ;;  %v2190_v63 = vmul.f32 %v2159_v43, %v2138_v15  ;;  %v2223_v56 = vld [vmem:[#allocation2 + $0xd6] sm:$0x1]  ;;  %v2303_v22 = vld [vmem:[#allocation2 + $0x57] sm:$0x1] }
 0x1c3   : > { %v2191_v6 = vmul.f32 %v2160_v7, %v2139_v46  ;;  %v2192_v58 = vmul.f32 %v2161_v50, %v2140_v34  ;;  %v2201_v5 = vadd.f32 %v2185_v32, %v4248_v30  ;;  %v2202_v40 = vadd.f32 %v2186_v17, %v4250_v20  ;;  %v2224_v20 = vld [vmem:[#allocation2 + $0xf6] sm:$0x1]  ;;  %v2304_v15 = vld [vmem:[#allocation2 + $0x77] sm:$0x1] }
 0x1c4   : > { %v2239_v59 = vrot.slane %v2235_v45, 1  ;;  %v2240_v60 = vrot.slane %v2235_v45, 2  ;;  %v2241_v12 = vrot.slane %v2235_v45, 3  ;;  %v2242_v61 = vrot.slane %v2235_v45, 4  ;;  %v2305_v52 = vld [vmem:[#allocation2 + $0x97] sm:$0x1] }
 0x1c5   : > { %v2243_v25 = vrot.slane %v2235_v45, 5  ;;  %v2244_v26 = vrot.slane %v2235_v45, 6  ;;  %v2245_v51 = vrot.slane %v2235_v45, 7  ;;  %v2269_v8 = vmul.f32 %v2235_v45, %v2217_v10  ;;  %v2306_v7 = vld [vmem:[#allocation2 + $0xb7] sm:$0x1] }
 0x1c6   : > { %v2203_v14 = vadd.f32 %v2187_v16, %v4252_v39  ;;  %v2204_v62 = vadd.f32 %v2188_v2, %v4254_v24  ;;  %v2205_v30 = vadd.f32 %v2189_v29, %v4256_v31  ;;  %v2270_v37 = vmul.f32 %v2239_v59, %v2218_v13  ;;  %v2302_v39 = vld [vmem:[#allocation2 + $0x37] sm:$0x1]  ;;  %v2238_v13 = vpop.permute.xlu1 %2237  ;;  %v2225_v59 = vld [vmem:[#allocation2 + $0x116] sm:$0x1] }
 0x1c7   : > { %v2206_v49 = vadd.f32 %v2190_v63, %v4258_v3  ;;  %v2207_v9 = vadd.f32 %v2191_v6, %v4260_v11  ;;  %v2208_v53 = vadd.f32 %v2192_v58, %v4262_v19  ;;  %v2271_v42 = vmul.f32 %v2240_v60, %v2219_v47  ;;  %v2307_v19 = vld [vmem:[#allocation2 + $0xd7] sm:$0x1]  ;;  %v2226_v60 = vld [vmem:[#allocation2 + $0x136] sm:$0x1] }
 0x1c8   : > { %v2272_v21 = vmul.f32 %v2241_v12, %v2220_v0  ;;  %v2273_v36 = vmul.f32 %v2242_v61, %v2221_v4  ;;  %v2274_v38 = vmul.f32 %v2243_v25, %v2222_v1  ;;  %v2275_v44 = vmul.f32 %v2244_v26, %v2223_v56  ;;  %v2308_v34 = vld [vmem:[#allocation2 + $0xf7] sm:$0x1]  ;;  %v2227_v12 = vld [vmem:[#allocation2 + $0x156] sm:$0x1] }
 0x1c9   : > { %v2276_v24 = vmul.f32 %v2245_v51, %v2224_v20  ;;  %v2285_v27 = vadd.f32 %v2269_v8, %v2201_v5  ;;  %v2286_v31 = vadd.f32 %v2270_v37, %v2202_v40  ;;  %v2323_v43 = vrot.slane %v2319_v55, 1  ;;  %v2228_v25 = vld [vmem:[#allocation2 + $0x176] sm:$0x1] }
 0x1ca   : > { %v2324_v3 = vrot.slane %v2319_v55, 2  ;;  %v2325_v50 = vrot.slane %v2319_v55, 3  ;;  %v2326_v11 = vrot.slane %v2319_v55, 4  ;;  %v2327_v46 = vrot.slane %v2319_v55, 5  ;;  %v2229_v26 = vld [vmem:[#allocation2 + $0x196] sm:$0x1] }
 0x1cb   : > { %v2328_v32 = vrot.slane %v2319_v55, 6  ;;  %v2329_v17 = vrot.slane %v2319_v55, 7  ;;  %v2353_v45 = vmul.f32 %v2319_v55, %v2301_v33  ;;  %v2354_v16 = vmul.f32 %v2323_v43, %v2302_v39  ;;  %v2322_v39 = vpop.permute.xlu1 %2321 }
 0x1cc   : > { %v2287_v2 = vadd.f32 %v2271_v42, %v2203_v14  ;;  %v2288_v29 = vadd.f32 %v2272_v21, %v2204_v62  ;;  %v2289_v63 = vadd.f32 %v2273_v36, %v2205_v30  ;;  %v2290_v10 = vadd.f32 %v2274_v38, %v2206_v49  ;;  %v2230_v14 = vld [vmem:[#allocation2 + $0x1b6] sm:$0x1] }
 0x1cd   : > { %v2291_v6 = vadd.f32 %v2275_v44, %v2207_v9  ;;  %v2292_v58 = vadd.f32 %v2276_v24, %v2208_v53  ;;  %v2355_v5 = vmul.f32 %v2324_v3, %v2303_v22  ;;  %v2356_v40 = vmul.f32 %v2325_v50, %v2304_v15  ;;  %v2231_v49 = vld [vmem:[#allocation2 + $0x1d6] sm:$0x1]  ;;  %v2309_v15 = vld [vmem:[#allocation2 + $0x117] sm:$0x1] }
 0x1ce   : > { %v2357_v47 = vmul.f32 %v2326_v11, %v2305_v52  ;;  %v2358_v0 = vmul.f32 %v2327_v46, %v2306_v7  ;;  %v2359_v4 = vmul.f32 %v2328_v32, %v2307_v19  ;;  %v2360_v1 = vmul.f32 %v2329_v17, %v2308_v34  ;;  %v2232_v9 = vld [vmem:[#allocation2 + $0x1f6] sm:$0x1]  ;;  %v2310_v50 = vld [vmem:[#allocation2 + $0x137] sm:$0x1] }
 0x1cf   : > { %v4296_v61 = vadd.f32 %v2353_v45, %v2285_v27  ;;  %v4298_v56 = vadd.f32 %v2354_v16, %v2286_v31  ;;  %v2246_v51 = vrot.slane %v2238_v13, 1  ;;  %v2247_v8 = vrot.slane %v2238_v13, 2  ;;  %v2311_v11 = vld [vmem:[#allocation2 + $0x157] sm:$0x1] }
 0x1d0   : > { %v2248_v62 = vrot.slane %v2238_v13, 3  ;;  %v2249_v30 = vrot.slane %v2238_v13, 4  ;;  %v2250_v20 = vrot.slane %v2238_v13, 5  ;;  %v2251_v37 = vrot.slane %v2238_v13, 6  ;;  %v2312_v46 = vld [vmem:[#allocation2 + $0x177] sm:$0x1] }
 0x1d1   : > { %v4300_v55 = vadd.f32 %v2355_v5, %v2287_v2  ;;  %v2252_v53 = vrot.slane %v2238_v13, 7  ;;  %v2277_v42 = vmul.f32 %v2238_v13, %v2225_v59  ;;  %v2278_v21 = vmul.f32 %v2246_v51, %v2226_v60  ;;  %v2313_v34 = vld [vmem:[#allocation2 + $0x197] sm:$0x1] }
 0x1d2   : > { %v4302_v36 = vadd.f32 %v2356_v40, %v2288_v29  ;;  %v4304_v38 = vadd.f32 %v2357_v47, %v2289_v63  ;;  %v4306_v44 = vadd.f32 %v2358_v0, %v2290_v10  ;;  %v4308_v33 = vadd.f32 %v2359_v4, %v2291_v6  ;;  %v2314_v16 = vld [vmem:[#allocation2 + $0x1b7] sm:$0x1] }
 0x1d3   : > { %v4310_v22 = vadd.f32 %v2360_v1, %v2292_v58  ;;  %v2279_v24 = vmul.f32 %v2247_v8, %v2227_v12  ;;  %v2280_v27 = vmul.f32 %v2248_v62, %v2228_v25  ;;  %v2281_v31 = vmul.f32 %v2249_v30, %v2229_v26  ;;  %v2315_v58 = vld [vmem:[#allocation2 + $0x1d7] sm:$0x1]  ;;  %v2406_v1 = vpop.permute.xlu0 %2405  ;;  %v2394_v26 = vld [vmem:[#allocation2 + $0x138] sm:$0x1] }
 0x1d4   : > { %v2282_v52 = vmul.f32 %v2250_v20, %v2230_v14  ;;  %v2283_v43 = vmul.f32 %v2251_v37, %v2231_v49  ;;  %v2284_v7 = vmul.f32 %v2252_v53, %v2232_v9  ;;  %v2293_v3 = vadd.f32 %v2277_v42, %v4272_v48  ;;  %v2316_v48 = vld [vmem:[#allocation2 + $0x1f7] sm:$0x1]  ;;  %v2395_v62 = vld [vmem:[#allocation2 + $0x158] sm:$0x1] }
 0x1d5   : > { %v2294_v19 = vadd.f32 %v2278_v21, %v4274_v18  ;;  %v2330_v32 = vrot.slane %v2322_v39, 1  ;;  %v2331_v17 = vrot.slane %v2322_v39, 2  ;;  %v2332_v45 = vrot.slane %v2322_v39, 3  ;;  %v2396_v30 = vld [vmem:[#allocation2 + $0x178] sm:$0x1] }
 0x1d6   : > { %v2333_v2 = vrot.slane %v2322_v39, 4  ;;  %v2334_v29 = vrot.slane %v2322_v39, 5  ;;  %v2335_v63 = vrot.slane %v2322_v39, 6  ;;  %v2336_v10 = vrot.slane %v2322_v39, 7  ;;  %v2398_v20 = vld [vmem:[#allocation2 + $0x1b8] sm:$0x1] }
 0x1d7   : > { %v2295_v13 = vadd.f32 %v2279_v24, %v4276_v28  ;;  %v2296_v6 = vadd.f32 %v2280_v27, %v4278_v35  ;;  %v2361_v5 = vmul.f32 %v2322_v39, %v2309_v15  ;;  %v2362_v40 = vmul.f32 %v2330_v32, %v2310_v50  ;;  %v2393_v28 = vld [vmem:[#allocation2 + $0x118] sm:$0x1] }
 0x1d8   : > { %v2297_v47 = vadd.f32 %v2281_v31, %v4280_v23  ;;  %v2298_v18 = vadd.f32 %v2282_v52, %v4282_v41  ;;  %v2299_v0 = vadd.f32 %v2283_v43, %v4284_v57  ;;  %v2300_v4 = vadd.f32 %v2284_v7, %v4286_v54  ;;  %v2397_v23 = vld [vmem:[#allocation2 + $0x198] sm:$0x1]  ;;  %v2403_v52 = vpop.permute.xlu1 %2402 }
 0x1d9   : > { %v2363_v59 = vmul.f32 %v2331_v17, %v2311_v11  ;;  %v2364_v60 = vmul.f32 %v2332_v45, %v2312_v46  ;;  %v2365_v12 = vmul.f32 %v2333_v2, %v2313_v34  ;;  %v2366_v25 = vmul.f32 %v2334_v29, %v2314_v16  ;;  %v2399_v54 = vld [vmem:[#allocation2 + $0x1d8] sm:$0x1] }
 0x1da   : > { %v2367_v35 = vmul.f32 %v2335_v63, %v2315_v58  ;;  %v2368_v51 = vmul.f32 %v2336_v10, %v2316_v48  ;;  %v2377_v8 = vadd.f32 %v2361_v5, %v2293_v3  ;;  %v2378_v14 = vadd.f32 %v2362_v40, %v2294_v19  ;;  %v2400_v31 = vld [vmem:[#allocation2 + $0x1f8] sm:$0x1] }
 0x1db   : > { %v2414_v41 = vrot.slane %v2406_v1, 1  ;;  %v2415_v37 = vrot.slane %v2406_v1, 2  ;;  %v2416_v57 = vrot.slane %v2406_v1, 3  ;;  %v2417_v49 = vrot.slane %v2406_v1, 4  ;;  %v2385_v32 = vld [vmem:[#allocation2 + $0x18] sm:$0x1] }
 0x1dc   : > { %v2418_v9 = vrot.slane %v2406_v1, 5  ;;  %v2419_v53 = vrot.slane %v2406_v1, 6  ;;  %v2420_v42 = vrot.slane %v2406_v1, 7  ;;  %v2445_v21 = vmul.f32 %v2406_v1, %v2393_v28  ;;  %v2386_v17 = vld [vmem:[#allocation2 + $0x38] sm:$0x1] }
 0x1dd   : > { %v2379_v39 = vadd.f32 %v2363_v59, %v2295_v13  ;;  %v2380_v24 = vadd.f32 %v2364_v60, %v2296_v6  ;;  %v2381_v27 = vadd.f32 %v2365_v12, %v2297_v47  ;;  %v2446_v15 = vmul.f32 %v2414_v41, %v2394_v26  ;;  %v2387_v45 = vld [vmem:[#allocation2 + $0x58] sm:$0x1]  ;;  %v2487_v26 = vpop.permute.xlu1 %2486  ;;  %v2469_v41 = vld [vmem:[#allocation2 + $0x19] sm:$0x1] }
 0x1de   : > { %v2382_v43 = vadd.f32 %v2366_v25, %v2298_v18  ;;  %v2383_v7 = vadd.f32 %v2367_v35, %v2299_v0  ;;  %v2384_v3 = vadd.f32 %v2368_v51, %v2300_v4  ;;  %v2447_v50 = vmul.f32 %v2415_v37, %v2395_v62  ;;  %v2388_v63 = vld [vmem:[#allocation2 + $0x78] sm:$0x1]  ;;  %v2470_v37 = vld [vmem:[#allocation2 + $0x39] sm:$0x1] }
 0x1df   : > { %v2448_v11 = vmul.f32 %v2416_v57, %v2396_v30  ;;  %v2449_v46 = vmul.f32 %v2417_v49, %v2397_v23  ;;  %v2450_v19 = vmul.f32 %v2418_v9, %v2398_v20  ;;  %v2451_v34 = vmul.f32 %v2419_v53, %v2399_v54  ;;  %v2389_v10 = vld [vmem:[#allocation2 + $0x98] sm:$0x1]  ;;  %v2471_v57 = vld [vmem:[#allocation2 + $0x59] sm:$0x1] }
 0x1e0   : > { %v2452_v16 = vmul.f32 %v2420_v42, %v2400_v31  ;;  %v4320_v2 = vadd.f32 %v2445_v21, %v2377_v8  ;;  %v4322_v29 = vadd.f32 %v2446_v15, %v2378_v14  ;;  %v2407_v13 = vrot.slane %v2403_v52, 1  ;;  %v2390_v6 = vld [vmem:[#allocation2 + $0xb8] sm:$0x1]  ;;  %v2472_v9 = vld [vmem:[#allocation2 + $0x79] sm:$0x1] }
 0x1e1   : > { %v2408_v58 = vrot.slane %v2403_v52, 2  ;;  %v2409_v48 = vrot.slane %v2403_v52, 3  ;;  %v2410_v5 = vrot.slane %v2403_v52, 4  ;;  %v2411_v40 = vrot.slane %v2403_v52, 5  ;;  %v2391_v47 = vld [vmem:[#allocation2 + $0xd8] sm:$0x1] }
 0x1e2   : > { %v2392_v18 = vld [vmem:[#allocation2 + $0xf8] sm:$0x1]  ;;  %v2412_v0 = vrot.slane %v2403_v52, 6  ;;  %v2413_v4 = vrot.slane %v2403_v52, 7  ;;  %v2437_v1 = vmul.f32 %v2403_v52, %v2385_v32  ;;  %v2438_v59 = vmul.f32 %v2407_v13, %v2386_v17  ;;  %v2473_v53 = vld [vmem:[#allocation2 + $0x99] sm:$0x1] }
 0x1e3   : > { %v4324_v60 = vadd.f32 %v2447_v50, %v2379_v39  ;;  %v4326_v12 = vadd.f32 %v2448_v11, %v2380_v24  ;;  %v4328_v25 = vadd.f32 %v2449_v46, %v2381_v27  ;;  %v4330_v28 = vadd.f32 %v2450_v19, %v2382_v43  ;;  %v2474_v39 = vld [vmem:[#allocation2 + $0xb9] sm:$0x1] }
 0x1e4   : > { %v4332_v35 = vadd.f32 %v2451_v34, %v2383_v7  ;;  %v4334_v51 = vadd.f32 %v2452_v16, %v2384_v3  ;;  %v2439_v8 = vmul.f32 %v2408_v58, %v2387_v45  ;;  %v2440_v14 = vmul.f32 %v2409_v48, %v2388_v63  ;;  %v2475_v43 = vld [vmem:[#allocation2 + $0xd9] sm:$0x1]  ;;  %v2571_v34 = vpop.permute.xlu0 %2570  ;;  %v2554_v58 = vld [vmem:[#allocation2 + $0x3a] sm:$0x1] }
 0x1e5   : > { %v2441_v62 = vmul.f32 %v2410_v5, %v2389_v10  ;;  %v2442_v30 = vmul.f32 %v2411_v40, %v2390_v6  ;;  %v2443_v23 = vmul.f32 %v2412_v0, %v2391_v47  ;;  %v2444_v20 = vmul.f32 %v2413_v4, %v2392_v18  ;;  %v2476_v7 = vld [vmem:[#allocation2 + $0xf9] sm:$0x1]  ;;  %v2555_v48 = vld [vmem:[#allocation2 + $0x5a] sm:$0x1] }
 0x1e6   : > { %v2453_v49 = vadd.f32 %v2437_v1, %v4296_v61  ;;  %v2454_v54 = vadd.f32 %v2438_v59, %v4298_v56  ;;  %v2491_v42 = vrot.slane %v2487_v26, 1  ;;  %v2492_v21 = vrot.slane %v2487_v26, 2 }
 0x1e7   : > { %v2493_v24 = vrot.slane %v2487_v26, 3  ;;  %v2494_v27 = vrot.slane %v2487_v26, 4  ;;  %v2495_v31 = vrot.slane %v2487_v26, 5  ;;  %v2496_v15 = vrot.slane %v2487_v26, 6 }
 0x1e8   : > { %v2455_v52 = vadd.f32 %v2439_v8, %v4300_v55  ;;  %v2497_v3 = vrot.slane %v2487_v26, 7  ;;  %v2521_v50 = vmul.f32 %v2487_v26, %v2469_v41  ;;  %v2522_v11 = vmul.f32 %v2491_v42, %v2470_v37  ;;  %v2553_v55 = vld [vmem:[#allocation2 + $0x1a] sm:$0x1]  ;;  %v2478_v42 = vld [vmem:[#allocation2 + $0x139] sm:$0x1] }
 0x1e9   : > { %v2456_v61 = vadd.f32 %v2440_v14, %v4302_v36  ;;  %v2457_v56 = vadd.f32 %v2441_v62, %v4304_v38  ;;  %v2458_v46 = vadd.f32 %v2442_v30, %v4306_v44  ;;  %v2459_v19 = vadd.f32 %v2443_v23, %v4308_v33  ;;  %v2556_v36 = vld [vmem:[#allocation2 + $0x7a] sm:$0x1]  ;;  %v2490_v30 = vpop.permute.xlu1 %2489 }
 0x1ea   : > { %v2460_v32 = vadd.f32 %v2444_v20, %v4310_v22  ;;  %v2523_v17 = vmul.f32 %v2492_v21, %v2471_v57  ;;  %v2524_v45 = vmul.f32 %v2493_v24, %v2472_v9  ;;  %v2525_v16 = vmul.f32 %v2494_v27, %v2473_v53  ;;  %v2557_v38 = vld [vmem:[#allocation2 + $0x9a] sm:$0x1]  ;;  %v2477_v53 = vld [vmem:[#allocation2 + $0x119] sm:$0x1] }
 0x1eb   : > { %v2526_v63 = vmul.f32 %v2495_v31, %v2474_v39  ;;  %v2527_v10 = vmul.f32 %v2496_v15, %v2475_v43  ;;  %v2528_v13 = vmul.f32 %v2497_v3, %v2476_v7  ;;  %v2537_v6 = vadd.f32 %v2521_v50, %v2453_v49  ;;  %v2558_v33 = vld [vmem:[#allocation2 + $0xba] sm:$0x1]  ;;  %v2479_v31 = vld [vmem:[#allocation2 + $0x159] sm:$0x1] }
 0x1ec   : > { %v2538_v5 = vadd.f32 %v2522_v11, %v2454_v54  ;;  %v2575_v40 = vrot.slane %v2571_v34, 1  ;;  %v2576_v44 = vrot.slane %v2571_v34, 2  ;;  %v2577_v47 = vrot.slane %v2571_v34, 3  ;;  %v2559_v26 = vld [vmem:[#allocation2 + $0xda] sm:$0x1] }
 0x1ed   : > { %v2578_v18 = vrot.slane %v2571_v34, 4  ;;  %v2579_v0 = vrot.slane %v2571_v34, 5  ;;  %v2580_v22 = vrot.slane %v2571_v34, 6  ;;  %v2581_v4 = vrot.slane %v2571_v34, 7  ;;  %v2560_v8 = vld [vmem:[#allocation2 + $0xfa] sm:$0x1] }
 0x1ee   : > { %v2539_v1 = vadd.f32 %v2523_v17, %v2455_v52  ;;  %v2540_v59 = vadd.f32 %v2524_v45, %v2456_v61  ;;  %v2605_v14 = vmul.f32 %v2571_v34, %v2553_v55  ;;  %v2606_v62 = vmul.f32 %v2575_v40, %v2554_v58  ;;  %v2480_v15 = vld [vmem:[#allocation2 + $0x179] sm:$0x1]  ;;  %v2561_v40 = vld [vmem:[#allocation2 + $0x11a] sm:$0x1] }
 0x1ef   : > { %v2541_v23 = vadd.f32 %v2525_v16, %v2457_v56  ;;  %v2542_v20 = vadd.f32 %v2526_v63, %v2458_v46  ;;  %v2543_v41 = vadd.f32 %v2527_v10, %v2459_v19  ;;  %v2544_v37 = vadd.f32 %v2528_v13, %v2460_v32  ;;  %v2481_v52 = vld [vmem:[#allocation2 + $0x199] sm:$0x1]  ;;  %v2574_v63 = vpop.permute.xlu1 %2573 }
 0x1f0   : > { %v2607_v57 = vmul.f32 %v2576_v44, %v2555_v48  ;;  %v2608_v49 = vmul.f32 %v2577_v47, %v2556_v36  ;;  %v2609_v54 = vmul.f32 %v2578_v18, %v2557_v38  ;;  %v2610_v9 = vmul.f32 %v2579_v0, %v2558_v33  ;;  %v2482_v43 = vld [vmem:[#allocation2 + $0x1b9] sm:$0x1]  ;;  %v2562_v44 = vld [vmem:[#allocation2 + $0x13a] sm:$0x1] }
 0x1f1   : > { %v2611_v21 = vmul.f32 %v2580_v22, %v2559_v26  ;;  %v2612_v39 = vmul.f32 %v2581_v4, %v2560_v8  ;;  %v4344_v24 = vadd.f32 %v2605_v14, %v2537_v6  ;;  %v4346_v27 = vadd.f32 %v2606_v62, %v2538_v5  ;;  %v2483_v61 = vld [vmem:[#allocation2 + $0x1d9] sm:$0x1]  ;;  %v2563_v47 = vld [vmem:[#allocation2 + $0x15a] sm:$0x1] }
 0x1f2   : > { %v2498_v7 = vrot.slane %v2490_v30, 1  ;;  %v2499_v3 = vrot.slane %v2490_v30, 2  ;;  %v2500_v50 = vrot.slane %v2490_v30, 3  ;;  %v2501_v11 = vrot.slane %v2490_v30, 4  ;;  %v2484_v16 = vld [vmem:[#allocation2 + $0x1f9] sm:$0x1] }
 0x1f3   : > { %v2502_v56 = vrot.slane %v2490_v30, 5  ;;  %v2503_v46 = vrot.slane %v2490_v30, 6  ;;  %v2504_v19 = vrot.slane %v2490_v30, 7  ;;  %v2529_v34 = vmul.f32 %v2490_v30, %v2477_v53  ;;  %v2564_v22 = vld [vmem:[#allocation2 + $0x17a] sm:$0x1] }
 0x1f4   : > { %v4348_v32 = vadd.f32 %v2607_v57, %v2539_v1  ;;  %v4350_v17 = vadd.f32 %v2608_v49, %v2540_v59  ;;  %v4352_v45 = vadd.f32 %v2609_v54, %v2541_v23  ;;  %v2530_v55 = vmul.f32 %v2498_v7, %v2478_v42  ;;  %v2565_v4 = vld [vmem:[#allocation2 + $0x19a] sm:$0x1]  ;;  %v2645_v7 = vld [vmem:[#allocation2 + $0x11b] sm:$0x1] }
 0x1f5   : > { %v4354_v10 = vadd.f32 %v2610_v9, %v2542_v20  ;;  %v4356_v13 = vadd.f32 %v2611_v21, %v2543_v41  ;;  %v4358_v6 = vadd.f32 %v2612_v39, %v2544_v37  ;;  %v2531_v58 = vmul.f32 %v2499_v3, %v2479_v31  ;;  %v2566_v59 = vld [vmem:[#allocation2 + $0x1ba] sm:$0x1]  ;;  %v2658_v9 = vpop.permute.xlu0 %2657  ;;  %v2646_v3 = vld [vmem:[#allocation2 + $0x13b] sm:$0x1] }
 0x1f6   : > { %v2532_v48 = vmul.f32 %v2500_v50, %v2480_v15  ;;  %v2533_v36 = vmul.f32 %v2501_v11, %v2481_v52  ;;  %v2534_v5 = vmul.f32 %v2502_v56, %v2482_v43  ;;  %v2535_v38 = vmul.f32 %v2503_v46, %v2483_v61  ;;  %v2567_v30 = vld [vmem:[#allocation2 + $0x1da] sm:$0x1]  ;;  %v2648_v11 = vld [vmem:[#allocation2 + $0x17b] sm:$0x1] }
 0x1f7   : > { %v2536_v33 = vmul.f32 %v2504_v19, %v2484_v16  ;;  %v2545_v18 = vadd.f32 %v2529_v34, %v4320_v2  ;;  %v2546_v0 = vadd.f32 %v2530_v55, %v4322_v29  ;;  %v2582_v1 = vrot.slane %v2574_v63, 1  ;;  %v2568_v23 = vld [vmem:[#allocation2 + $0x1fa] sm:$0x1]  ;;  %v2650_v56 = vld [vmem:[#allocation2 + $0x1bb] sm:$0x1] }
 0x1f8   : > { %v2583_v26 = vrot.slane %v2574_v63, 2  ;;  %v2584_v8 = vrot.slane %v2574_v63, 3  ;;  %v2585_v14 = vrot.slane %v2574_v63, 4  ;;  %v2586_v62 = vrot.slane %v2574_v63, 5  ;;  %v2651_v16 = vld [vmem:[#allocation2 + $0x1db] sm:$0x1] }
 0x1f9   : > { %v2587_v20 = vrot.slane %v2574_v63, 6  ;;  %v2588_v41 = vrot.slane %v2574_v63, 7  ;;  %v2613_v37 = vmul.f32 %v2574_v63, %v2561_v40  ;;  %v2614_v57 = vmul.f32 %v2582_v1, %v2562_v44  ;;  %v2652_v55 = vld [vmem:[#allocation2 + $0x1fb] sm:$0x1]  ;;  %v2655_v44 = vpop.permute.xlu1 %2654 }
 0x1fa   : > { %v2547_v49 = vadd.f32 %v2531_v58, %v4324_v60  ;;  %v2548_v2 = vadd.f32 %v2532_v48, %v4326_v12  ;;  %v2549_v29 = vadd.f32 %v2533_v36, %v4328_v25  ;;  %v2550_v54 = vadd.f32 %v2534_v5, %v4330_v28  ;;  %v2647_v60 = vld [vmem:[#allocation2 + $0x15b] sm:$0x1] }
 0x1fb   : > { %v2551_v53 = vadd.f32 %v2535_v38, %v4332_v35  ;;  %v2552_v42 = vadd.f32 %v2536_v33, %v4334_v51  ;;  %v2615_v21 = vmul.f32 %v2583_v26, %v2563_v47  ;;  %v2616_v39 = vmul.f32 %v2584_v8, %v2564_v22  ;;  %v2649_v25 = vld [vmem:[#allocation2 + $0x19b] sm:$0x1] }
 0x1fc   : > { %v2617_v31 = vmul.f32 %v2585_v14, %v2565_v4  ;;  %v2618_v15 = vmul.f32 %v2586_v62, %v2566_v59  ;;  %v2619_v52 = vmul.f32 %v2587_v20, %v2567_v30  ;;  %v2620_v43 = vmul.f32 %v2588_v41, %v2568_v23  ;;  %v2637_v22 = vld [vmem:[#allocation2 + $0x1b] sm:$0x1] }
 0x1fd   : > { %v2629_v50 = vadd.f32 %v2613_v37, %v2545_v18  ;;  %v2630_v12 = vadd.f32 %v2614_v57, %v2546_v0  ;;  %v2666_v61 = vrot.slane %v2658_v9, 1  ;;  %v2667_v28 = vrot.slane %v2658_v9, 2  ;;  %v2638_v4 = vld [vmem:[#allocation2 + $0x3b] sm:$0x1] }
 0x1fe   : > { %v2668_v46 = vrot.slane %v2658_v9, 3  ;;  %v2669_v35 = vrot.slane %v2658_v9, 4  ;;  %v2670_v19 = vrot.slane %v2658_v9, 5  ;;  %v2671_v51 = vrot.slane %v2658_v9, 6  ;;  %v2639_v1 = vld [vmem:[#allocation2 + $0x5b] sm:$0x1] }
 0x1ff   : > { %v2631_v34 = vadd.f32 %v2615_v21, %v2547_v49  ;;  %v2672_v63 = vrot.slane %v2658_v9, 7  ;;  %v2697_v58 = vmul.f32 %v2658_v9, %v2645_v7  ;;  %v2698_v48 = vmul.f32 %v2666_v61, %v2646_v3  ;;  %v2640_v62 = vld [vmem:[#allocation2 + $0x7b] sm:$0x1]  ;;  %v2721_v3 = vld [vmem:[#allocation2 + $0x1c] sm:$0x1] }
 0x200   : > { %v4368_v36 = vadd.f32 %v2616_v39, %v2548_v2  ;;  %v4370_v5 = vadd.f32 %v2617_v31, %v2549_v29  ;;  %v4372_v38 = vadd.f32 %v2618_v15, %v2550_v54  ;;  %v4374_v40 = vadd.f32 %v2619_v52, %v2551_v53  ;;  %v2641_v30 = vld [vmem:[#allocation2 + $0x9b] sm:$0x1]  ;;  %v2722_v61 = vld [vmem:[#allocation2 + $0x3c] sm:$0x1] }
 0x201   : > { %v4376_v47 = vadd.f32 %v2620_v43, %v2552_v42  ;;  %v2699_v33 = vmul.f32 %v2667_v28, %v2647_v60  ;;  %v4378_v18 = vmul.f32 %v2668_v46, %v2648_v11  ;;  %v4380_v0 = vmul.f32 %v2669_v35, %v2649_v25  ;;  %v2642_v23 = vld [vmem:[#allocation2 + $0xbb] sm:$0x1]  ;;  %v2739_v60 = vpop.permute.xlu1 %2738  ;;  %v2723_v28 = vld [vmem:[#allocation2 + $0x5c] sm:$0x1] }
 0x202   : > { %v4382_v59 = vmul.f32 %v2670_v19, %v2650_v56  ;;  %v4384_v26 = vmul.f32 %v2671_v51, %v2651_v16  ;;  %v4386_v8 = vmul.f32 %v2672_v63, %v2652_v55  ;;  %v4388_v14 = vadd.f32 %v2697_v58, %v2629_v50  ;;  %v2643_v41 = vld [vmem:[#allocation2 + $0xdb] sm:$0x1]  ;;  %v2724_v56 = vld [vmem:[#allocation2 + $0x7c] sm:$0x1] }
 0x203   : > { %v4390_v20 = vadd.f32 %v2698_v48, %v2630_v12  ;;  %v2659_v37 = vrot.slane %v2655_v44, 1  ;;  %v2660_v57 = vrot.slane %v2655_v44, 2  ;;  %v2661_v49 = vrot.slane %v2655_v44, 3  ;;  %v2644_v2 = vld [vmem:[#allocation2 + $0xfb] sm:$0x1] }
 0x204   : > { %v2662_v29 = vrot.slane %v2655_v44, 4  ;;  %v2663_v54 = vrot.slane %v2655_v44, 5  ;;  %v2664_v9 = vrot.slane %v2655_v44, 6  ;;  %v2665_v53 = vrot.slane %v2655_v44, 7  ;;  %v2726_v16 = vld [vmem:[#allocation2 + $0xbc] sm:$0x1] }
 0x205   : > { %v2689_v42 = vmul.f32 %v2655_v44, %v2637_v22  ;;  %v2690_v21 = vmul.f32 %v2659_v37, %v2638_v4  ;;  %v2691_v39 = vmul.f32 %v2660_v57, %v2639_v1  ;;  %v2692_v31 = vmul.f32 %v2661_v49, %v2640_v62  ;;  %v2727_v55 = vld [vmem:[#allocation2 + $0xdc] sm:$0x1]  ;;  %v2823_v62 = vpop.permute.xlu0 %2822 }
 0x206   : > { %v4392_v15 = vadd.f32 %v2699_v33, %v2631_v34  ;;  %v2693_v52 = vmul.f32 %v2662_v29, %v2641_v30  ;;  %v2694_v43 = vmul.f32 %v2663_v54, %v2642_v23  ;;  %v2695_v7 = vmul.f32 %v2664_v9, %v2643_v41  ;;  %v2725_v34 = vld [vmem:[#allocation2 + $0x9c] sm:$0x1]  ;;  %v2805_v41 = vld [vmem:[#allocation2 + $0x1d] sm:$0x1] }
 0x207   : > { %v2696_v50 = vmul.f32 %v2665_v53, %v2644_v2  ;;  %v2705_v12 = vadd.f32 %v2689_v42, %v4344_v24  ;;  %v2706_v11 = vadd.f32 %v2690_v21, %v4346_v27  ;;  %v2707_v25 = vadd.f32 %v2691_v39, %v4348_v32  ;;  %v2728_v63 = vld [vmem:[#allocation2 + $0xfc] sm:$0x1]  ;;  %v2806_v29 = vld [vmem:[#allocation2 + $0x3d] sm:$0x1] }
 0x208   : > { %v2708_v46 = vadd.f32 %v2692_v31, %v4350_v17  ;;  %v2709_v35 = vadd.f32 %v2693_v52, %v4352_v45  ;;  %v2710_v19 = vadd.f32 %v2694_v43, %v4354_v10  ;;  %v2711_v51 = vadd.f32 %v2695_v7, %v4356_v13  ;;  %v2807_v54 = vld [vmem:[#allocation2 + $0x5d] sm:$0x1] }
 0x209   : > { %v2743_v24 = vrot.slane %v2739_v60, 1  ;;  %v2744_v58 = vrot.slane %v2739_v60, 2  ;;  %v2745_v27 = vrot.slane %v2739_v60, 3  ;;  %v2746_v48 = vrot.slane %v2739_v60, 4  ;;  %v2808_v9 = vld [vmem:[#allocation2 + $0x7d] sm:$0x1] }
 0x20a   : > { %v2747_v32 = vrot.slane %v2739_v60, 5  ;;  %v2748_v44 = vrot.slane %v2739_v60, 6  ;;  %v2749_v33 = vrot.slane %v2739_v60, 7  ;;  %v2773_v22 = vmul.f32 %v2739_v60, %v2721_v3  ;;  %v2809_v39 = vld [vmem:[#allocation2 + $0x9d] sm:$0x1] }
 0x20b   : > { %v2774_v4 = vmul.f32 %v2743_v24, %v2722_v61  ;;  %v2775_v17 = vmul.f32 %v2744_v58, %v2723_v28  ;;  %v2776_v1 = vmul.f32 %v2745_v27, %v2724_v56  ;;  %v2777_v45 = vmul.f32 %v2746_v48, %v2725_v34  ;;  %v2810_v31 = vld [vmem:[#allocation2 + $0xbd] sm:$0x1] }
 0x20c   : > { %v2712_v10 = vadd.f32 %v2696_v50, %v4358_v6  ;;  %v2778_v13 = vmul.f32 %v2747_v32, %v2726_v16  ;;  %v2779_v30 = vmul.f32 %v2748_v44, %v2727_v55  ;;  %v2780_v23 = vmul.f32 %v2749_v33, %v2728_v63  ;;  %v2811_v43 = vld [vmem:[#allocation2 + $0xdd] sm:$0x1]  ;;  %v4402_v50 = vpop.permute.xlu1 %2741  ;;  %v2732_v32 = vld [vmem:[#allocation2 + $0x17c] sm:$0x1] }
 0x20d   : > { %v2789_v37 = vadd.f32 %v2773_v22, %v2705_v12  ;;  %v2790_v57 = vadd.f32 %v2774_v4, %v2706_v11  ;;  %v2791_v49 = vadd.f32 %v2775_v17, %v2707_v25  ;;  %v2792_v2 = vadd.f32 %v2776_v1, %v2708_v46  ;;  %v2812_v12 = vld [vmem:[#allocation2 + $0xfd] sm:$0x1]  ;;  %v2733_v44 = vld [vmem:[#allocation2 + $0x19c] sm:$0x1] }
 0x20e   : > { %v2793_v53 = vadd.f32 %v2777_v45, %v2709_v35  ;;  %v2794_v42 = vadd.f32 %v2778_v13, %v2710_v19  ;;  %v2795_v21 = vadd.f32 %v2779_v30, %v2711_v51  ;;  %v2827_v52 = vrot.slane %v2823_v62, 1  ;;  %v2734_v33 = vld [vmem:[#allocation2 + $0x1bc] sm:$0x1]  ;;  %v2813_v13 = vld [vmem:[#allocation2 + $0x11d] sm:$0x1] }
 0x20f   : > { %v2828_v7 = vrot.slane %v2823_v62, 2  ;;  %v2829_v6 = vrot.slane %v2823_v62, 3  ;;  %v2830_v3 = vrot.slane %v2823_v62, 4  ;;  %v2831_v60 = vrot.slane %v2823_v62, 5  ;;  %v2735_v4 = vld [vmem:[#allocation2 + $0x1dc] sm:$0x1] }
 0x210   : > { %v2832_v11 = vrot.slane %v2823_v62, 6  ;;  %v2833_v25 = vrot.slane %v2823_v62, 7  ;;  %v2857_v61 = vmul.f32 %v2823_v62, %v2805_v41  ;;  %v2858_v28 = vmul.f32 %v2827_v52, %v2806_v29  ;;  %v2826_v22 = vpop.permute.xlu1 %2825  ;;  %v2736_v17 = vld [vmem:[#allocation2 + $0x1fc] sm:$0x1]  ;;  %v2814_v30 = vld [vmem:[#allocation2 + $0x13d] sm:$0x1] }
 0x211   : > { %v2859_v56 = vmul.f32 %v2828_v7, %v2807_v54  ;;  %v2860_v46 = vmul.f32 %v2829_v6, %v2808_v9  ;;  %v2861_v35 = vmul.f32 %v2830_v3, %v2809_v39  ;;  %v2862_v19 = vmul.f32 %v2831_v60, %v2810_v31  ;;  %v2817_v54 = vld [vmem:[#allocation2 + $0x19d] sm:$0x1] }
 0x212   : > { %v4406_v51 = vadd.f32 %v4378_v18, %v4368_v36  ;;  %v4410_v34 = vadd.f32 %v4380_v0, %v4370_v5  ;;  %v4414_v16 = vadd.f32 %v4382_v59, %v4372_v38  ;;  %v2863_v55 = vmul.f32 %v2832_v11, %v2811_v43  ;;  %v2729_v0 = vld [vmem:[#allocation2 + $0x11c] sm:$0x1]  ;;  %v2820_v11 = vld [vmem:[#allocation2 + $0x1fd] sm:$0x1] }
 0x213   : > { %v4418_v63 = vadd.f32 %v4384_v26, %v4374_v40  ;;  %v4422_v24 = vadd.f32 %v4386_v8, %v4376_v47  ;;  %v2796_v58 = vadd.f32 %v2780_v23, %v2712_v10  ;;  %v2864_v36 = vmul.f32 %v2833_v25, %v2812_v12  ;;  %v2730_v38 = vld [vmem:[#allocation2 + $0x13c] sm:$0x1]  ;;  %v2819_v12 = vld [vmem:[#allocation2 + $0x1dd] sm:$0x1] }
 0x214   : > { %v4424_v18 = vadd.f32 %v2857_v61, %v2789_v37  ;;  %v4426_v27 = vadd.f32 %v2858_v28, %v2790_v57  ;;  %v4428_v5 = vadd.f32 %v2859_v56, %v2791_v49  ;;  %v2750_v59 = vrot.slane %v4402_v50, 1  ;;  %v2731_v8 = vld [vmem:[#allocation2 + $0x15c] sm:$0x1]  ;;  %v2815_v49 = vld [vmem:[#allocation2 + $0x15d] sm:$0x1] }
 0x215   : > { %v4431_v48 = vadd.f32 %v2860_v46, %v2792_v2  ;;  %v4433_v40 = vadd.f32 %v2861_v35, %v2793_v53  ;;  %v4435_v26 = vadd.f32 %v2862_v19, %v2794_v42  ;;  %v4437_v47 = vadd.f32 %v2863_v55, %v2795_v21  ;;  %v2816_v2 = vld [vmem:[#allocation2 + $0x17d] sm:$0x1] }
 0x216   : > { %v2751_v1 = vrot.slane %v4402_v50, 2  ;;  %v2752_v45 = vrot.slane %v4402_v50, 3  ;;  %v2753_v62 = vrot.slane %v4402_v50, 4  ;;  %v2754_v10 = vrot.slane %v4402_v50, 5  ;;  %v2818_v21 = vld [vmem:[#allocation2 + $0x1bd] sm:$0x1] }
 0x217   : > { %v4443_v23 = vadd.f32 %v2864_v36, %v2796_v58  ;;  %v2755_v41 = vrot.slane %v4402_v50, 6  ;;  %v2756_v37 = vrot.slane %v4402_v50, 7  ;;  %v2781_v57 = vmul.f32 %v4402_v50, %v2729_v0 }
 0x218   : > { %v2782_v29 = vmul.f32 %v2750_v59, %v2730_v38  ;;  %v2834_v9 = vrot.slane %v2826_v22, 1  ;;  %v2835_v53 = vrot.slane %v2826_v22, 2  ;;  %v2836_v42 = vrot.slane %v2826_v22, 3  ;;  %v2910_v38 = vpop.permute.xlu0 %2909 }
 0x219   : > { %v2837_v39 = vrot.slane %v2826_v22, 4  ;;  %v2838_v31 = vrot.slane %v2826_v22, 5  ;;  %v2839_v52 = vrot.slane %v2826_v22, 6  ;;  %v2840_v43 = vrot.slane %v2826_v22, 7 }
 0x21a   : > { %v2783_v7 = vmul.f32 %v2751_v1, %v2731_v8  ;;  %v2784_v6 = vmul.f32 %v2752_v45, %v2732_v32  ;;  %v2785_v3 = vmul.f32 %v2753_v62, %v2733_v44  ;;  %v2786_v60 = vmul.f32 %v2754_v10, %v2734_v33  ;;  %v2897_v33 = vld [vmem:[#allocation2 + $0x11e] sm:$0x1] }
 0x21b   : > { %v2787_v25 = vmul.f32 %v2755_v41, %v2735_v4  ;;  %v2788_v50 = vmul.f32 %v2756_v37, %v2736_v17  ;;  %v2865_v61 = vmul.f32 %v2826_v22, %v2813_v13  ;;  %v2866_v28 = vmul.f32 %v2834_v9, %v2814_v30  ;;  %v2898_v22 = vld [vmem:[#allocation2 + $0x13e] sm:$0x1] }
 0x21c   : > { %v2867_v56 = vmul.f32 %v2835_v53, %v2815_v49  ;;  %v2868_v46 = vmul.f32 %v2836_v42, %v2816_v2  ;;  %v2869_v35 = vmul.f32 %v2837_v39, %v2817_v54  ;;  %v2870_v19 = vmul.f32 %v2838_v31, %v2818_v21  ;;  %v2900_v62 = vld [vmem:[#allocation2 + $0x17e] sm:$0x1]  ;;  %v2907_v54 = vpop.permute.xlu1 %2906 }
 0x21d   : > { %v2871_v55 = vmul.f32 %v2839_v52, %v2819_v12  ;;  %v2872_v58 = vmul.f32 %v2840_v43, %v2820_v11  ;;  %v2797_v36 = vadd.f32 %v2781_v57, %v4388_v14  ;;  %v2798_v0 = vadd.f32 %v2782_v29, %v4390_v20  ;;  %v2899_v14 = vld [vmem:[#allocation2 + $0x15e] sm:$0x1] }
 0x21e   : > { %v2799_v59 = vadd.f32 %v2783_v7, %v4392_v15  ;;  %v2800_v8 = vadd.f32 %v2784_v6, %v4406_v51  ;;  %v2801_v32 = vadd.f32 %v2785_v3, %v4410_v34  ;;  %v2802_v44 = vadd.f32 %v2786_v60, %v4414_v16  ;;  %v2901_v20 = vld [vmem:[#allocation2 + $0x19e] sm:$0x1] }
 0x21f   : > { %v2803_v4 = vadd.f32 %v2787_v25, %v4418_v63  ;;  %v2804_v17 = vadd.f32 %v2788_v50, %v4422_v24  ;;  %v2881_v1 = vadd.f32 %v2865_v61, %v2797_v36  ;;  %v2882_v45 = vadd.f32 %v2866_v28, %v2798_v0  ;;  %v2902_v10 = vld [vmem:[#allocation2 + $0x1be] sm:$0x1] }
 0x220   : > { %v2918_v13 = vrot.slane %v2910_v38, 1  ;;  %v2919_v15 = vrot.slane %v2910_v38, 2  ;;  %v2920_v30 = vrot.slane %v2910_v38, 3  ;;  %v2921_v51 = vrot.slane %v2910_v38, 4  ;;  %v2903_v41 = vld [vmem:[#allocation2 + $0x1de] sm:$0x1] }
 0x221   : > { %v2922_v34 = vrot.slane %v2910_v38, 5  ;;  %v2923_v37 = vrot.slane %v2910_v38, 6  ;;  %v2924_v16 = vrot.slane %v2910_v38, 7  ;;  %v2949_v57 = vmul.f32 %v2910_v38, %v2897_v33  ;;  %v2904_v24 = vld [vmem:[#allocation2 + $0x1fe] sm:$0x1] }
 0x222   : > { %v2883_v49 = vadd.f32 %v2867_v56, %v2799_v59  ;;  %v4456_v2 = vadd.f32 %v2868_v46, %v2800_v8  ;;  %v4458_v63 = vadd.f32 %v2869_v35, %v2801_v32  ;;  %v2950_v29 = vmul.f32 %v2918_v13, %v2898_v22  ;;  %v2889_v39 = vld [vmem:[#allocation2 + $0x1e] sm:$0x1]  ;;  %v2991_v22 = vpop.permute.xlu1 %2990 }
 0x223   : > { %v4460_v9 = vadd.f32 %v2870_v19, %v2802_v44  ;;  %v4462_v53 = vadd.f32 %v2871_v55, %v2803_v4  ;;  %v4464_v42 = vadd.f32 %v2872_v58, %v2804_v17  ;;  %v2951_v21 = vmul.f32 %v2919_v15, %v2899_v14  ;;  %v2890_v31 = vld [vmem:[#allocation2 + $0x3e] sm:$0x1]  ;;  %v2973_v14 = vld [vmem:[#allocation2 + $0x1f] sm:$0x1] }
 0x224   : > { %v4466_v52 = vmul.f32 %v2920_v30, %v2900_v62  ;;  %v4468_v43 = vmul.f32 %v2921_v51, %v2901_v20  ;;  %v4470_v7 = vmul.f32 %v2922_v34, %v2902_v10  ;;  %v4472_v6 = vmul.f32 %v2923_v37, %v2903_v41  ;;  %v2891_v3 = vld [vmem:[#allocation2 + $0x5e] sm:$0x1]  ;;  %v2974_v62 = vld [vmem:[#allocation2 + $0x3f] sm:$0x1] }
 0x225   : > { %v2892_v60 = vld [vmem:[#allocation2 + $0x7e] sm:$0x1]  ;;  %v4474_v11 = vmul.f32 %v2924_v16, %v2904_v24  ;;  %v4476_v25 = vadd.f32 %v2949_v57, %v2881_v1  ;;  %v4478_v50 = vadd.f32 %v2950_v29, %v2882_v45  ;;  %v2911_v56 = vrot.slane %v2907_v54, 1  ;;  %v2975_v30 = vld [vmem:[#allocation2 + $0x5f] sm:$0x1] }
 0x226   : > { %v2893_v12 = vld [vmem:[#allocation2 + $0x9e] sm:$0x1]  ;;  %v2912_v35 = vrot.slane %v2907_v54, 2  ;;  %v2913_v19 = vrot.slane %v2907_v54, 3  ;;  %v2914_v55 = vrot.slane %v2907_v54, 4  ;;  %v2915_v58 = vrot.slane %v2907_v54, 5 }
 0x227   : > { %v2894_v61 = vld [vmem:[#allocation2 + $0xbe] sm:$0x1]  ;;  %v2916_v36 = vrot.slane %v2907_v54, 6  ;;  %v2917_v0 = vrot.slane %v2907_v54, 7  ;;  %v2941_v38 = vmul.f32 %v2907_v54, %v2889_v39  ;;  %v2942_v59 = vmul.f32 %v2911_v56, %v2890_v31  ;;  %v2976_v51 = vld [vmem:[#allocation2 + $0x7f] sm:$0x1] }
 0x228   : > { %v2895_v28 = vld [vmem:[#allocation2 + $0xde] sm:$0x1]  ;;  %v2943_v8 = vmul.f32 %v2912_v35, %v2891_v3  ;;  %v2944_v32 = vmul.f32 %v2913_v19, %v2892_v60  ;;  %v2945_v44 = vmul.f32 %v2914_v55, %v2893_v12  ;;  %v2946_v33 = vmul.f32 %v2915_v58, %v2894_v61  ;;  %v2977_v41 = vld [vmem:[#allocation2 + $0x9f] sm:$0x1] }
 0x229   : > { %v2896_v46 = vld [vmem:[#allocation2 + $0xfe] sm:$0x1]  ;;  %v4480_v4 = vadd.f32 %v2951_v21, %v2883_v49  ;;  %v2947_v17 = vmul.f32 %v2916_v36, %v2895_v28  ;;  %v2957_v45 = vadd.f32 %v2941_v38, %v4424_v18  ;;  %v2958_v20 = vadd.f32 %v2942_v59, %v4426_v27  ;;  %v2978_v16 = vld [vmem:[#allocation2 + $0xbf] sm:$0x1] }
 0x22a   : > { %v2948_v1 = vmul.f32 %v2917_v0, %v2896_v46  ;;  %v2959_v10 = vadd.f32 %v2943_v8, %v4428_v5  ;;  %v2960_v13 = vadd.f32 %v2944_v32, %v4431_v48  ;;  %v2961_v15 = vadd.f32 %v2945_v44, %v4433_v40  ;;  %v2979_v57 = vld [vmem:[#allocation2 + $0xdf] sm:$0x1] }
 0x22b   : > { %v2962_v34 = vadd.f32 %v2946_v33, %v4435_v26  ;;  %v2963_v37 = vadd.f32 %v2947_v17, %v4437_v47  ;;  %v2995_v18 = vrot.slane %v2991_v22, 1  ;;  %v2996_v49 = vrot.slane %v2991_v22, 2  ;;  %v2980_v24 = vld [vmem:[#allocation2 + $0xff] sm:$0x1] }
 0x22c   : > { %v2997_v29 = vrot.slane %v2991_v22, 3  ;;  %v2998_v27 = vrot.slane %v2991_v22, 4  ;;  %v2999_v54 = vrot.slane %v2991_v22, 5  ;;  %v3000_v5 = vrot.slane %v2991_v22, 6  ;;  %v2981_v0 = vld [vmem:[#allocation2 + $0x11f] sm:$0x1] }
 0x22d   : > { %v3001_v21 = vrot.slane %v2991_v22, 7  ;;  %v3025_v48 = vmul.f32 %v2991_v22, %v2973_v14  ;;  %v3026_v39 = vmul.f32 %v2995_v18, %v2974_v62  ;;  %v3027_v40 = vmul.f32 %v2996_v49, %v2975_v30  ;;  %v2982_v44 = vld [vmem:[#allocation2 + $0x13f] sm:$0x1] }
 0x22e   : > { %v3028_v31 = vmul.f32 %v2997_v29, %v2976_v51  ;;  %v3029_v3 = vmul.f32 %v2998_v27, %v2977_v41  ;;  %v3030_v60 = vmul.f32 %v2999_v54, %v2978_v16  ;;  %v3031_v12 = vmul.f32 %v3000_v5, %v2979_v57  ;;  %v2983_v33 = vld [vmem:[#allocation2 + $0x15f] sm:$0x1] }
 0x22f   : > { %v2964_v26 = vadd.f32 %v2948_v1, %v4443_v23  ;;  %v3032_v47 = vmul.f32 %v3001_v21, %v2980_v24  ;;  %v3042_v61 = vadd.f32 %v3026_v39, %v2958_v20  ;;  %v3043_v28 = vadd.f32 %v3027_v40, %v2959_v10  ;;  %v2988_v62 = vld [vmem:[#allocation2 + $0x1ff] sm:$0x1] }
 0x230   : > { %v3044_v56 = vadd.f32 %v3028_v31, %v2960_v13  ;;  %v4490_v46 = vadd.f32 %v3029_v3, %v2961_v15  ;;  %v4492_v35 = vadd.f32 %v3030_v60, %v2962_v34  ;;  %v4494_v19 = vadd.f32 %v3031_v12, %v2963_v37 }
 0x231   : > { %v2968_v55 = vadd.f32 %v4466_v52, %v4456_v2  ;;  %v2969_v58 = vadd.f32 %v4468_v43, %v4458_v63  ;;  %v2970_v36 = vadd.f32 %v4470_v7, %v4460_v9  ;;  %v4502_v23 = vadd.f32 %v3032_v47, %v2964_v26  ;;  %v2984_v2 = vld [vmem:[#allocation2 + $0x17f] sm:$0x1]  ;;  %v2994_v52 = vpop.permute.xlu1 %2993 }
 0x232   : > { %v2971_v38 = vadd.f32 %v4472_v6, %v4462_v53  ;;  %v2972_v59 = vadd.f32 %v4474_v11, %v4464_v42  ;;  %v3041_v8 = vadd.f32 %v3025_v48, %v2957_v45  ;;  %v3073_v32 = vrot.slane %v3042_v61, 7  ;;  %v2985_v9 = vld [vmem:[#allocation2 + $0x19f] sm:$0x1] }
 0x233   : > { %v3076_v22 = vrot.slane %v3043_v28, 6  ;;  %v3079_v63 = vrot.slane %v3044_v56, 5  ;;  %v3082_v43 = vrot.slane %v4490_v46, 4  ;;  %v3085_v7 = vrot.slane %v4492_v35, 3  ;;  %v2986_v6 = vld [vmem:[#allocation2 + $0x1bf] sm:$0x1] }
 0x234   : > { %v3088_v17 = vrot.slane %v4494_v19, 2  ;;  %v3091_v53 = vrot.slane %v4502_v23, 1  ;;  %v2987_v42 = vld [vmem:[#allocation2 + $0x1df] sm:$0x1]  ;;  %v3002_v11 = vrot.slane %v2994_v52, 1  ;;  %v3003_v1 = vrot.slane %v2994_v52, 2 }
 0x235   : > { %v3004_v45 = vrot.slane %v2994_v52, 3  ;;  %v3005_v14 = vrot.slane %v2994_v52, 4  ;;  %v3006_v20 = vrot.slane %v2994_v52, 5  ;;  %v3007_v10 = vrot.slane %v2994_v52, 6 }
 0x236   : > { %v3008_v13 = vrot.slane %v2994_v52, 7  ;;  %v3033_v15 = vmul.f32 %v2994_v52, %v2981_v0  ;;  %v3034_v30 = vmul.f32 %v3002_v11, %v2982_v44  ;;  %v3035_v51 = vmul.f32 %v3003_v1, %v2983_v33 }
 0x237   : > { %v3036_v41 = vmul.f32 %v3004_v45, %v2984_v2  ;;  %v3037_v34 = vmul.f32 %v3005_v14, %v2985_v9  ;;  %v3038_v37 = vmul.f32 %v3006_v20, %v2986_v6  ;;  %v3039_v16 = vmul.f32 %v3007_v10, %v2987_v42 }
 0x238   : > { %v3040_v57 = vmul.f32 %v3008_v13, %v2988_v62  ;;  %v3050_v18 = vadd.f32 %v3034_v30, %v4478_v50  ;;  %v3051_v49 = vadd.f32 %v3035_v51, %v4480_v4  ;;  %v3049_v29 = vadd.f32 %v3033_v15, %v4476_v25 }
 0x239   : > { %v3052_v24 = vadd.f32 %v3036_v41, %v2968_v55  ;;  %v3053_v27 = vadd.f32 %v3037_v34, %v2969_v58  ;;  %v3075_v54 = vsel %vm3074_vm1, %v3073_v32, %v3041_v8  ;;  %v3054_v5 = vadd.f32 %v3038_v37, %v2970_v36 }
 0x23a   : > { %v3078_v21 = vsel %vm3077_vm2, %v3076_v22, %v3075_v54  ;;  %v3094_v48 = vrot.slane %v3050_v18, 7  ;;  %v3096_v39 = vrot.slane %v3051_v49, 6  ;;  %v3055_v40 = vadd.f32 %v3039_v16, %v2971_v38 }
 0x23b   : > { %v3081_v31 = vsel %vm3080_vm3, %v3079_v63, %v3078_v21  ;;  %v3056_v50 = vadd.f32 %v3040_v57, %v2972_v59  ;;  %v3098_v25 = vrot.slane %v3052_v24, 5  ;;  %v3100_v26 = vrot.slane %v3053_v27, 4 }
 0x23c   : > { %v3084_v4 = vsel %vm3083_vm4, %v3082_v43, %v3081_v31  ;;  %v3095_v3 = vsel %vm3074_vm1, %v3094_v48, %v3049_v29  ;;  %v3102_v28 = vrot.slane %v3054_v5, 3  ;;  %v3104_v35 = vrot.slane %v3055_v40, 2 }
 0x23d   : > { %v3087_v60 = vsel %vm3086_vm5, %v3085_v7, %v3084_v4  ;;  %v3097_v12 = vsel %vm3077_vm2, %v3096_v39, %v3095_v3  ;;  %v3106_v55 = vrot.slane %v3056_v50, 1 }
 0x23e   : > { %v3090_v47 = vsel %vm3089_vm6, %v3088_v17, %v3087_v60  ;;  %v3099_v61 = vsel %vm3080_vm3, %v3098_v25, %v3097_v12 }
 0x23f   : > { %v3093_v56 = vsel %vm3092_vm7, %v3091_v53, %v3090_v47  ;;  %v3101_v46 = vsel %vm3083_vm4, %v3100_v26, %v3099_v61 }
 0x240   : > { %v3103_v19 = vsel %vm3086_vm5, %v3102_v28, %v3101_v46  ;;  %3111 = vst.msk [vmem:[%s3651_s7] sm:$0xff] %vm3110_vm8, %v3093_v56 }
 0x241   : > { %v3105_v58 = vsel %vm3089_vm6, %v3104_v35, %v3103_v19 }
 0x242   : > { %v3107_v36 = vsel %vm3092_vm7, %v3106_v55, %v3105_v58 }
 0x243   : > { %3112 = vst.msk [vmem:[%s3651_s7 + $0x8] sm:$0xff] %vm3110_vm8, %v3107_v36 }
 0x244 PF: > { %s16_s17 = sadd.s32 1, %s3503_s17   ;;  %s4556_s12 = smov %s3487_s13 }
 0x245   : > { %p13_p9 = scmp.ge.s32.totalorder %s16_s17, 18   ;;  %s4557_s13 = smov %s3491_s14 }
 0x246   : > { %s4558_s14 = smov %s3612_s24  ;;  %s4559_s15 = smov %s3499_s16 }
 0x247   : > { %s4560_s16 = smov %s4562_s19  ;;  %15 = sbr.rel (!%p13_p9) target bundleno = 4 (0x4), region = 113 }
 0x24e   :  { %3143 = vsyncpa [#allocation4], 1 }
 0x24f   :  { %3145 = vsyncpa [#allocation4 + $0x1], 1 }

</bundles_post_ra>
